<compile_context>
chip_gen: v6e
topology: v6e:2x2x1
jax: 0.10.0
libtpu: 0.0.40
codegen_flags: <defaults>
</compile_context>

<pallas_src>
import functools

import jax
import jax.numpy as jnp
from jax.experimental import pallas as pl
from jax.experimental.pallas import tpu as pltpu

_LANE = 128   # lane width: output pad + fc-slot width


# ----------------------------------------------------------------------------
# Fused kernel builder
# ----------------------------------------------------------------------------
def _build_kernel(num_layers, T, Bp, H, Din):
    """Kernel computing the full LSTMAutoencoder forward.

    Ref order:
      x        (Bp, T*Din)          f32   batch-major, batch padded to Bp
      w_ih0    (Din, 4H)            bf16  encoder layer 0 input weights
      w_ih_r   (2L-2, H, 4H)        bf16  [enc 1..L-1, dec 1..L-1]  (L>1 only)
      w_hh     (2L, H, 4H)          bf16  [enc 0..L-1, dec 0..L-1]
      b        (2L+3, max(4H,128))  f32   LSTM biases (b_ih+b_hh folded), then
                                          fc_enc / fc_dec / output biases
      w_misc   (3, 128, 128)        bf16  zero-padded fc_enc, fc_dec, w_out
      out      (Bp, T*128)          f32   lane-dense output slab (batch-major)
      g_scr    (T, Bp, 4H)          f32   scratch: hoisted input projections
      y_scr    (T, Bp, H)           f32   scratch: per-layer outputs over time
    Gate order matches PyTorch: i, f, g, o.
    """
    NL = num_layers
    G = 4 * H
    DP = _LANE
    has_rest = NL > 1
    f32, bf16 = jnp.float32, jnp.bfloat16

    def kernel(*refs):
        if has_rest:
            (x_ref, w_ih0_ref, w_ih_r_ref, w_hh_ref, b_ref, w_misc_ref,
             out_ref, g_scr, y_scr) = refs
        else:
            (x_ref, w_ih0_ref, w_hh_ref, b_ref, w_misc_ref,
             out_ref, g_scr, y_scr) = refs
            w_ih_r_ref = None

        zeros_bh = jnp.zeros((Bp, H), f32)

        def lstm_step(gates, c):
            # Full 4H-lane-width nonlinearities first (3 EUP pushes/step
            # instead of 5 masked quarter-width ones), slice gates after.
            sig = 0.5 * (jnp.tanh(0.5 * gates) + 1.0)       # i | f | . | o
            tnh = jnp.tanh(gates)                           # . | . | g | .
            i_g = sig[:, 0 * H:1 * H]
            f_g = sig[:, 1 * H:2 * H]
            g_g = tnh[:, 2 * H:3 * H]
            o_g = sig[:, 3 * H:4 * H]
            c = f_g * c + i_g * g_g
            h = o_g * jnp.tanh(c)
            return h, c

        def recurrence(gate_in, w_hh, h, c, collect_y):
            # Whole (padded) batch in one h @ W_hh push per step (the main
            # MXU-utilization lever on v6e/v7x for this latency-bound loop).
            # TODO(synk): if T grows past ~16-32, switch to
            # lax.fori_loop(..., unroll=2-4) with pl.ds reads of g_scr.
            for t in range(T):
                gates = gate_in(t) + jnp.dot(h.astype(bf16), w_hh,
                                             preferred_element_type=f32)
                h, c = lstm_step(gates, c)
                if collect_y:
                    y_scr[t] = h
            return h

        def hoisted_input_proj(w_ih, b_row):
            # One MXU matmul over all T*Bp rows of the previous layer's output
            # (sitting in y_scr); bias folded in.  Staged in g_scr so no
            # (T*Bp, 4H) value stays live across the recurrence.
            # TODO(synk): chunk over T when T*Bp*4H*4B nears the VMEM budget
            # (relevant on v7x's 64 MiB).
            y2d = y_scr[...].reshape(T * Bp, H).astype(bf16)
            g2d = jnp.dot(y2d, w_ih, preferred_element_type=f32) + b_row
            g_scr[...] = g2d.reshape(T, Bp, G)

        # ------------------------------ encoder -----------------------------
        # Layer 0 consumes x batch-major straight from the input ref (no
        # wrapper / in-kernel transpose); its input projection runs in-loop
        # but does not depend on h, so it stays off the recurrent crit path.
        xv = x_ref[...]                                     # (Bp, T*Din) f32
        w_ih0 = w_ih0_ref[...]                              # (Din, G) bf16
        b_enc0 = jnp.broadcast_to(b_ref[0:1, :G], (Bp, G))  # hoisted bcast

        def enc0_gates(t):
            x_t = xv[:, t * Din:(t + 1) * Din].astype(bf16)  # (Bp, Din)
            return jnp.dot(x_t, w_ih0, preferred_element_type=f32) + b_enc0

        h_last = recurrence(enc0_gates, w_hh_ref[0], zeros_bh, zeros_bh,
                            collect_y=(NL > 1))

        for l in range(1, NL):
            hoisted_input_proj(w_ih_r_ref[l - 1], b_ref[l:l + 1, :G])
            h_last = recurrence(lambda t: g_scr[t], w_hh_ref[l],
                                zeros_bh, zeros_bh,
                                collect_y=(l < NL - 1))   # last layer: h only

        # ----------------------------- bottleneck ---------------------------
        # fc_enc / fc_dec through zero-padded 128-wide slots: the padding
        # columns stay exactly zero, so no narrow lane slices mid-chain.
        w_fce = w_misc_ref[0][:H, :]                        # (H, 128)
        w_fcd = w_misc_ref[1]                               # (128, 128), rows>=L zero
        latent_p = (jnp.dot(h_last.astype(bf16), w_fce,
                            preferred_element_type=f32)
                    + b_ref[2 * NL:2 * NL + 1, :DP])        # (Bp, 128)
        dec_h0_p = (jnp.dot(latent_p.astype(bf16), w_fcd,
                            preferred_element_type=f32)
                    + b_ref[2 * NL + 1:2 * NL + 2, :DP])    # (Bp, 128)
        dec_h0 = dec_h0_p[:, :H]                            # (Bp, H)

        # ------------------------------ decoder -----------------------------
        # Reference feeds an all-zero decoder input; h0 = fc_dec(latent)
        # replicated across every layer, c0 = 0.  Layer 0's input projection
        # is therefore just its hoisted bias broadcast (W_ih is dead weight).
        b_dec0 = jnp.broadcast_to(b_ref[NL:NL + 1, :G], (Bp, G))
        recurrence(lambda t: b_dec0, w_hh_ref[NL], dec_h0, zeros_bh,
                   collect_y=True)

        for l in range(1, NL):
            hoisted_input_proj(w_ih_r_ref[(NL - 1) + (l - 1)],
                               b_ref[NL + l:NL + l + 1, :G])
            recurrence(lambda t: g_scr[t], w_hh_ref[NL + l], dec_h0, zeros_bh,
                       collect_y=True)

        # -------------------------- output projection -----------------------
        # Lane-dense (Bp, T*128) slab, written batch-major with 128-aligned
        # unmasked stores; wrapper slices back to Din.
        w_out = w_misc_ref[2][:H, :]                        # (H, 128)
        b_out = b_ref[2 * NL + 2:2 * NL + 3, :DP]
        y2d = y_scr[...].reshape(T * Bp, H).astype(bf16)
        out2d = jnp.dot(y2d, w_out, preferred_element_type=f32) + b_out
        for t in range(T):
            out_ref[:, t * DP:(t + 1) * DP] = out2d[t * Bp:(t + 1) * Bp, :]

    return kernel


# ----------------------------------------------------------------------------
# Parameter init (deterministic, PyTorch-like uniform(-1/sqrt(H), 1/sqrt(H)))
# ----------------------------------------------------------------------------
def init_params(key, input_dim, hidden_dim, latent_dim, num_layers):
    bound = 1.0 / float(hidden_dim) ** 0.5

    def unif(k, shape):
        return jax.random.uniform(k, shape, jnp.float32, -bound, bound)

    keys = iter(jax.random.split(key, 8 * num_layers + 6))
    params = {"enc": [], "dec": []}

    for layer in range(num_layers):
        d_in = input_dim if layer == 0 else hidden_dim
        w_ih = unif(next(keys), (d_in, 4 * hidden_dim))
        w_hh = unif(next(keys), (hidden_dim, 4 * hidden_dim))
        b_ih = unif(next(keys), (1, 4 * hidden_dim))
        b_hh = unif(next(keys), (1, 4 * hidden_dim))
        params["enc"].append((w_ih, w_hh, b_ih + b_hh))

    for layer in range(num_layers):
        d_in = hidden_dim  # decoder LSTM: input_size == hidden_size
        w_ih = unif(next(keys), (d_in, 4 * hidden_dim))
        w_hh = unif(next(keys), (hidden_dim, 4 * hidden_dim))
        b_ih = unif(next(keys), (1, 4 * hidden_dim))
        b_hh = unif(next(keys), (1, 4 * hidden_dim))
        params["dec"].append((w_ih, w_hh, b_ih + b_hh))

    params["fc_enc"] = (unif(next(keys), (hidden_dim, latent_dim)),
                        unif(next(keys), (1, latent_dim)))
    params["fc_dec"] = (unif(next(keys), (latent_dim, hidden_dim)),
                        unif(next(keys), (1, hidden_dim)))
    params["out"] = (unif(next(keys), (hidden_dim, input_dim)),
                     unif(next(keys), (1, input_dim)))
    return params


# ----------------------------------------------------------------------------
# One-time parameter packing / bf16 cast (outside the jitted forward)
# ----------------------------------------------------------------------------
def pack_params(params, num_layers):
    NL = num_layers
    enc, dec = params["enc"], params["dec"]
    H = enc[0][1].shape[0]
    G = 4 * H
    Din = enc[0][0].shape[0]
    L = params["fc_enc"][0].shape[1]
    BW = max(G, _LANE)
    assert H <= _LANE and L <= _LANE and Din <= _LANE, \
        "fc/out slot packing assumes hidden/latent/input dims <= 128"

    bf16 = lambda a: a.astype(jnp.bfloat16)

    packed = {
        "w_ih0": bf16(enc[0][0]),                                  # (Din, G)
        "w_hh": bf16(jnp.stack([enc[l][1] for l in range(NL)] +
                               [dec[l][1] for l in range(NL)])),   # (2NL, H, G)
    }
    if NL > 1:
        # Decoder layer 0's W_ih is intentionally dropped (zero decoder input).
        packed["w_ih_rest"] = bf16(jnp.stack(
            [enc[l][0] for l in range(1, NL)] +
            [dec[l][0] for l in range(1, NL)]))                    # (2NL-2, H, G)

    b = jnp.zeros((2 * NL + 3, BW), jnp.float32)
    for l in range(NL):
        b = b.at[l, :G].set(enc[l][2].reshape(-1))
        b = b.at[NL + l, :G].set(dec[l][2].reshape(-1))
    b = b.at[2 * NL, :L].set(params["fc_enc"][1].reshape(-1))
    b = b.at[2 * NL + 1, :H].set(params["fc_dec"][1].reshape(-1))
    b = b.at[2 * NL + 2, :Din].set(params["out"][1].reshape(-1))
    packed["b"] = b

    w_misc = jnp.zeros((3, _LANE, _LANE), jnp.float32)
    w_misc = w_misc.at[0, :H, :L].set(params["fc_enc"][0])
    w_misc = w_misc.at[1, :L, :H].set(params["fc_dec"][0])
    w_misc = w_misc.at[2, :H, :Din].set(params["out"][0])
    packed["w_misc"] = bf16(w_misc)
    return packed


# ----------------------------------------------------------------------------
# Full forward pass (mirrors LSTMAutoencoder.forward, single pallas_call)
# ----------------------------------------------------------------------------
def lstm_autoencoder_forward(packed, x, num_layers):
    B, T, Din = x.shape
    H = packed["w_hh"].shape[1]
    G = 4 * H
    DP = _LANE
    Bp = max(8, ((B + 7) // 8) * 8)      # pad batch to a full sublane group

    # Only wrapper-side staging left: batch pad (+ contiguous reshape) of the
    # tiny input; no transposes on either side of the kernel.
    x_p = jnp.zeros((Bp, T * Din), jnp.float32).at[:B].set(
        x.astype(jnp.float32).reshape(B, T * Din))

    args = [x_p, packed["w_ih0"]]
    if num_layers > 1:
        args.append(packed["w_ih_rest"])
    args += [packed["w_hh"], packed["b"], packed["w_misc"]]

    # VMEM budget from the actual resident set (inputs + output + scratch)
    # with headroom; >= v5e's 16 MiB scoped default, within v7x's 64 MiB.
    resident = sum(int(a.size) * a.dtype.itemsize for a in args)
    resident += Bp * T * DP * 4 + (T * Bp * G + T * Bp * H) * 4
    vmem_limit = int(min(60 << 20, max(32 << 20, 3 * resident + (4 << 20))))

    kernel = _build_kernel(num_layers, T, Bp, H, Din)
    vspec = pl.BlockSpec(memory_space=pltpu.MemorySpace.VMEM)
    # TODO(synk): for large real batches add a batch-tile grid axis with
    # dimension_semantics=("parallel",) so v7x's two TensorCores each run an
    # independent batch shard (keep >=128-256 rows per core for MXU fill).
    out_flat = pl.pallas_call(
        kernel,
        out_shape=jax.ShapeDtypeStruct((Bp, T * DP), jnp.float32),
        in_specs=[vspec] * len(args),
        out_specs=vspec,
        scratch_shapes=[pltpu.VMEM((T, Bp, G), jnp.float32),
                        pltpu.VMEM((T, Bp, H), jnp.float32)],
        compiler_params=pltpu.CompilerParams(vmem_limit_bytes=vmem_limit),
    )(*args)

    out = out_flat.reshape(Bp, T, DP)[:B, :, :Din]      # drop lane/batch pad
    return out


# ----------------------------------------------------------------------------
if __name__ == "__main__":
    seq_len, input_dim, hidden_dim, latent_dim, num_layers = 8, 8, 32, 16, 2
    batch = 4

    key = jax.random.PRNGKey(0)
    pkey, xkey = jax.random.split(key)
    params = init_params(pkey, input_dim, hidden_dim, latent_dim, num_layers)
    packed = pack_params(params, num_layers)        # one-time, outside jit
    x = jax.random.normal(xkey, (batch, seq_len, input_dim), jnp.float32)

    fwd = jax.jit(functools.partial(lstm_autoencoder_forward,
                                    num_layers=num_layers))
    out = fwd(packed, x)
    jax.block_until_ready(out)
    assert out.shape == (batch, seq_len, input_dim), out.shape
    assert out.dtype == jnp.float32
    assert bool(jnp.all(jnp.isfinite(out)))
    print("KERNEL_OK")
</pallas_src>

<mosaic_0001>
module attributes {stable_mosaic.version = 11 : i64} {
  func.func @kernel(%arg0: memref<8x64xf32, #tpu.memory_space<vmem>>, %arg1: memref<8x128xbf16, #tpu.memory_space<vmem>>, %arg2: memref<2x32x128xbf16, #tpu.memory_space<vmem>>, %arg3: memref<4x32x128xbf16, #tpu.memory_space<vmem>>, %arg4: memref<7x128xf32, #tpu.memory_space<vmem>>, %arg5: memref<3x128x128xbf16, #tpu.memory_space<vmem>>, %arg6: memref<8x1024xf32, #tpu.memory_space<vmem>>, %arg7: memref<8x8x128xf32, #tpu.memory_space<vmem>>, %arg8: memref<8x8x32xf32, #tpu.memory_space<vmem>>) attributes {dimension_semantics = [], scalar_prefetch = 0 : i64, scratch_operands = 2 : i64, tpu.core_type = #tpu.core_type<tc>} {
    %cst = arith.constant 0.000000e+00 : f32
    %0 = vector.broadcast %cst : f32 to vector<8x32xf32>
    %c0 = arith.constant 0 : index
    %c0_0 = arith.constant 0 : index
    %1 = vector.load %arg0[%c0, %c0_0] : memref<8x64xf32, #tpu.memory_space<vmem>>, vector<8x64xf32>
    %c0_1 = arith.constant 0 : index
    %c0_2 = arith.constant 0 : index
    %2 = vector.load %arg1[%c0_1, %c0_2] : memref<8x128xbf16, #tpu.memory_space<vmem>>, vector<8x128xbf16>
    %c0_3 = arith.constant 0 : index
    %c0_4 = arith.constant 0 : index
    %3 = vector.load %arg4[%c0_3, %c0_4] : memref<7x128xf32, #tpu.memory_space<vmem>>, vector<1x128xf32>
    %4 = vector.shape_cast %3 : vector<1x128xf32> to vector<1x128xf32>
    %5 = vector.broadcast %4 : vector<1x128xf32> to vector<8x128xf32>
    %c0_5 = arith.constant 0 : index
    %c0_6 = arith.constant 0 : index
    %c0_7 = arith.constant 0 : index
    %6 = vector.load %arg3[%c0_5, %c0_6, %c0_7] : memref<4x32x128xbf16, #tpu.memory_space<vmem>>, vector<1x32x128xbf16>
    %7 = vector.shape_cast %6 : vector<1x32x128xbf16> to vector<32x128xbf16>
    %8 = vector.extract_strided_slice %1 {offsets = [0, 0], sizes = [8, 8], strides = [1, 1]} : vector<8x64xf32> to vector<8x8xf32>
    %9 = arith.truncf %8 : vector<8x8xf32> to vector<8x8xbf16>
    %cst_8 = arith.constant dense<0.000000e+00> : vector<8x128xf32>
    %10 = tpu.matmul %9, %2, %cst_8 {dimension_numbers = #tpu.dot_dimension_numbers<[1], [0], [0], [1], [0, 0, 1, 1], [], []>} : vector<8x8xbf16>, vector<8x128xbf16>, vector<8x128xf32> -> vector<8x128xf32>
    %11 = arith.addf %10, %5 : vector<8x128xf32>
    %12 = arith.truncf %0 : vector<8x32xf32> to vector<8x32xbf16>
    %cst_9 = arith.constant dense<0.000000e+00> : vector<8x128xf32>
    %13 = tpu.matmul %12, %7, %cst_9 {dimension_numbers = #tpu.dot_dimension_numbers<[1], [0], [0], [1], [0, 0, 1, 1], [], []>} : vector<8x32xbf16>, vector<32x128xbf16>, vector<8x128xf32> -> vector<8x128xf32>
    %14 = arith.addf %11, %13 : vector<8x128xf32>
    %cst_10 = arith.constant 5.000000e-01 : f32
    %15 = vector.broadcast %cst_10 : f32 to vector<8x128xf32>
    %16 = arith.mulf %15, %14 : vector<8x128xf32>
    %17 = math.tanh %16 : vector<8x128xf32>
    %cst_11 = arith.constant 1.000000e+00 : f32
    %18 = vector.broadcast %cst_11 : f32 to vector<8x128xf32>
    %19 = arith.addf %17, %18 : vector<8x128xf32>
    %cst_12 = arith.constant 5.000000e-01 : f32
    %20 = vector.broadcast %cst_12 : f32 to vector<8x128xf32>
    %21 = arith.mulf %20, %19 : vector<8x128xf32>
    %22 = math.tanh %14 : vector<8x128xf32>
    %23 = vector.extract_strided_slice %21 {offsets = [0, 0], sizes = [8, 32], strides = [1, 1]} : vector<8x128xf32> to vector<8x32xf32>
    %24 = vector.extract_strided_slice %21 {offsets = [0, 32], sizes = [8, 32], strides = [1, 1]} : vector<8x128xf32> to vector<8x32xf32>
    %25 = vector.extract_strided_slice %22 {offsets = [0, 64], sizes = [8, 32], strides = [1, 1]} : vector<8x128xf32> to vector<8x32xf32>
    %26 = vector.extract_strided_slice %21 {offsets = [0, 96], sizes = [8, 32], strides = [1, 1]} : vector<8x128xf32> to vector<8x32xf32>
    %27 = arith.mulf %24, %0 : vector<8x32xf32>
    %28 = arith.mulf %23, %25 : vector<8x32xf32>
    %29 = arith.addf %27, %28 : vector<8x32xf32>
    %30 = math.tanh %29 : vector<8x32xf32>
    %31 = arith.mulf %26, %30 : vector<8x32xf32>
    %c0_13 = arith.constant 0 : index
    %c0_14 = arith.constant 0 : index
    %c0_15 = arith.constant 0 : index
    %32 = vector.load %arg8[%c0_13, %c0_14, %c0_15] : memref<8x8x32xf32, #tpu.memory_space<vmem>>, vector<1x8x32xf32>
    %33 = vector.shape_cast %32 : vector<1x8x32xf32> to vector<8x32xf32>
    %34 = vector.shape_cast %31 : vector<8x32xf32> to vector<1x8x32xf32>
    tpu.vector_store %arg8[%c0_13, %c0_14, %c0_15], %34 {strides = array<i32>} : memref<8x8x32xf32, #tpu.memory_space<vmem>>, vector<1x8x32xf32>,
    %35 = vector.extract_strided_slice %1 {offsets = [0, 8], sizes = [8, 8], strides = [1, 1]} : vector<8x64xf32> to vector<8x8xf32>
    %36 = arith.truncf %35 : vector<8x8xf32> to vector<8x8xbf16>
    %cst_16 = arith.constant dense<0.000000e+00> : vector<8x128xf32>
    %37 = tpu.matmul %36, %2, %cst_16 {dimension_numbers = #tpu.dot_dimension_numbers<[1], [0], [0], [1], [0, 0, 1, 1], [], []>} : vector<8x8xbf16>, vector<8x128xbf16>, vector<8x128xf32> -> vector<8x128xf32>
    %38 = arith.addf %37, %5 : vector<8x128xf32>
    %39 = arith.truncf %31 : vector<8x32xf32> to vector<8x32xbf16>
    %cst_17 = arith.constant dense<0.000000e+00> : vector<8x128xf32>
    %40 = tpu.matmul %39, %7, %cst_17 {dimension_numbers = #tpu.dot_dimension_numbers<[1], [0], [0], [1], [0, 0, 1, 1], [], []>} : vector<8x32xbf16>, vector<32x128xbf16>, vector<8x128xf32> -> vector<8x128xf32>
    %41 = arith.addf %38, %40 : vector<8x128xf32>
    %cst_18 = arith.constant 5.000000e-01 : f32
    %42 = vector.broadcast %cst_18 : f32 to vector<8x128xf32>
    %43 = arith.mulf %42, %41 : vector<8x128xf32>
    %44 = math.tanh %43 : vector<8x128xf32>
    %cst_19 = arith.constant 1.000000e+00 : f32
    %45 = vector.broadcast %cst_19 : f32 to vector<8x128xf32>
    %46 = arith.addf %44, %45 : vector<8x128xf32>
    %cst_20 = arith.constant 5.000000e-01 : f32
    %47 = vector.broadcast %cst_20 : f32 to vector<8x128xf32>
    %48 = arith.mulf %47, %46 : vector<8x128xf32>
    %49 = math.tanh %41 : vector<8x128xf32>
    %50 = vector.extract_strided_slice %48 {offsets = [0, 0], sizes = [8, 32], strides = [1, 1]} : vector<8x128xf32> to vector<8x32xf32>
    %51 = vector.extract_strided_slice %48 {offsets = [0, 32], sizes = [8, 32], strides = [1, 1]} : vector<8x128xf32> to vector<8x32xf32>
    %52 = vector.extract_strided_slice %49 {offsets = [0, 64], sizes = [8, 32], strides = [1, 1]} : vector<8x128xf32> to vector<8x32xf32>
    %53 = vector.extract_strided_slice %48 {offsets = [0, 96], sizes = [8, 32], strides = [1, 1]} : vector<8x128xf32> to vector<8x32xf32>
    %54 = arith.mulf %51, %29 : vector<8x32xf32>
    %55 = arith.mulf %50, %52 : vector<8x32xf32>
    %56 = arith.addf %54, %55 : vector<8x32xf32>
    %57 = math.tanh %56 : vector<8x32xf32>
    %58 = arith.mulf %53, %57 : vector<8x32xf32>
    %c1 = arith.constant 1 : index
    %c0_21 = arith.constant 0 : index
    %c0_22 = arith.constant 0 : index
    %59 = vector.load %arg8[%c1, %c0_21, %c0_22] : memref<8x8x32xf32, #tpu.memory_space<vmem>>, vector<1x8x32xf32>
    %60 = vector.shape_cast %59 : vector<1x8x32xf32> to vector<8x32xf32>
    %61 = vector.shape_cast %58 : vector<8x32xf32> to vector<1x8x32xf32>
    tpu.vector_store %arg8[%c1, %c0_21, %c0_22], %61 {strides = array<i32>} : memref<8x8x32xf32, #tpu.memory_space<vmem>>, vector<1x8x32xf32>,
    %62 = vector.extract_strided_slice %1 {offsets = [0, 16], sizes = [8, 8], strides = [1, 1]} : vector<8x64xf32> to vector<8x8xf32>
    %63 = arith.truncf %62 : vector<8x8xf32> to vector<8x8xbf16>
    %cst_23 = arith.constant dense<0.000000e+00> : vector<8x128xf32>
    %64 = tpu.matmul %63, %2, %cst_23 {dimension_numbers = #tpu.dot_dimension_numbers<[1], [0], [0], [1], [0, 0, 1, 1], [], []>} : vector<8x8xbf16>, vector<8x128xbf16>, vector<8x128xf32> -> vector<8x128xf32>
    %65 = arith.addf %64, %5 : vector<8x128xf32>
    %66 = arith.truncf %58 : vector<8x32xf32> to vector<8x32xbf16>
    %cst_24 = arith.constant dense<0.000000e+00> : vector<8x128xf32>
    %67 = tpu.matmul %66, %7, %cst_24 {dimension_numbers = #tpu.dot_dimension_numbers<[1], [0], [0], [1], [0, 0, 1, 1], [], []>} : vector<8x32xbf16>, vector<32x128xbf16>, vector<8x128xf32> -> vector<8x128xf32>
    %68 = arith.addf %65, %67 : vector<8x128xf32>
    %cst_25 = arith.constant 5.000000e-01 : f32
    %69 = vector.broadcast %cst_25 : f32 to vector<8x128xf32>
    %70 = arith.mulf %69, %68 : vector<8x128xf32>
    %71 = math.tanh %70 : vector<8x128xf32>
    %cst_26 = arith.constant 1.000000e+00 : f32
    %72 = vector.broadcast %cst_26 : f32 to vector<8x128xf32>
    %73 = arith.addf %71, %72 : vector<8x128xf32>
    %cst_27 = arith.constant 5.000000e-01 : f32
    %74 = vector.broadcast %cst_27 : f32 to vector<8x128xf32>
    %75 = arith.mulf %74, %73 : vector<8x128xf32>
    %76 = math.tanh %68 : vector<8x128xf32>
    %77 = vector.extract_strided_slice %75 {offsets = [0, 0], sizes = [8, 32], strides = [1, 1]} : vector<8x128xf32> to vector<8x32xf32>
    %78 = vector.extract_strided_slice %75 {offsets = [0, 32], sizes = [8, 32], strides = [1, 1]} : vector<8x128xf32> to vector<8x32xf32>
    %79 = vector.extract_strided_slice %76 {offsets = [0, 64], sizes = [8, 32], strides = [1, 1]} : vector<8x128xf32> to vector<8x32xf32>
    %80 = vector.extract_strided_slice %75 {offsets = [0, 96], sizes = [8, 32], strides = [1, 1]} : vector<8x128xf32> to vector<8x32xf32>
    %81 = arith.mulf %78, %56 : vector<8x32xf32>
    %82 = arith.mulf %77, %79 : vector<8x32xf32>
    %83 = arith.addf %81, %82 : vector<8x32xf32>
    %84 = math.tanh %83 : vector<8x32xf32>
    %85 = arith.mulf %80, %84 : vector<8x32xf32>
    %c2 = arith.constant 2 : index
    %c0_28 = arith.constant 0 : index
    %c0_29 = arith.constant 0 : index
    %86 = vector.load %arg8[%c2, %c0_28, %c0_29] : memref<8x8x32xf32, #tpu.memory_space<vmem>>, vector<1x8x32xf32>
    %87 = vector.shape_cast %86 : vector<1x8x32xf32> to vector<8x32xf32>
    %88 = vector.shape_cast %85 : vector<8x32xf32> to vector<1x8x32xf32>
    tpu.vector_store %arg8[%c2, %c0_28, %c0_29], %88 {strides = array<i32>} : memref<8x8x32xf32, #tpu.memory_space<vmem>>, vector<1x8x32xf32>,
    %89 = vector.extract_strided_slice %1 {offsets = [0, 24], sizes = [8, 8], strides = [1, 1]} : vector<8x64xf32> to vector<8x8xf32>
    %90 = arith.truncf %89 : vector<8x8xf32> to vector<8x8xbf16>
    %cst_30 = arith.constant dense<0.000000e+00> : vector<8x128xf32>
    %91 = tpu.matmul %90, %2, %cst_30 {dimension_numbers = #tpu.dot_dimension_numbers<[1], [0], [0], [1], [0, 0, 1, 1], [], []>} : vector<8x8xbf16>, vector<8x128xbf16>, vector<8x128xf32> -> vector<8x128xf32>
    %92 = arith.addf %91, %5 : vector<8x128xf32>
    %93 = arith.truncf %85 : vector<8x32xf32> to vector<8x32xbf16>
    %cst_31 = arith.constant dense<0.000000e+00> : vector<8x128xf32>
    %94 = tpu.matmul %93, %7, %cst_31 {dimension_numbers = #tpu.dot_dimension_numbers<[1], [0], [0], [1], [0, 0, 1, 1], [], []>} : vector<8x32xbf16>, vector<32x128xbf16>, vector<8x128xf32> -> vector<8x128xf32>
    %95 = arith.addf %92, %94 : vector<8x128xf32>
    %cst_32 = arith.constant 5.000000e-01 : f32
    %96 = vector.broadcast %cst_32 : f32 to vector<8x128xf32>
    %97 = arith.mulf %96, %95 : vector<8x128xf32>
    %98 = math.tanh %97 : vector<8x128xf32>
    %cst_33 = arith.constant 1.000000e+00 : f32
    %99 = vector.broadcast %cst_33 : f32 to vector<8x128xf32>
    %100 = arith.addf %98, %99 : vector<8x128xf32>
    %cst_34 = arith.constant 5.000000e-01 : f32
    %101 = vector.broadcast %cst_34 : f32 to vector<8x128xf32>
    %102 = arith.mulf %101, %100 : vector<8x128xf32>
    %103 = math.tanh %95 : vector<8x128xf32>
    %104 = vector.extract_strided_slice %102 {offsets = [0, 0], sizes = [8, 32], strides = [1, 1]} : vector<8x128xf32> to vector<8x32xf32>
    %105 = vector.extract_strided_slice %102 {offsets = [0, 32], sizes = [8, 32], strides = [1, 1]} : vector<8x128xf32> to vector<8x32xf32>
    %106 = vector.extract_strided_slice %103 {offsets = [0, 64], sizes = [8, 32], strides = [1, 1]} : vector<8x128xf32> to vector<8x32xf32>
    %107 = vector.extract_strided_slice %102 {offsets = [0, 96], sizes = [8, 32], strides = [1, 1]} : vector<8x128xf32> to vector<8x32xf32>
    %108 = arith.mulf %105, %83 : vector<8x32xf32>
    %109 = arith.mulf %104, %106 : vector<8x32xf32>
    %110 = arith.addf %108, %109 : vector<8x32xf32>
    %111 = math.tanh %110 : vector<8x32xf32>
    %112 = arith.mulf %107, %111 : vector<8x32xf32>
    %c3 = arith.constant 3 : index
    %c0_35 = arith.constant 0 : index
    %c0_36 = arith.constant 0 : index
    %113 = vector.load %arg8[%c3, %c0_35, %c0_36] : memref<8x8x32xf32, #tpu.memory_space<vmem>>, vector<1x8x32xf32>
    %114 = vector.shape_cast %113 : vector<1x8x32xf32> to vector<8x32xf32>
    %115 = vector.shape_cast %112 : vector<8x32xf32> to vector<1x8x32xf32>
    tpu.vector_store %arg8[%c3, %c0_35, %c0_36], %115 {strides = array<i32>} : memref<8x8x32xf32, #tpu.memory_space<vmem>>, vector<1x8x32xf32>,
    %116 = vector.extract_strided_slice %1 {offsets = [0, 32], sizes = [8, 8], strides = [1, 1]} : vector<8x64xf32> to vector<8x8xf32>
    %117 = arith.truncf %116 : vector<8x8xf32> to vector<8x8xbf16>
    %cst_37 = arith.constant dense<0.000000e+00> : vector<8x128xf32>
    %118 = tpu.matmul %117, %2, %cst_37 {dimension_numbers = #tpu.dot_dimension_numbers<[1], [0], [0], [1], [0, 0, 1, 1], [], []>} : vector<8x8xbf16>, vector<8x128xbf16>, vector<8x128xf32> -> vector<8x128xf32>
    %119 = arith.addf %118, %5 : vector<8x128xf32>
    %120 = arith.truncf %112 : vector<8x32xf32> to vector<8x32xbf16>
    %cst_38 = arith.constant dense<0.000000e+00> : vector<8x128xf32>
    %121 = tpu.matmul %120, %7, %cst_38 {dimension_numbers = #tpu.dot_dimension_numbers<[1], [0], [0], [1], [0, 0, 1, 1], [], []>} : vector<8x32xbf16>, vector<32x128xbf16>, vector<8x128xf32> -> vector<8x128xf32>
    %122 = arith.addf %119, %121 : vector<8x128xf32>
    %cst_39 = arith.constant 5.000000e-01 : f32
    %123 = vector.broadcast %cst_39 : f32 to vector<8x128xf32>
    %124 = arith.mulf %123, %122 : vector<8x128xf32>
    %125 = math.tanh %124 : vector<8x128xf32>
    %cst_40 = arith.constant 1.000000e+00 : f32
    %126 = vector.broadcast %cst_40 : f32 to vector<8x128xf32>
    %127 = arith.addf %125, %126 : vector<8x128xf32>
    %cst_41 = arith.constant 5.000000e-01 : f32
    %128 = vector.broadcast %cst_41 : f32 to vector<8x128xf32>
    %129 = arith.mulf %128, %127 : vector<8x128xf32>
    %130 = math.tanh %122 : vector<8x128xf32>
    %131 = vector.extract_strided_slice %129 {offsets = [0, 0], sizes = [8, 32], strides = [1, 1]} : vector<8x128xf32> to vector<8x32xf32>
    %132 = vector.extract_strided_slice %129 {offsets = [0, 32], sizes = [8, 32], strides = [1, 1]} : vector<8x128xf32> to vector<8x32xf32>
    %133 = vector.extract_strided_slice %130 {offsets = [0, 64], sizes = [8, 32], strides = [1, 1]} : vector<8x128xf32> to vector<8x32xf32>
    %134 = vector.extract_strided_slice %129 {offsets = [0, 96], sizes = [8, 32], strides = [1, 1]} : vector<8x128xf32> to vector<8x32xf32>
    %135 = arith.mulf %132, %110 : vector<8x32xf32>
    %136 = arith.mulf %131, %133 : vector<8x32xf32>
    %137 = arith.addf %135, %136 : vector<8x32xf32>
    %138 = math.tanh %137 : vector<8x32xf32>
    %139 = arith.mulf %134, %138 : vector<8x32xf32>
    %c4 = arith.constant 4 : index
    %c0_42 = arith.constant 0 : index
    %c0_43 = arith.constant 0 : index
    %140 = vector.load %arg8[%c4, %c0_42, %c0_43] : memref<8x8x32xf32, #tpu.memory_space<vmem>>, vector<1x8x32xf32>
    %141 = vector.shape_cast %140 : vector<1x8x32xf32> to vector<8x32xf32>
    %142 = vector.shape_cast %139 : vector<8x32xf32> to vector<1x8x32xf32>
    tpu.vector_store %arg8[%c4, %c0_42, %c0_43], %142 {strides = array<i32>} : memref<8x8x32xf32, #tpu.memory_space<vmem>>, vector<1x8x32xf32>,
    %143 = vector.extract_strided_slice %1 {offsets = [0, 40], sizes = [8, 8], strides = [1, 1]} : vector<8x64xf32> to vector<8x8xf32>
    %144 = arith.truncf %143 : vector<8x8xf32> to vector<8x8xbf16>
    %cst_44 = arith.constant dense<0.000000e+00> : vector<8x128xf32>
    %145 = tpu.matmul %144, %2, %cst_44 {dimension_numbers = #tpu.dot_dimension_numbers<[1], [0], [0], [1], [0, 0, 1, 1], [], []>} : vector<8x8xbf16>, vector<8x128xbf16>, vector<8x128xf32> -> vector<8x128xf32>
    %146 = arith.addf %145, %5 : vector<8x128xf32>
    %147 = arith.truncf %139 : vector<8x32xf32> to vector<8x32xbf16>
    %cst_45 = arith.constant dense<0.000000e+00> : vector<8x128xf32>
    %148 = tpu.matmul %147, %7, %cst_45 {dimension_numbers = #tpu.dot_dimension_numbers<[1], [0], [0], [1], [0, 0, 1, 1], [], []>} : vector<8x32xbf16>, vector<32x128xbf16>, vector<8x128xf32> -> vector<8x128xf32>
    %149 = arith.addf %146, %148 : vector<8x128xf32>
    %cst_46 = arith.constant 5.000000e-01 : f32
    %150 = vector.broadcast %cst_46 : f32 to vector<8x128xf32>
    %151 = arith.mulf %150, %149 : vector<8x128xf32>
    %152 = math.tanh %151 : vector<8x128xf32>
    %cst_47 = arith.constant 1.000000e+00 : f32
    %153 = vector.broadcast %cst_47 : f32 to vector<8x128xf32>
    %154 = arith.addf %152, %153 : vector<8x128xf32>
    %cst_48 = arith.constant 5.000000e-01 : f32
    %155 = vector.broadcast %cst_48 : f32 to vector<8x128xf32>
    %156 = arith.mulf %155, %154 : vector<8x128xf32>
    %157 = math.tanh %149 : vector<8x128xf32>
    %158 = vector.extract_strided_slice %156 {offsets = [0, 0], sizes = [8, 32], strides = [1, 1]} : vector<8x128xf32> to vector<8x32xf32>
    %159 = vector.extract_strided_slice %156 {offsets = [0, 32], sizes = [8, 32], strides = [1, 1]} : vector<8x128xf32> to vector<8x32xf32>
    %160 = vector.extract_strided_slice %157 {offsets = [0, 64], sizes = [8, 32], strides = [1, 1]} : vector<8x128xf32> to vector<8x32xf32>
    %161 = vector.extract_strided_slice %156 {offsets = [0, 96], sizes = [8, 32], strides = [1, 1]} : vector<8x128xf32> to vector<8x32xf32>
    %162 = arith.mulf %159, %137 : vector<8x32xf32>
    %163 = arith.mulf %158, %160 : vector<8x32xf32>
    %164 = arith.addf %162, %163 : vector<8x32xf32>
    %165 = math.tanh %164 : vector<8x32xf32>
    %166 = arith.mulf %161, %165 : vector<8x32xf32>
    %c5 = arith.constant 5 : index
    %c0_49 = arith.constant 0 : index
    %c0_50 = arith.constant 0 : index
    %167 = vector.load %arg8[%c5, %c0_49, %c0_50] : memref<8x8x32xf32, #tpu.memory_space<vmem>>, vector<1x8x32xf32>
    %168 = vector.shape_cast %167 : vector<1x8x32xf32> to vector<8x32xf32>
    %169 = vector.shape_cast %166 : vector<8x32xf32> to vector<1x8x32xf32>
    tpu.vector_store %arg8[%c5, %c0_49, %c0_50], %169 {strides = array<i32>} : memref<8x8x32xf32, #tpu.memory_space<vmem>>, vector<1x8x32xf32>,
    %170 = vector.extract_strided_slice %1 {offsets = [0, 48], sizes = [8, 8], strides = [1, 1]} : vector<8x64xf32> to vector<8x8xf32>
    %171 = arith.truncf %170 : vector<8x8xf32> to vector<8x8xbf16>
    %cst_51 = arith.constant dense<0.000000e+00> : vector<8x128xf32>
    %172 = tpu.matmul %171, %2, %cst_51 {dimension_numbers = #tpu.dot_dimension_numbers<[1], [0], [0], [1], [0, 0, 1, 1], [], []>} : vector<8x8xbf16>, vector<8x128xbf16>, vector<8x128xf32> -> vector<8x128xf32>
    %173 = arith.addf %172, %5 : vector<8x128xf32>
    %174 = arith.truncf %166 : vector<8x32xf32> to vector<8x32xbf16>
    %cst_52 = arith.constant dense<0.000000e+00> : vector<8x128xf32>
    %175 = tpu.matmul %174, %7, %cst_52 {dimension_numbers = #tpu.dot_dimension_numbers<[1], [0], [0], [1], [0, 0, 1, 1], [], []>} : vector<8x32xbf16>, vector<32x128xbf16>, vector<8x128xf32> -> vector<8x128xf32>
    %176 = arith.addf %173, %175 : vector<8x128xf32>
    %cst_53 = arith.constant 5.000000e-01 : f32
    %177 = vector.broadcast %cst_53 : f32 to vector<8x128xf32>
    %178 = arith.mulf %177, %176 : vector<8x128xf32>
    %179 = math.tanh %178 : vector<8x128xf32>
    %cst_54 = arith.constant 1.000000e+00 : f32
    %180 = vector.broadcast %cst_54 : f32 to vector<8x128xf32>
    %181 = arith.addf %179, %180 : vector<8x128xf32>
    %cst_55 = arith.constant 5.000000e-01 : f32
    %182 = vector.broadcast %cst_55 : f32 to vector<8x128xf32>
    %183 = arith.mulf %182, %181 : vector<8x128xf32>
    %184 = math.tanh %176 : vector<8x128xf32>
    %185 = vector.extract_strided_slice %183 {offsets = [0, 0], sizes = [8, 32], strides = [1, 1]} : vector<8x128xf32> to vector<8x32xf32>
    %186 = vector.extract_strided_slice %183 {offsets = [0, 32], sizes = [8, 32], strides = [1, 1]} : vector<8x128xf32> to vector<8x32xf32>
    %187 = vector.extract_strided_slice %184 {offsets = [0, 64], sizes = [8, 32], strides = [1, 1]} : vector<8x128xf32> to vector<8x32xf32>
    %188 = vector.extract_strided_slice %183 {offsets = [0, 96], sizes = [8, 32], strides = [1, 1]} : vector<8x128xf32> to vector<8x32xf32>
    %189 = arith.mulf %186, %164 : vector<8x32xf32>
    %190 = arith.mulf %185, %187 : vector<8x32xf32>
    %191 = arith.addf %189, %190 : vector<8x32xf32>
    %192 = math.tanh %191 : vector<8x32xf32>
    %193 = arith.mulf %188, %192 : vector<8x32xf32>
    %c6 = arith.constant 6 : index
    %c0_56 = arith.constant 0 : index
    %c0_57 = arith.constant 0 : index
    %194 = vector.load %arg8[%c6, %c0_56, %c0_57] : memref<8x8x32xf32, #tpu.memory_space<vmem>>, vector<1x8x32xf32>
    %195 = vector.shape_cast %194 : vector<1x8x32xf32> to vector<8x32xf32>
    %196 = vector.shape_cast %193 : vector<8x32xf32> to vector<1x8x32xf32>
    tpu.vector_store %arg8[%c6, %c0_56, %c0_57], %196 {strides = array<i32>} : memref<8x8x32xf32, #tpu.memory_space<vmem>>, vector<1x8x32xf32>,
    %197 = vector.extract_strided_slice %1 {offsets = [0, 56], sizes = [8, 8], strides = [1, 1]} : vector<8x64xf32> to vector<8x8xf32>
    %198 = arith.truncf %197 : vector<8x8xf32> to vector<8x8xbf16>
    %cst_58 = arith.constant dense<0.000000e+00> : vector<8x128xf32>
    %199 = tpu.matmul %198, %2, %cst_58 {dimension_numbers = #tpu.dot_dimension_numbers<[1], [0], [0], [1], [0, 0, 1, 1], [], []>} : vector<8x8xbf16>, vector<8x128xbf16>, vector<8x128xf32> -> vector<8x128xf32>
    %200 = arith.addf %199, %5 : vector<8x128xf32>
    %201 = arith.truncf %193 : vector<8x32xf32> to vector<8x32xbf16>
    %cst_59 = arith.constant dense<0.000000e+00> : vector<8x128xf32>
    %202 = tpu.matmul %201, %7, %cst_59 {dimension_numbers = #tpu.dot_dimension_numbers<[1], [0], [0], [1], [0, 0, 1, 1], [], []>} : vector<8x32xbf16>, vector<32x128xbf16>, vector<8x128xf32> -> vector<8x128xf32>
    %203 = arith.addf %200, %202 : vector<8x128xf32>
    %cst_60 = arith.constant 5.000000e-01 : f32
    %204 = vector.broadcast %cst_60 : f32 to vector<8x128xf32>
    %205 = arith.mulf %204, %203 : vector<8x128xf32>
    %206 = math.tanh %205 : vector<8x128xf32>
    %cst_61 = arith.constant 1.000000e+00 : f32
    %207 = vector.broadcast %cst_61 : f32 to vector<8x128xf32>
    %208 = arith.addf %206, %207 : vector<8x128xf32>
    %cst_62 = arith.constant 5.000000e-01 : f32
    %209 = vector.broadcast %cst_62 : f32 to vector<8x128xf32>
    %210 = arith.mulf %209, %208 : vector<8x128xf32>
    %211 = math.tanh %203 : vector<8x128xf32>
    %212 = vector.extract_strided_slice %210 {offsets = [0, 0], sizes = [8, 32], strides = [1, 1]} : vector<8x128xf32> to vector<8x32xf32>
    %213 = vector.extract_strided_slice %210 {offsets = [0, 32], sizes = [8, 32], strides = [1, 1]} : vector<8x128xf32> to vector<8x32xf32>
    %214 = vector.extract_strided_slice %211 {offsets = [0, 64], sizes = [8, 32], strides = [1, 1]} : vector<8x128xf32> to vector<8x32xf32>
    %215 = vector.extract_strided_slice %210 {offsets = [0, 96], sizes = [8, 32], strides = [1, 1]} : vector<8x128xf32> to vector<8x32xf32>
    %216 = arith.mulf %213, %191 : vector<8x32xf32>
    %217 = arith.mulf %212, %214 : vector<8x32xf32>
    %218 = arith.addf %216, %217 : vector<8x32xf32>
    %219 = math.tanh %218 : vector<8x32xf32>
    %220 = arith.mulf %215, %219 : vector<8x32xf32>
    %c7 = arith.constant 7 : index
    %c0_63 = arith.constant 0 : index
    %c0_64 = arith.constant 0 : index
    %221 = vector.load %arg8[%c7, %c0_63, %c0_64] : memref<8x8x32xf32, #tpu.memory_space<vmem>>, vector<1x8x32xf32>
    %222 = vector.shape_cast %221 : vector<1x8x32xf32> to vector<8x32xf32>
    %223 = vector.shape_cast %220 : vector<8x32xf32> to vector<1x8x32xf32>
    tpu.vector_store %arg8[%c7, %c0_63, %c0_64], %223 {strides = array<i32>} : memref<8x8x32xf32, #tpu.memory_space<vmem>>, vector<1x8x32xf32>,
    %c0_65 = arith.constant 0 : index
    %c0_66 = arith.constant 0 : index
    %c0_67 = arith.constant 0 : index
    %224 = vector.load %arg2[%c0_65, %c0_66, %c0_67] : memref<2x32x128xbf16, #tpu.memory_space<vmem>>, vector<1x32x128xbf16>
    %225 = vector.shape_cast %224 : vector<1x32x128xbf16> to vector<32x128xbf16>
    %c1_68 = arith.constant 1 : index
    %c0_69 = arith.constant 0 : index
    %226 = vector.load %arg4[%c1_68, %c0_69] : memref<7x128xf32, #tpu.memory_space<vmem>>, vector<1x128xf32>
    %c0_70 = arith.constant 0 : index
    %c0_71 = arith.constant 0 : index
    %c0_72 = arith.constant 0 : index
    %227 = vector.load %arg8[%c0_70, %c0_71, %c0_72] : memref<8x8x32xf32, #tpu.memory_space<vmem>>, vector<8x8x32xf32>
    %228 = vector.shape_cast %227 : vector<8x8x32xf32> to vector<64x32xf32>
    %229 = arith.truncf %228 : vector<64x32xf32> to vector<64x32xbf16>
    %cst_73 = arith.constant dense<0.000000e+00> : vector<64x128xf32>
    %230 = tpu.matmul %229, %225, %cst_73 {dimension_numbers = #tpu.dot_dimension_numbers<[1], [0], [0], [1], [0, 0, 1, 1], [], []>} : vector<64x32xbf16>, vector<32x128xbf16>, vector<64x128xf32> -> vector<64x128xf32>
    %231 = vector.broadcast %226 : vector<1x128xf32> to vector<64x128xf32>
    %232 = arith.addf %230, %231 : vector<64x128xf32>
    %233 = vector.shape_cast %232 : vector<64x128xf32> to vector<8x8x128xf32>
    %c0_74 = arith.constant 0 : index
    %c0_75 = arith.constant 0 : index
    %c0_76 = arith.constant 0 : index
    %234 = vector.load %arg7[%c0_74, %c0_75, %c0_76] : memref<8x8x128xf32, #tpu.memory_space<vmem>>, vector<8x8x128xf32>
    tpu.vector_store %arg7[%c0_74, %c0_75, %c0_76], %233 {strides = array<i32>} : memref<8x8x128xf32, #tpu.memory_space<vmem>>, vector<8x8x128xf32>,
    %c1_77 = arith.constant 1 : index
    %c0_78 = arith.constant 0 : index
    %c0_79 = arith.constant 0 : index
    %235 = vector.load %arg3[%c1_77, %c0_78, %c0_79] : memref<4x32x128xbf16, #tpu.memory_space<vmem>>, vector<1x32x128xbf16>
    %236 = vector.shape_cast %235 : vector<1x32x128xbf16> to vector<32x128xbf16>
    %c0_80 = arith.constant 0 : index
    %c0_81 = arith.constant 0 : index
    %c0_82 = arith.constant 0 : index
    %237 = vector.load %arg7[%c0_80, %c0_81, %c0_82] : memref<8x8x128xf32, #tpu.memory_space<vmem>>, vector<1x8x128xf32>
    %238 = vector.shape_cast %237 : vector<1x8x128xf32> to vector<8x128xf32>
    %239 = arith.truncf %0 : vector<8x32xf32> to vector<8x32xbf16>
    %cst_83 = arith.constant dense<0.000000e+00> : vector<8x128xf32>
    %240 = tpu.matmul %239, %236, %cst_83 {dimension_numbers = #tpu.dot_dimension_numbers<[1], [0], [0], [1], [0, 0, 1, 1], [], []>} : vector<8x32xbf16>, vector<32x128xbf16>, vector<8x128xf32> -> vector<8x128xf32>
    %241 = arith.addf %238, %240 : vector<8x128xf32>
    %cst_84 = arith.constant 5.000000e-01 : f32
    %242 = vector.broadcast %cst_84 : f32 to vector<8x128xf32>
    %243 = arith.mulf %242, %241 : vector<8x128xf32>
    %244 = math.tanh %243 : vector<8x128xf32>
    %cst_85 = arith.constant 1.000000e+00 : f32
    %245 = vector.broadcast %cst_85 : f32 to vector<8x128xf32>
    %246 = arith.addf %244, %245 : vector<8x128xf32>
    %cst_86 = arith.constant 5.000000e-01 : f32
    %247 = vector.broadcast %cst_86 : f32 to vector<8x128xf32>
    %248 = arith.mulf %247, %246 : vector<8x128xf32>
    %249 = math.tanh %241 : vector<8x128xf32>
    %250 = vector.extract_strided_slice %248 {offsets = [0, 0], sizes = [8, 32], strides = [1, 1]} : vector<8x128xf32> to vector<8x32xf32>
    %251 = vector.extract_strided_slice %248 {offsets = [0, 32], sizes = [8, 32], strides = [1, 1]} : vector<8x128xf32> to vector<8x32xf32>
    %252 = vector.extract_strided_slice %249 {offsets = [0, 64], sizes = [8, 32], strides = [1, 1]} : vector<8x128xf32> to vector<8x32xf32>
    %253 = vector.extract_strided_slice %248 {offsets = [0, 96], sizes = [8, 32], strides = [1, 1]} : vector<8x128xf32> to vector<8x32xf32>
    %254 = arith.mulf %251, %0 : vector<8x32xf32>
    %255 = arith.mulf %250, %252 : vector<8x32xf32>
    %256 = arith.addf %254, %255 : vector<8x32xf32>
    %257 = math.tanh %256 : vector<8x32xf32>
    %258 = arith.mulf %253, %257 : vector<8x32xf32>
    %c1_87 = arith.constant 1 : index
    %c0_88 = arith.constant 0 : index
    %c0_89 = arith.constant 0 : index
    %259 = vector.load %arg7[%c1_87, %c0_88, %c0_89] : memref<8x8x128xf32, #tpu.memory_space<vmem>>, vector<1x8x128xf32>
    %260 = vector.shape_cast %259 : vector<1x8x128xf32> to vector<8x128xf32>
    %261 = arith.truncf %258 : vector<8x32xf32> to vector<8x32xbf16>
    %cst_90 = arith.constant dense<0.000000e+00> : vector<8x128xf32>
    %262 = tpu.matmul %261, %236, %cst_90 {dimension_numbers = #tpu.dot_dimension_numbers<[1], [0], [0], [1], [0, 0, 1, 1], [], []>} : vector<8x32xbf16>, vector<32x128xbf16>, vector<8x128xf32> -> vector<8x128xf32>
    %263 = arith.addf %260, %262 : vector<8x128xf32>
    %cst_91 = arith.constant 5.000000e-01 : f32
    %264 = vector.broadcast %cst_91 : f32 to vector<8x128xf32>
    %265 = arith.mulf %264, %263 : vector<8x128xf32>
    %266 = math.tanh %265 : vector<8x128xf32>
    %cst_92 = arith.constant 1.000000e+00 : f32
    %267 = vector.broadcast %cst_92 : f32 to vector<8x128xf32>
    %268 = arith.addf %266, %267 : vector<8x128xf32>
    %cst_93 = arith.constant 5.000000e-01 : f32
    %269 = vector.broadcast %cst_93 : f32 to vector<8x128xf32>
    %270 = arith.mulf %269, %268 : vector<8x128xf32>
    %271 = math.tanh %263 : vector<8x128xf32>
    %272 = vector.extract_strided_slice %270 {offsets = [0, 0], sizes = [8, 32], strides = [1, 1]} : vector<8x128xf32> to vector<8x32xf32>
    %273 = vector.extract_strided_slice %270 {offsets = [0, 32], sizes = [8, 32], strides = [1, 1]} : vector<8x128xf32> to vector<8x32xf32>
    %274 = vector.extract_strided_slice %271 {offsets = [0, 64], sizes = [8, 32], strides = [1, 1]} : vector<8x128xf32> to vector<8x32xf32>
    %275 = vector.extract_strided_slice %270 {offsets = [0, 96], sizes = [8, 32], strides = [1, 1]} : vector<8x128xf32> to vector<8x32xf32>
    %276 = arith.mulf %273, %256 : vector<8x32xf32>
    %277 = arith.mulf %272, %274 : vector<8x32xf32>
    %278 = arith.addf %276, %277 : vector<8x32xf32>
    %279 = math.tanh %278 : vector<8x32xf32>
    %280 = arith.mulf %275, %279 : vector<8x32xf32>
    %c2_94 = arith.constant 2 : index
    %c0_95 = arith.constant 0 : index
    %c0_96 = arith.constant 0 : index
    %281 = vector.load %arg7[%c2_94, %c0_95, %c0_96] : memref<8x8x128xf32, #tpu.memory_space<vmem>>, vector<1x8x128xf32>
    %282 = vector.shape_cast %281 : vector<1x8x128xf32> to vector<8x128xf32>
    %283 = arith.truncf %280 : vector<8x32xf32> to vector<8x32xbf16>
    %cst_97 = arith.constant dense<0.000000e+00> : vector<8x128xf32>
    %284 = tpu.matmul %283, %236, %cst_97 {dimension_numbers = #tpu.dot_dimension_numbers<[1], [0], [0], [1], [0, 0, 1, 1], [], []>} : vector<8x32xbf16>, vector<32x128xbf16>, vector<8x128xf32> -> vector<8x128xf32>
    %285 = arith.addf %282, %284 : vector<8x128xf32>
    %cst_98 = arith.constant 5.000000e-01 : f32
    %286 = vector.broadcast %cst_98 : f32 to vector<8x128xf32>
    %287 = arith.mulf %286, %285 : vector<8x128xf32>
    %288 = math.tanh %287 : vector<8x128xf32>
    %cst_99 = arith.constant 1.000000e+00 : f32
    %289 = vector.broadcast %cst_99 : f32 to vector<8x128xf32>
    %290 = arith.addf %288, %289 : vector<8x128xf32>
    %cst_100 = arith.constant 5.000000e-01 : f32
    %291 = vector.broadcast %cst_100 : f32 to vector<8x128xf32>
    %292 = arith.mulf %291, %290 : vector<8x128xf32>
    %293 = math.tanh %285 : vector<8x128xf32>
    %294 = vector.extract_strided_slice %292 {offsets = [0, 0], sizes = [8, 32], strides = [1, 1]} : vector<8x128xf32> to vector<8x32xf32>
    %295 = vector.extract_strided_slice %292 {offsets = [0, 32], sizes = [8, 32], strides = [1, 1]} : vector<8x128xf32> to vector<8x32xf32>
    %296 = vector.extract_strided_slice %293 {offsets = [0, 64], sizes = [8, 32], strides = [1, 1]} : vector<8x128xf32> to vector<8x32xf32>
    %297 = vector.extract_strided_slice %292 {offsets = [0, 96], sizes = [8, 32], strides = [1, 1]} : vector<8x128xf32> to vector<8x32xf32>
    %298 = arith.mulf %295, %278 : vector<8x32xf32>
    %299 = arith.mulf %294, %296 : vector<8x32xf32>
    %300 = arith.addf %298, %299 : vector<8x32xf32>
    %301 = math.tanh %300 : vector<8x32xf32>
    %302 = arith.mulf %297, %301 : vector<8x32xf32>
    %c3_101 = arith.constant 3 : index
    %c0_102 = arith.constant 0 : index
    %c0_103 = arith.constant 0 : index
    %303 = vector.load %arg7[%c3_101, %c0_102, %c0_103] : memref<8x8x128xf32, #tpu.memory_space<vmem>>, vector<1x8x128xf32>
    %304 = vector.shape_cast %303 : vector<1x8x128xf32> to vector<8x128xf32>
    %305 = arith.truncf %302 : vector<8x32xf32> to vector<8x32xbf16>
    %cst_104 = arith.constant dense<0.000000e+00> : vector<8x128xf32>
    %306 = tpu.matmul %305, %236, %cst_104 {dimension_numbers = #tpu.dot_dimension_numbers<[1], [0], [0], [1], [0, 0, 1, 1], [], []>} : vector<8x32xbf16>, vector<32x128xbf16>, vector<8x128xf32> -> vector<8x128xf32>
    %307 = arith.addf %304, %306 : vector<8x128xf32>
    %cst_105 = arith.constant 5.000000e-01 : f32
    %308 = vector.broadcast %cst_105 : f32 to vector<8x128xf32>
    %309 = arith.mulf %308, %307 : vector<8x128xf32>
    %310 = math.tanh %309 : vector<8x128xf32>
    %cst_106 = arith.constant 1.000000e+00 : f32
    %311 = vector.broadcast %cst_106 : f32 to vector<8x128xf32>
    %312 = arith.addf %310, %311 : vector<8x128xf32>
    %cst_107 = arith.constant 5.000000e-01 : f32
    %313 = vector.broadcast %cst_107 : f32 to vector<8x128xf32>
    %314 = arith.mulf %313, %312 : vector<8x128xf32>
    %315 = math.tanh %307 : vector<8x128xf32>
    %316 = vector.extract_strided_slice %314 {offsets = [0, 0], sizes = [8, 32], strides = [1, 1]} : vector<8x128xf32> to vector<8x32xf32>
    %317 = vector.extract_strided_slice %314 {offsets = [0, 32], sizes = [8, 32], strides = [1, 1]} : vector<8x128xf32> to vector<8x32xf32>
    %318 = vector.extract_strided_slice %315 {offsets = [0, 64], sizes = [8, 32], strides = [1, 1]} : vector<8x128xf32> to vector<8x32xf32>
    %319 = vector.extract_strided_slice %314 {offsets = [0, 96], sizes = [8, 32], strides = [1, 1]} : vector<8x128xf32> to vector<8x32xf32>
    %320 = arith.mulf %317, %300 : vector<8x32xf32>
    %321 = arith.mulf %316, %318 : vector<8x32xf32>
    %322 = arith.addf %320, %321 : vector<8x32xf32>
    %323 = math.tanh %322 : vector<8x32xf32>
    %324 = arith.mulf %319, %323 : vector<8x32xf32>
    %c4_108 = arith.constant 4 : index
    %c0_109 = arith.constant 0 : index
    %c0_110 = arith.constant 0 : index
    %325 = vector.load %arg7[%c4_108, %c0_109, %c0_110] : memref<8x8x128xf32, #tpu.memory_space<vmem>>, vector<1x8x128xf32>
    %326 = vector.shape_cast %325 : vector<1x8x128xf32> to vector<8x128xf32>
    %327 = arith.truncf %324 : vector<8x32xf32> to vector<8x32xbf16>
    %cst_111 = arith.constant dense<0.000000e+00> : vector<8x128xf32>
    %328 = tpu.matmul %327, %236, %cst_111 {dimension_numbers = #tpu.dot_dimension_numbers<[1], [0], [0], [1], [0, 0, 1, 1], [], []>} : vector<8x32xbf16>, vector<32x128xbf16>, vector<8x128xf32> -> vector<8x128xf32>
    %329 = arith.addf %326, %328 : vector<8x128xf32>
    %cst_112 = arith.constant 5.000000e-01 : f32
    %330 = vector.broadcast %cst_112 : f32 to vector<8x128xf32>
    %331 = arith.mulf %330, %329 : vector<8x128xf32>
    %332 = math.tanh %331 : vector<8x128xf32>
    %cst_113 = arith.constant 1.000000e+00 : f32
    %333 = vector.broadcast %cst_113 : f32 to vector<8x128xf32>
    %334 = arith.addf %332, %333 : vector<8x128xf32>
    %cst_114 = arith.constant 5.000000e-01 : f32
    %335 = vector.broadcast %cst_114 : f32 to vector<8x128xf32>
    %336 = arith.mulf %335, %334 : vector<8x128xf32>
    %337 = math.tanh %329 : vector<8x128xf32>
    %338 = vector.extract_strided_slice %336 {offsets = [0, 0], sizes = [8, 32], strides = [1, 1]} : vector<8x128xf32> to vector<8x32xf32>
    %339 = vector.extract_strided_slice %336 {offsets = [0, 32], sizes = [8, 32], strides = [1, 1]} : vector<8x128xf32> to vector<8x32xf32>
    %340 = vector.extract_strided_slice %337 {offsets = [0, 64], sizes = [8, 32], strides = [1, 1]} : vector<8x128xf32> to vector<8x32xf32>
    %341 = vector.extract_strided_slice %336 {offsets = [0, 96], sizes = [8, 32], strides = [1, 1]} : vector<8x128xf32> to vector<8x32xf32>
    %342 = arith.mulf %339, %322 : vector<8x32xf32>
    %343 = arith.mulf %338, %340 : vector<8x32xf32>
    %344 = arith.addf %342, %343 : vector<8x32xf32>
    %345 = math.tanh %344 : vector<8x32xf32>
    %346 = arith.mulf %341, %345 : vector<8x32xf32>
    %c5_115 = arith.constant 5 : index
    %c0_116 = arith.constant 0 : index
    %c0_117 = arith.constant 0 : index
    %347 = vector.load %arg7[%c5_115, %c0_116, %c0_117] : memref<8x8x128xf32, #tpu.memory_space<vmem>>, vector<1x8x128xf32>
    %348 = vector.shape_cast %347 : vector<1x8x128xf32> to vector<8x128xf32>
    %349 = arith.truncf %346 : vector<8x32xf32> to vector<8x32xbf16>
    %cst_118 = arith.constant dense<0.000000e+00> : vector<8x128xf32>
    %350 = tpu.matmul %349, %236, %cst_118 {dimension_numbers = #tpu.dot_dimension_numbers<[1], [0], [0], [1], [0, 0, 1, 1], [], []>} : vector<8x32xbf16>, vector<32x128xbf16>, vector<8x128xf32> -> vector<8x128xf32>
    %351 = arith.addf %348, %350 : vector<8x128xf32>
    %cst_119 = arith.constant 5.000000e-01 : f32
    %352 = vector.broadcast %cst_119 : f32 to vector<8x128xf32>
    %353 = arith.mulf %352, %351 : vector<8x128xf32>
    %354 = math.tanh %353 : vector<8x128xf32>
    %cst_120 = arith.constant 1.000000e+00 : f32
    %355 = vector.broadcast %cst_120 : f32 to vector<8x128xf32>
    %356 = arith.addf %354, %355 : vector<8x128xf32>
    %cst_121 = arith.constant 5.000000e-01 : f32
    %357 = vector.broadcast %cst_121 : f32 to vector<8x128xf32>
    %358 = arith.mulf %357, %356 : vector<8x128xf32>
    %359 = math.tanh %351 : vector<8x128xf32>
    %360 = vector.extract_strided_slice %358 {offsets = [0, 0], sizes = [8, 32], strides = [1, 1]} : vector<8x128xf32> to vector<8x32xf32>
    %361 = vector.extract_strided_slice %358 {offsets = [0, 32], sizes = [8, 32], strides = [1, 1]} : vector<8x128xf32> to vector<8x32xf32>
    %362 = vector.extract_strided_slice %359 {offsets = [0, 64], sizes = [8, 32], strides = [1, 1]} : vector<8x128xf32> to vector<8x32xf32>
    %363 = vector.extract_strided_slice %358 {offsets = [0, 96], sizes = [8, 32], strides = [1, 1]} : vector<8x128xf32> to vector<8x32xf32>
    %364 = arith.mulf %361, %344 : vector<8x32xf32>
    %365 = arith.mulf %360, %362 : vector<8x32xf32>
    %366 = arith.addf %364, %365 : vector<8x32xf32>
    %367 = math.tanh %366 : vector<8x32xf32>
    %368 = arith.mulf %363, %367 : vector<8x32xf32>
    %c6_122 = arith.constant 6 : index
    %c0_123 = arith.constant 0 : index
    %c0_124 = arith.constant 0 : index
    %369 = vector.load %arg7[%c6_122, %c0_123, %c0_124] : memref<8x8x128xf32, #tpu.memory_space<vmem>>, vector<1x8x128xf32>
    %370 = vector.shape_cast %369 : vector<1x8x128xf32> to vector<8x128xf32>
    %371 = arith.truncf %368 : vector<8x32xf32> to vector<8x32xbf16>
    %cst_125 = arith.constant dense<0.000000e+00> : vector<8x128xf32>
    %372 = tpu.matmul %371, %236, %cst_125 {dimension_numbers = #tpu.dot_dimension_numbers<[1], [0], [0], [1], [0, 0, 1, 1], [], []>} : vector<8x32xbf16>, vector<32x128xbf16>, vector<8x128xf32> -> vector<8x128xf32>
    %373 = arith.addf %370, %372 : vector<8x128xf32>
    %cst_126 = arith.constant 5.000000e-01 : f32
    %374 = vector.broadcast %cst_126 : f32 to vector<8x128xf32>
    %375 = arith.mulf %374, %373 : vector<8x128xf32>
    %376 = math.tanh %375 : vector<8x128xf32>
    %cst_127 = arith.constant 1.000000e+00 : f32
    %377 = vector.broadcast %cst_127 : f32 to vector<8x128xf32>
    %378 = arith.addf %376, %377 : vector<8x128xf32>
    %cst_128 = arith.constant 5.000000e-01 : f32
    %379 = vector.broadcast %cst_128 : f32 to vector<8x128xf32>
    %380 = arith.mulf %379, %378 : vector<8x128xf32>
    %381 = math.tanh %373 : vector<8x128xf32>
    %382 = vector.extract_strided_slice %380 {offsets = [0, 0], sizes = [8, 32], strides = [1, 1]} : vector<8x128xf32> to vector<8x32xf32>
    %383 = vector.extract_strided_slice %380 {offsets = [0, 32], sizes = [8, 32], strides = [1, 1]} : vector<8x128xf32> to vector<8x32xf32>
    %384 = vector.extract_strided_slice %381 {offsets = [0, 64], sizes = [8, 32], strides = [1, 1]} : vector<8x128xf32> to vector<8x32xf32>
    %385 = vector.extract_strided_slice %380 {offsets = [0, 96], sizes = [8, 32], strides = [1, 1]} : vector<8x128xf32> to vector<8x32xf32>
    %386 = arith.mulf %383, %366 : vector<8x32xf32>
    %387 = arith.mulf %382, %384 : vector<8x32xf32>
    %388 = arith.addf %386, %387 : vector<8x32xf32>
    %389 = math.tanh %388 : vector<8x32xf32>
    %390 = arith.mulf %385, %389 : vector<8x32xf32>
    %c7_129 = arith.constant 7 : index
    %c0_130 = arith.constant 0 : index
    %c0_131 = arith.constant 0 : index
    %391 = vector.load %arg7[%c7_129, %c0_130, %c0_131] : memref<8x8x128xf32, #tpu.memory_space<vmem>>, vector<1x8x128xf32>
    %392 = vector.shape_cast %391 : vector<1x8x128xf32> to vector<8x128xf32>
    %393 = arith.truncf %390 : vector<8x32xf32> to vector<8x32xbf16>
    %cst_132 = arith.constant dense<0.000000e+00> : vector<8x128xf32>
    %394 = tpu.matmul %393, %236, %cst_132 {dimension_numbers = #tpu.dot_dimension_numbers<[1], [0], [0], [1], [0, 0, 1, 1], [], []>} : vector<8x32xbf16>, vector<32x128xbf16>, vector<8x128xf32> -> vector<8x128xf32>
    %395 = arith.addf %392, %394 : vector<8x128xf32>
    %cst_133 = arith.constant 5.000000e-01 : f32
    %396 = vector.broadcast %cst_133 : f32 to vector<8x128xf32>
    %397 = arith.mulf %396, %395 : vector<8x128xf32>
    %398 = math.tanh %397 : vector<8x128xf32>
    %cst_134 = arith.constant 1.000000e+00 : f32
    %399 = vector.broadcast %cst_134 : f32 to vector<8x128xf32>
    %400 = arith.addf %398, %399 : vector<8x128xf32>
    %cst_135 = arith.constant 5.000000e-01 : f32
    %401 = vector.broadcast %cst_135 : f32 to vector<8x128xf32>
    %402 = arith.mulf %401, %400 : vector<8x128xf32>
    %403 = math.tanh %395 : vector<8x128xf32>
    %404 = vector.extract_strided_slice %402 {offsets = [0, 0], sizes = [8, 32], strides = [1, 1]} : vector<8x128xf32> to vector<8x32xf32>
    %405 = vector.extract_strided_slice %402 {offsets = [0, 32], sizes = [8, 32], strides = [1, 1]} : vector<8x128xf32> to vector<8x32xf32>
    %406 = vector.extract_strided_slice %403 {offsets = [0, 64], sizes = [8, 32], strides = [1, 1]} : vector<8x128xf32> to vector<8x32xf32>
    %407 = vector.extract_strided_slice %402 {offsets = [0, 96], sizes = [8, 32], strides = [1, 1]} : vector<8x128xf32> to vector<8x32xf32>
    %408 = arith.mulf %405, %388 : vector<8x32xf32>
    %409 = arith.mulf %404, %406 : vector<8x32xf32>
    %410 = arith.addf %408, %409 : vector<8x32xf32>
    %411 = math.tanh %410 : vector<8x32xf32>
    %412 = arith.mulf %407, %411 : vector<8x32xf32>
    %c0_136 = arith.constant 0 : index
    %c0_137 = arith.constant 0 : index
    %c0_138 = arith.constant 0 : index
    %413 = vector.load %arg5[%c0_136, %c0_137, %c0_138] : memref<3x128x128xbf16, #tpu.memory_space<vmem>>, vector<1x128x128xbf16>
    %414 = vector.shape_cast %413 : vector<1x128x128xbf16> to vector<128x128xbf16>
    %415 = vector.extract_strided_slice %414 {offsets = [0, 0], sizes = [32, 128], strides = [1, 1]} : vector<128x128xbf16> to vector<32x128xbf16>
    %c1_139 = arith.constant 1 : index
    %c0_140 = arith.constant 0 : index
    %c0_141 = arith.constant 0 : index
    %416 = vector.load %arg5[%c1_139, %c0_140, %c0_141] : memref<3x128x128xbf16, #tpu.memory_space<vmem>>, vector<1x128x128xbf16>
    %417 = vector.shape_cast %416 : vector<1x128x128xbf16> to vector<128x128xbf16>
    %418 = arith.truncf %412 : vector<8x32xf32> to vector<8x32xbf16>
    %cst_142 = arith.constant dense<0.000000e+00> : vector<8x128xf32>
    %419 = tpu.matmul %418, %415, %cst_142 {dimension_numbers = #tpu.dot_dimension_numbers<[1], [0], [0], [1], [0, 0, 1, 1], [], []>} : vector<8x32xbf16>, vector<32x128xbf16>, vector<8x128xf32> -> vector<8x128xf32>
    %c4_143 = arith.constant 4 : index
    %c0_144 = arith.constant 0 : index
    %420 = vector.load %arg4[%c4_143, %c0_144] : memref<7x128xf32, #tpu.memory_space<vmem>>, vector<1x128xf32>
    %421 = vector.broadcast %420 : vector<1x128xf32> to vector<8x128xf32>
    %422 = arith.addf %419, %421 : vector<8x128xf32>
    %423 = arith.truncf %422 : vector<8x128xf32> to vector<8x128xbf16>
    %cst_145 = arith.constant dense<0.000000e+00> : vector<8x128xf32>
    %424 = tpu.matmul %423, %417, %cst_145 {dimension_numbers = #tpu.dot_dimension_numbers<[1], [0], [0], [1], [0, 0, 1, 1], [], []>} : vector<8x128xbf16>, vector<128x128xbf16>, vector<8x128xf32> -> vector<8x128xf32>
    %c5_146 = arith.constant 5 : index
    %c0_147 = arith.constant 0 : index
    %425 = vector.load %arg4[%c5_146, %c0_147] : memref<7x128xf32, #tpu.memory_space<vmem>>, vector<1x128xf32>
    %426 = vector.broadcast %425 : vector<1x128xf32> to vector<8x128xf32>
    %427 = arith.addf %424, %426 : vector<8x128xf32>
    %428 = vector.extract_strided_slice %427 {offsets = [0, 0], sizes = [8, 32], strides = [1, 1]} : vector<8x128xf32> to vector<8x32xf32>
    %c2_148 = arith.constant 2 : index
    %c0_149 = arith.constant 0 : index
    %429 = vector.load %arg4[%c2_148, %c0_149] : memref<7x128xf32, #tpu.memory_space<vmem>>, vector<1x128xf32>
    %430 = vector.shape_cast %429 : vector<1x128xf32> to vector<1x128xf32>
    %431 = vector.broadcast %430 : vector<1x128xf32> to vector<8x128xf32>
    %c2_150 = arith.constant 2 : index
    %c0_151 = arith.constant 0 : index
    %c0_152 = arith.constant 0 : index
    %432 = vector.load %arg3[%c2_150, %c0_151, %c0_152] : memref<4x32x128xbf16, #tpu.memory_space<vmem>>, vector<1x32x128xbf16>
    %433 = vector.shape_cast %432 : vector<1x32x128xbf16> to vector<32x128xbf16>
    %434 = arith.truncf %428 : vector<8x32xf32> to vector<8x32xbf16>
    %cst_153 = arith.constant dense<0.000000e+00> : vector<8x128xf32>
    %435 = tpu.matmul %434, %433, %cst_153 {dimension_numbers = #tpu.dot_dimension_numbers<[1], [0], [0], [1], [0, 0, 1, 1], [], []>} : vector<8x32xbf16>, vector<32x128xbf16>, vector<8x128xf32> -> vector<8x128xf32>
    %436 = arith.addf %431, %435 : vector<8x128xf32>
    %cst_154 = arith.constant 5.000000e-01 : f32
    %437 = vector.broadcast %cst_154 : f32 to vector<8x128xf32>
    %438 = arith.mulf %437, %436 : vector<8x128xf32>
    %439 = math.tanh %438 : vector<8x128xf32>
    %cst_155 = arith.constant 1.000000e+00 : f32
    %440 = vector.broadcast %cst_155 : f32 to vector<8x128xf32>
    %441 = arith.addf %439, %440 : vector<8x128xf32>
    %cst_156 = arith.constant 5.000000e-01 : f32
    %442 = vector.broadcast %cst_156 : f32 to vector<8x128xf32>
    %443 = arith.mulf %442, %441 : vector<8x128xf32>
    %444 = math.tanh %436 : vector<8x128xf32>
    %445 = vector.extract_strided_slice %443 {offsets = [0, 0], sizes = [8, 32], strides = [1, 1]} : vector<8x128xf32> to vector<8x32xf32>
    %446 = vector.extract_strided_slice %443 {offsets = [0, 32], sizes = [8, 32], strides = [1, 1]} : vector<8x128xf32> to vector<8x32xf32>
    %447 = vector.extract_strided_slice %444 {offsets = [0, 64], sizes = [8, 32], strides = [1, 1]} : vector<8x128xf32> to vector<8x32xf32>
    %448 = vector.extract_strided_slice %443 {offsets = [0, 96], sizes = [8, 32], strides = [1, 1]} : vector<8x128xf32> to vector<8x32xf32>
    %449 = arith.mulf %446, %0 : vector<8x32xf32>
    %450 = arith.mulf %445, %447 : vector<8x32xf32>
    %451 = arith.addf %449, %450 : vector<8x32xf32>
    %452 = math.tanh %451 : vector<8x32xf32>
    %453 = arith.mulf %448, %452 : vector<8x32xf32>
    %c0_157 = arith.constant 0 : index
    %c0_158 = arith.constant 0 : index
    %c0_159 = arith.constant 0 : index
    %454 = vector.load %arg8[%c0_157, %c0_158, %c0_159] : memref<8x8x32xf32, #tpu.memory_space<vmem>>, vector<1x8x32xf32>
    %455 = vector.shape_cast %454 : vector<1x8x32xf32> to vector<8x32xf32>
    %456 = vector.shape_cast %453 : vector<8x32xf32> to vector<1x8x32xf32>
    tpu.vector_store %arg8[%c0_157, %c0_158, %c0_159], %456 {strides = array<i32>} : memref<8x8x32xf32, #tpu.memory_space<vmem>>, vector<1x8x32xf32>,
    %457 = arith.truncf %453 : vector<8x32xf32> to vector<8x32xbf16>
    %cst_160 = arith.constant dense<0.000000e+00> : vector<8x128xf32>
    %458 = tpu.matmul %457, %433, %cst_160 {dimension_numbers = #tpu.dot_dimension_numbers<[1], [0], [0], [1], [0, 0, 1, 1], [], []>} : vector<8x32xbf16>, vector<32x128xbf16>, vector<8x128xf32> -> vector<8x128xf32>
    %459 = arith.addf %431, %458 : vector<8x128xf32>
    %cst_161 = arith.constant 5.000000e-01 : f32
    %460 = vector.broadcast %cst_161 : f32 to vector<8x128xf32>
    %461 = arith.mulf %460, %459 : vector<8x128xf32>
    %462 = math.tanh %461 : vector<8x128xf32>
    %cst_162 = arith.constant 1.000000e+00 : f32
    %463 = vector.broadcast %cst_162 : f32 to vector<8x128xf32>
    %464 = arith.addf %462, %463 : vector<8x128xf32>
    %cst_163 = arith.constant 5.000000e-01 : f32
    %465 = vector.broadcast %cst_163 : f32 to vector<8x128xf32>
    %466 = arith.mulf %465, %464 : vector<8x128xf32>
    %467 = math.tanh %459 : vector<8x128xf32>
    %468 = vector.extract_strided_slice %466 {offsets = [0, 0], sizes = [8, 32], strides = [1, 1]} : vector<8x128xf32> to vector<8x32xf32>
    %469 = vector.extract_strided_slice %466 {offsets = [0, 32], sizes = [8, 32], strides = [1, 1]} : vector<8x128xf32> to vector<8x32xf32>
    %470 = vector.extract_strided_slice %467 {offsets = [0, 64], sizes = [8, 32], strides = [1, 1]} : vector<8x128xf32> to vector<8x32xf32>
    %471 = vector.extract_strided_slice %466 {offsets = [0, 96], sizes = [8, 32], strides = [1, 1]} : vector<8x128xf32> to vector<8x32xf32>
    %472 = arith.mulf %469, %451 : vector<8x32xf32>
    %473 = arith.mulf %468, %470 : vector<8x32xf32>
    %474 = arith.addf %472, %473 : vector<8x32xf32>
    %475 = math.tanh %474 : vector<8x32xf32>
    %476 = arith.mulf %471, %475 : vector<8x32xf32>
    %c1_164 = arith.constant 1 : index
    %c0_165 = arith.constant 0 : index
    %c0_166 = arith.constant 0 : index
    %477 = vector.load %arg8[%c1_164, %c0_165, %c0_166] : memref<8x8x32xf32, #tpu.memory_space<vmem>>, vector<1x8x32xf32>
    %478 = vector.shape_cast %477 : vector<1x8x32xf32> to vector<8x32xf32>
    %479 = vector.shape_cast %476 : vector<8x32xf32> to vector<1x8x32xf32>
    tpu.vector_store %arg8[%c1_164, %c0_165, %c0_166], %479 {strides = array<i32>} : memref<8x8x32xf32, #tpu.memory_space<vmem>>, vector<1x8x32xf32>,
    %480 = arith.truncf %476 : vector<8x32xf32> to vector<8x32xbf16>
    %cst_167 = arith.constant dense<0.000000e+00> : vector<8x128xf32>
    %481 = tpu.matmul %480, %433, %cst_167 {dimension_numbers = #tpu.dot_dimension_numbers<[1], [0], [0], [1], [0, 0, 1, 1], [], []>} : vector<8x32xbf16>, vector<32x128xbf16>, vector<8x128xf32> -> vector<8x128xf32>
    %482 = arith.addf %431, %481 : vector<8x128xf32>
    %cst_168 = arith.constant 5.000000e-01 : f32
    %483 = vector.broadcast %cst_168 : f32 to vector<8x128xf32>
    %484 = arith.mulf %483, %482 : vector<8x128xf32>
    %485 = math.tanh %484 : vector<8x128xf32>
    %cst_169 = arith.constant 1.000000e+00 : f32
    %486 = vector.broadcast %cst_169 : f32 to vector<8x128xf32>
    %487 = arith.addf %485, %486 : vector<8x128xf32>
    %cst_170 = arith.constant 5.000000e-01 : f32
    %488 = vector.broadcast %cst_170 : f32 to vector<8x128xf32>
    %489 = arith.mulf %488, %487 : vector<8x128xf32>
    %490 = math.tanh %482 : vector<8x128xf32>
    %491 = vector.extract_strided_slice %489 {offsets = [0, 0], sizes = [8, 32], strides = [1, 1]} : vector<8x128xf32> to vector<8x32xf32>
    %492 = vector.extract_strided_slice %489 {offsets = [0, 32], sizes = [8, 32], strides = [1, 1]} : vector<8x128xf32> to vector<8x32xf32>
    %493 = vector.extract_strided_slice %490 {offsets = [0, 64], sizes = [8, 32], strides = [1, 1]} : vector<8x128xf32> to vector<8x32xf32>
    %494 = vector.extract_strided_slice %489 {offsets = [0, 96], sizes = [8, 32], strides = [1, 1]} : vector<8x128xf32> to vector<8x32xf32>
    %495 = arith.mulf %492, %474 : vector<8x32xf32>
    %496 = arith.mulf %491, %493 : vector<8x32xf32>
    %497 = arith.addf %495, %496 : vector<8x32xf32>
    %498 = math.tanh %497 : vector<8x32xf32>
    %499 = arith.mulf %494, %498 : vector<8x32xf32>
    %c2_171 = arith.constant 2 : index
    %c0_172 = arith.constant 0 : index
    %c0_173 = arith.constant 0 : index
    %500 = vector.load %arg8[%c2_171, %c0_172, %c0_173] : memref<8x8x32xf32, #tpu.memory_space<vmem>>, vector<1x8x32xf32>
    %501 = vector.shape_cast %500 : vector<1x8x32xf32> to vector<8x32xf32>
    %502 = vector.shape_cast %499 : vector<8x32xf32> to vector<1x8x32xf32>
    tpu.vector_store %arg8[%c2_171, %c0_172, %c0_173], %502 {strides = array<i32>} : memref<8x8x32xf32, #tpu.memory_space<vmem>>, vector<1x8x32xf32>,
    %503 = arith.truncf %499 : vector<8x32xf32> to vector<8x32xbf16>
    %cst_174 = arith.constant dense<0.000000e+00> : vector<8x128xf32>
    %504 = tpu.matmul %503, %433, %cst_174 {dimension_numbers = #tpu.dot_dimension_numbers<[1], [0], [0], [1], [0, 0, 1, 1], [], []>} : vector<8x32xbf16>, vector<32x128xbf16>, vector<8x128xf32> -> vector<8x128xf32>
    %505 = arith.addf %431, %504 : vector<8x128xf32>
    %cst_175 = arith.constant 5.000000e-01 : f32
    %506 = vector.broadcast %cst_175 : f32 to vector<8x128xf32>
    %507 = arith.mulf %506, %505 : vector<8x128xf32>
    %508 = math.tanh %507 : vector<8x128xf32>
    %cst_176 = arith.constant 1.000000e+00 : f32
    %509 = vector.broadcast %cst_176 : f32 to vector<8x128xf32>
    %510 = arith.addf %508, %509 : vector<8x128xf32>
    %cst_177 = arith.constant 5.000000e-01 : f32
    %511 = vector.broadcast %cst_177 : f32 to vector<8x128xf32>
    %512 = arith.mulf %511, %510 : vector<8x128xf32>
    %513 = math.tanh %505 : vector<8x128xf32>
    %514 = vector.extract_strided_slice %512 {offsets = [0, 0], sizes = [8, 32], strides = [1, 1]} : vector<8x128xf32> to vector<8x32xf32>
    %515 = vector.extract_strided_slice %512 {offsets = [0, 32], sizes = [8, 32], strides = [1, 1]} : vector<8x128xf32> to vector<8x32xf32>
    %516 = vector.extract_strided_slice %513 {offsets = [0, 64], sizes = [8, 32], strides = [1, 1]} : vector<8x128xf32> to vector<8x32xf32>
    %517 = vector.extract_strided_slice %512 {offsets = [0, 96], sizes = [8, 32], strides = [1, 1]} : vector<8x128xf32> to vector<8x32xf32>
    %518 = arith.mulf %515, %497 : vector<8x32xf32>
    %519 = arith.mulf %514, %516 : vector<8x32xf32>
    %520 = arith.addf %518, %519 : vector<8x32xf32>
    %521 = math.tanh %520 : vector<8x32xf32>
    %522 = arith.mulf %517, %521 : vector<8x32xf32>
    %c3_178 = arith.constant 3 : index
    %c0_179 = arith.constant 0 : index
    %c0_180 = arith.constant 0 : index
    %523 = vector.load %arg8[%c3_178, %c0_179, %c0_180] : memref<8x8x32xf32, #tpu.memory_space<vmem>>, vector<1x8x32xf32>
    %524 = vector.shape_cast %523 : vector<1x8x32xf32> to vector<8x32xf32>
    %525 = vector.shape_cast %522 : vector<8x32xf32> to vector<1x8x32xf32>
    tpu.vector_store %arg8[%c3_178, %c0_179, %c0_180], %525 {strides = array<i32>} : memref<8x8x32xf32, #tpu.memory_space<vmem>>, vector<1x8x32xf32>,
    %526 = arith.truncf %522 : vector<8x32xf32> to vector<8x32xbf16>
    %cst_181 = arith.constant dense<0.000000e+00> : vector<8x128xf32>
    %527 = tpu.matmul %526, %433, %cst_181 {dimension_numbers = #tpu.dot_dimension_numbers<[1], [0], [0], [1], [0, 0, 1, 1], [], []>} : vector<8x32xbf16>, vector<32x128xbf16>, vector<8x128xf32> -> vector<8x128xf32>
    %528 = arith.addf %431, %527 : vector<8x128xf32>
    %cst_182 = arith.constant 5.000000e-01 : f32
    %529 = vector.broadcast %cst_182 : f32 to vector<8x128xf32>
    %530 = arith.mulf %529, %528 : vector<8x128xf32>
    %531 = math.tanh %530 : vector<8x128xf32>
    %cst_183 = arith.constant 1.000000e+00 : f32
    %532 = vector.broadcast %cst_183 : f32 to vector<8x128xf32>
    %533 = arith.addf %531, %532 : vector<8x128xf32>
    %cst_184 = arith.constant 5.000000e-01 : f32
    %534 = vector.broadcast %cst_184 : f32 to vector<8x128xf32>
    %535 = arith.mulf %534, %533 : vector<8x128xf32>
    %536 = math.tanh %528 : vector<8x128xf32>
    %537 = vector.extract_strided_slice %535 {offsets = [0, 0], sizes = [8, 32], strides = [1, 1]} : vector<8x128xf32> to vector<8x32xf32>
    %538 = vector.extract_strided_slice %535 {offsets = [0, 32], sizes = [8, 32], strides = [1, 1]} : vector<8x128xf32> to vector<8x32xf32>
    %539 = vector.extract_strided_slice %536 {offsets = [0, 64], sizes = [8, 32], strides = [1, 1]} : vector<8x128xf32> to vector<8x32xf32>
    %540 = vector.extract_strided_slice %535 {offsets = [0, 96], sizes = [8, 32], strides = [1, 1]} : vector<8x128xf32> to vector<8x32xf32>
    %541 = arith.mulf %538, %520 : vector<8x32xf32>
    %542 = arith.mulf %537, %539 : vector<8x32xf32>
    %543 = arith.addf %541, %542 : vector<8x32xf32>
    %544 = math.tanh %543 : vector<8x32xf32>
    %545 = arith.mulf %540, %544 : vector<8x32xf32>
    %c4_185 = arith.constant 4 : index
    %c0_186 = arith.constant 0 : index
    %c0_187 = arith.constant 0 : index
    %546 = vector.load %arg8[%c4_185, %c0_186, %c0_187] : memref<8x8x32xf32, #tpu.memory_space<vmem>>, vector<1x8x32xf32>
    %547 = vector.shape_cast %546 : vector<1x8x32xf32> to vector<8x32xf32>
    %548 = vector.shape_cast %545 : vector<8x32xf32> to vector<1x8x32xf32>
    tpu.vector_store %arg8[%c4_185, %c0_186, %c0_187], %548 {strides = array<i32>} : memref<8x8x32xf32, #tpu.memory_space<vmem>>, vector<1x8x32xf32>,
    %549 = arith.truncf %545 : vector<8x32xf32> to vector<8x32xbf16>
    %cst_188 = arith.constant dense<0.000000e+00> : vector<8x128xf32>
    %550 = tpu.matmul %549, %433, %cst_188 {dimension_numbers = #tpu.dot_dimension_numbers<[1], [0], [0], [1], [0, 0, 1, 1], [], []>} : vector<8x32xbf16>, vector<32x128xbf16>, vector<8x128xf32> -> vector<8x128xf32>
    %551 = arith.addf %431, %550 : vector<8x128xf32>
    %cst_189 = arith.constant 5.000000e-01 : f32
    %552 = vector.broadcast %cst_189 : f32 to vector<8x128xf32>
    %553 = arith.mulf %552, %551 : vector<8x128xf32>
    %554 = math.tanh %553 : vector<8x128xf32>
    %cst_190 = arith.constant 1.000000e+00 : f32
    %555 = vector.broadcast %cst_190 : f32 to vector<8x128xf32>
    %556 = arith.addf %554, %555 : vector<8x128xf32>
    %cst_191 = arith.constant 5.000000e-01 : f32
    %557 = vector.broadcast %cst_191 : f32 to vector<8x128xf32>
    %558 = arith.mulf %557, %556 : vector<8x128xf32>
    %559 = math.tanh %551 : vector<8x128xf32>
    %560 = vector.extract_strided_slice %558 {offsets = [0, 0], sizes = [8, 32], strides = [1, 1]} : vector<8x128xf32> to vector<8x32xf32>
    %561 = vector.extract_strided_slice %558 {offsets = [0, 32], sizes = [8, 32], strides = [1, 1]} : vector<8x128xf32> to vector<8x32xf32>
    %562 = vector.extract_strided_slice %559 {offsets = [0, 64], sizes = [8, 32], strides = [1, 1]} : vector<8x128xf32> to vector<8x32xf32>
    %563 = vector.extract_strided_slice %558 {offsets = [0, 96], sizes = [8, 32], strides = [1, 1]} : vector<8x128xf32> to vector<8x32xf32>
    %564 = arith.mulf %561, %543 : vector<8x32xf32>
    %565 = arith.mulf %560, %562 : vector<8x32xf32>
    %566 = arith.addf %564, %565 : vector<8x32xf32>
    %567 = math.tanh %566 : vector<8x32xf32>
    %568 = arith.mulf %563, %567 : vector<8x32xf32>
    %c5_192 = arith.constant 5 : index
    %c0_193 = arith.constant 0 : index
    %c0_194 = arith.constant 0 : index
    %569 = vector.load %arg8[%c5_192, %c0_193, %c0_194] : memref<8x8x32xf32, #tpu.memory_space<vmem>>, vector<1x8x32xf32>
    %570 = vector.shape_cast %569 : vector<1x8x32xf32> to vector<8x32xf32>
    %571 = vector.shape_cast %568 : vector<8x32xf32> to vector<1x8x32xf32>
    tpu.vector_store %arg8[%c5_192, %c0_193, %c0_194], %571 {strides = array<i32>} : memref<8x8x32xf32, #tpu.memory_space<vmem>>, vector<1x8x32xf32>,
    %572 = arith.truncf %568 : vector<8x32xf32> to vector<8x32xbf16>
    %cst_195 = arith.constant dense<0.000000e+00> : vector<8x128xf32>
    %573 = tpu.matmul %572, %433, %cst_195 {dimension_numbers = #tpu.dot_dimension_numbers<[1], [0], [0], [1], [0, 0, 1, 1], [], []>} : vector<8x32xbf16>, vector<32x128xbf16>, vector<8x128xf32> -> vector<8x128xf32>
    %574 = arith.addf %431, %573 : vector<8x128xf32>
    %cst_196 = arith.constant 5.000000e-01 : f32
    %575 = vector.broadcast %cst_196 : f32 to vector<8x128xf32>
    %576 = arith.mulf %575, %574 : vector<8x128xf32>
    %577 = math.tanh %576 : vector<8x128xf32>
    %cst_197 = arith.constant 1.000000e+00 : f32
    %578 = vector.broadcast %cst_197 : f32 to vector<8x128xf32>
    %579 = arith.addf %577, %578 : vector<8x128xf32>
    %cst_198 = arith.constant 5.000000e-01 : f32
    %580 = vector.broadcast %cst_198 : f32 to vector<8x128xf32>
    %581 = arith.mulf %580, %579 : vector<8x128xf32>
    %582 = math.tanh %574 : vector<8x128xf32>
    %583 = vector.extract_strided_slice %581 {offsets = [0, 0], sizes = [8, 32], strides = [1, 1]} : vector<8x128xf32> to vector<8x32xf32>
    %584 = vector.extract_strided_slice %581 {offsets = [0, 32], sizes = [8, 32], strides = [1, 1]} : vector<8x128xf32> to vector<8x32xf32>
    %585 = vector.extract_strided_slice %582 {offsets = [0, 64], sizes = [8, 32], strides = [1, 1]} : vector<8x128xf32> to vector<8x32xf32>
    %586 = vector.extract_strided_slice %581 {offsets = [0, 96], sizes = [8, 32], strides = [1, 1]} : vector<8x128xf32> to vector<8x32xf32>
    %587 = arith.mulf %584, %566 : vector<8x32xf32>
    %588 = arith.mulf %583, %585 : vector<8x32xf32>
    %589 = arith.addf %587, %588 : vector<8x32xf32>
    %590 = math.tanh %589 : vector<8x32xf32>
    %591 = arith.mulf %586, %590 : vector<8x32xf32>
    %c6_199 = arith.constant 6 : index
    %c0_200 = arith.constant 0 : index
    %c0_201 = arith.constant 0 : index
    %592 = vector.load %arg8[%c6_199, %c0_200, %c0_201] : memref<8x8x32xf32, #tpu.memory_space<vmem>>, vector<1x8x32xf32>
    %593 = vector.shape_cast %592 : vector<1x8x32xf32> to vector<8x32xf32>
    %594 = vector.shape_cast %591 : vector<8x32xf32> to vector<1x8x32xf32>
    tpu.vector_store %arg8[%c6_199, %c0_200, %c0_201], %594 {strides = array<i32>} : memref<8x8x32xf32, #tpu.memory_space<vmem>>, vector<1x8x32xf32>,
    %595 = arith.truncf %591 : vector<8x32xf32> to vector<8x32xbf16>
    %cst_202 = arith.constant dense<0.000000e+00> : vector<8x128xf32>
    %596 = tpu.matmul %595, %433, %cst_202 {dimension_numbers = #tpu.dot_dimension_numbers<[1], [0], [0], [1], [0, 0, 1, 1], [], []>} : vector<8x32xbf16>, vector<32x128xbf16>, vector<8x128xf32> -> vector<8x128xf32>
    %597 = arith.addf %431, %596 : vector<8x128xf32>
    %cst_203 = arith.constant 5.000000e-01 : f32
    %598 = vector.broadcast %cst_203 : f32 to vector<8x128xf32>
    %599 = arith.mulf %598, %597 : vector<8x128xf32>
    %600 = math.tanh %599 : vector<8x128xf32>
    %cst_204 = arith.constant 1.000000e+00 : f32
    %601 = vector.broadcast %cst_204 : f32 to vector<8x128xf32>
    %602 = arith.addf %600, %601 : vector<8x128xf32>
    %cst_205 = arith.constant 5.000000e-01 : f32
    %603 = vector.broadcast %cst_205 : f32 to vector<8x128xf32>
    %604 = arith.mulf %603, %602 : vector<8x128xf32>
    %605 = math.tanh %597 : vector<8x128xf32>
    %606 = vector.extract_strided_slice %604 {offsets = [0, 0], sizes = [8, 32], strides = [1, 1]} : vector<8x128xf32> to vector<8x32xf32>
    %607 = vector.extract_strided_slice %604 {offsets = [0, 32], sizes = [8, 32], strides = [1, 1]} : vector<8x128xf32> to vector<8x32xf32>
    %608 = vector.extract_strided_slice %605 {offsets = [0, 64], sizes = [8, 32], strides = [1, 1]} : vector<8x128xf32> to vector<8x32xf32>
    %609 = vector.extract_strided_slice %604 {offsets = [0, 96], sizes = [8, 32], strides = [1, 1]} : vector<8x128xf32> to vector<8x32xf32>
    %610 = arith.mulf %607, %589 : vector<8x32xf32>
    %611 = arith.mulf %606, %608 : vector<8x32xf32>
    %612 = arith.addf %610, %611 : vector<8x32xf32>
    %613 = math.tanh %612 : vector<8x32xf32>
    %614 = arith.mulf %609, %613 : vector<8x32xf32>
    %c7_206 = arith.constant 7 : index
    %c0_207 = arith.constant 0 : index
    %c0_208 = arith.constant 0 : index
    %615 = vector.load %arg8[%c7_206, %c0_207, %c0_208] : memref<8x8x32xf32, #tpu.memory_space<vmem>>, vector<1x8x32xf32>
    %616 = vector.shape_cast %615 : vector<1x8x32xf32> to vector<8x32xf32>
    %617 = vector.shape_cast %614 : vector<8x32xf32> to vector<1x8x32xf32>
    tpu.vector_store %arg8[%c7_206, %c0_207, %c0_208], %617 {strides = array<i32>} : memref<8x8x32xf32, #tpu.memory_space<vmem>>, vector<1x8x32xf32>,
    %c1_209 = arith.constant 1 : index
    %c0_210 = arith.constant 0 : index
    %c0_211 = arith.constant 0 : index
    %618 = vector.load %arg2[%c1_209, %c0_210, %c0_211] : memref<2x32x128xbf16, #tpu.memory_space<vmem>>, vector<1x32x128xbf16>
    %619 = vector.shape_cast %618 : vector<1x32x128xbf16> to vector<32x128xbf16>
    %c3_212 = arith.constant 3 : index
    %c0_213 = arith.constant 0 : index
    %620 = vector.load %arg4[%c3_212, %c0_213] : memref<7x128xf32, #tpu.memory_space<vmem>>, vector<1x128xf32>
    %c0_214 = arith.constant 0 : index
    %c0_215 = arith.constant 0 : index
    %c0_216 = arith.constant 0 : index
    %621 = vector.load %arg8[%c0_214, %c0_215, %c0_216] : memref<8x8x32xf32, #tpu.memory_space<vmem>>, vector<8x8x32xf32>
    %622 = vector.shape_cast %621 : vector<8x8x32xf32> to vector<64x32xf32>
    %623 = arith.truncf %622 : vector<64x32xf32> to vector<64x32xbf16>
    %cst_217 = arith.constant dense<0.000000e+00> : vector<64x128xf32>
    %624 = tpu.matmul %623, %619, %cst_217 {dimension_numbers = #tpu.dot_dimension_numbers<[1], [0], [0], [1], [0, 0, 1, 1], [], []>} : vector<64x32xbf16>, vector<32x128xbf16>, vector<64x128xf32> -> vector<64x128xf32>
    %625 = vector.broadcast %620 : vector<1x128xf32> to vector<64x128xf32>
    %626 = arith.addf %624, %625 : vector<64x128xf32>
    %627 = vector.shape_cast %626 : vector<64x128xf32> to vector<8x8x128xf32>
    %c0_218 = arith.constant 0 : index
    %c0_219 = arith.constant 0 : index
    %c0_220 = arith.constant 0 : index
    %628 = vector.load %arg7[%c0_218, %c0_219, %c0_220] : memref<8x8x128xf32, #tpu.memory_space<vmem>>, vector<8x8x128xf32>
    tpu.vector_store %arg7[%c0_218, %c0_219, %c0_220], %627 {strides = array<i32>} : memref<8x8x128xf32, #tpu.memory_space<vmem>>, vector<8x8x128xf32>,
    %c3_221 = arith.constant 3 : index
    %c0_222 = arith.constant 0 : index
    %c0_223 = arith.constant 0 : index
    %629 = vector.load %arg3[%c3_221, %c0_222, %c0_223] : memref<4x32x128xbf16, #tpu.memory_space<vmem>>, vector<1x32x128xbf16>
    %630 = vector.shape_cast %629 : vector<1x32x128xbf16> to vector<32x128xbf16>
    %c0_224 = arith.constant 0 : index
    %c0_225 = arith.constant 0 : index
    %c0_226 = arith.constant 0 : index
    %631 = vector.load %arg7[%c0_224, %c0_225, %c0_226] : memref<8x8x128xf32, #tpu.memory_space<vmem>>, vector<1x8x128xf32>
    %632 = vector.shape_cast %631 : vector<1x8x128xf32> to vector<8x128xf32>
    %633 = arith.truncf %428 : vector<8x32xf32> to vector<8x32xbf16>
    %cst_227 = arith.constant dense<0.000000e+00> : vector<8x128xf32>
    %634 = tpu.matmul %633, %630, %cst_227 {dimension_numbers = #tpu.dot_dimension_numbers<[1], [0], [0], [1], [0, 0, 1, 1], [], []>} : vector<8x32xbf16>, vector<32x128xbf16>, vector<8x128xf32> -> vector<8x128xf32>
    %635 = arith.addf %632, %634 : vector<8x128xf32>
    %cst_228 = arith.constant 5.000000e-01 : f32
    %636 = vector.broadcast %cst_228 : f32 to vector<8x128xf32>
    %637 = arith.mulf %636, %635 : vector<8x128xf32>
    %638 = math.tanh %637 : vector<8x128xf32>
    %cst_229 = arith.constant 1.000000e+00 : f32
    %639 = vector.broadcast %cst_229 : f32 to vector<8x128xf32>
    %640 = arith.addf %638, %639 : vector<8x128xf32>
    %cst_230 = arith.constant 5.000000e-01 : f32
    %641 = vector.broadcast %cst_230 : f32 to vector<8x128xf32>
    %642 = arith.mulf %641, %640 : vector<8x128xf32>
    %643 = math.tanh %635 : vector<8x128xf32>
    %644 = vector.extract_strided_slice %642 {offsets = [0, 0], sizes = [8, 32], strides = [1, 1]} : vector<8x128xf32> to vector<8x32xf32>
    %645 = vector.extract_strided_slice %642 {offsets = [0, 32], sizes = [8, 32], strides = [1, 1]} : vector<8x128xf32> to vector<8x32xf32>
    %646 = vector.extract_strided_slice %643 {offsets = [0, 64], sizes = [8, 32], strides = [1, 1]} : vector<8x128xf32> to vector<8x32xf32>
    %647 = vector.extract_strided_slice %642 {offsets = [0, 96], sizes = [8, 32], strides = [1, 1]} : vector<8x128xf32> to vector<8x32xf32>
    %648 = arith.mulf %645, %0 : vector<8x32xf32>
    %649 = arith.mulf %644, %646 : vector<8x32xf32>
    %650 = arith.addf %648, %649 : vector<8x32xf32>
    %651 = math.tanh %650 : vector<8x32xf32>
    %652 = arith.mulf %647, %651 : vector<8x32xf32>
    %c0_231 = arith.constant 0 : index
    %c0_232 = arith.constant 0 : index
    %c0_233 = arith.constant 0 : index
    %653 = vector.load %arg8[%c0_231, %c0_232, %c0_233] : memref<8x8x32xf32, #tpu.memory_space<vmem>>, vector<1x8x32xf32>
    %654 = vector.shape_cast %653 : vector<1x8x32xf32> to vector<8x32xf32>
    %655 = vector.shape_cast %652 : vector<8x32xf32> to vector<1x8x32xf32>
    tpu.vector_store %arg8[%c0_231, %c0_232, %c0_233], %655 {strides = array<i32>} : memref<8x8x32xf32, #tpu.memory_space<vmem>>, vector<1x8x32xf32>,
    %c1_234 = arith.constant 1 : index
    %c0_235 = arith.constant 0 : index
    %c0_236 = arith.constant 0 : index
    %656 = vector.load %arg7[%c1_234, %c0_235, %c0_236] : memref<8x8x128xf32, #tpu.memory_space<vmem>>, vector<1x8x128xf32>
    %657 = vector.shape_cast %656 : vector<1x8x128xf32> to vector<8x128xf32>
    %658 = arith.truncf %652 : vector<8x32xf32> to vector<8x32xbf16>
    %cst_237 = arith.constant dense<0.000000e+00> : vector<8x128xf32>
    %659 = tpu.matmul %658, %630, %cst_237 {dimension_numbers = #tpu.dot_dimension_numbers<[1], [0], [0], [1], [0, 0, 1, 1], [], []>} : vector<8x32xbf16>, vector<32x128xbf16>, vector<8x128xf32> -> vector<8x128xf32>
    %660 = arith.addf %657, %659 : vector<8x128xf32>
    %cst_238 = arith.constant 5.000000e-01 : f32
    %661 = vector.broadcast %cst_238 : f32 to vector<8x128xf32>
    %662 = arith.mulf %661, %660 : vector<8x128xf32>
    %663 = math.tanh %662 : vector<8x128xf32>
    %cst_239 = arith.constant 1.000000e+00 : f32
    %664 = vector.broadcast %cst_239 : f32 to vector<8x128xf32>
    %665 = arith.addf %663, %664 : vector<8x128xf32>
    %cst_240 = arith.constant 5.000000e-01 : f32
    %666 = vector.broadcast %cst_240 : f32 to vector<8x128xf32>
    %667 = arith.mulf %666, %665 : vector<8x128xf32>
    %668 = math.tanh %660 : vector<8x128xf32>
    %669 = vector.extract_strided_slice %667 {offsets = [0, 0], sizes = [8, 32], strides = [1, 1]} : vector<8x128xf32> to vector<8x32xf32>
    %670 = vector.extract_strided_slice %667 {offsets = [0, 32], sizes = [8, 32], strides = [1, 1]} : vector<8x128xf32> to vector<8x32xf32>
    %671 = vector.extract_strided_slice %668 {offsets = [0, 64], sizes = [8, 32], strides = [1, 1]} : vector<8x128xf32> to vector<8x32xf32>
    %672 = vector.extract_strided_slice %667 {offsets = [0, 96], sizes = [8, 32], strides = [1, 1]} : vector<8x128xf32> to vector<8x32xf32>
    %673 = arith.mulf %670, %650 : vector<8x32xf32>
    %674 = arith.mulf %669, %671 : vector<8x32xf32>
    %675 = arith.addf %673, %674 : vector<8x32xf32>
    %676 = math.tanh %675 : vector<8x32xf32>
    %677 = arith.mulf %672, %676 : vector<8x32xf32>
    %c1_241 = arith.constant 1 : index
    %c0_242 = arith.constant 0 : index
    %c0_243 = arith.constant 0 : index
    %678 = vector.load %arg8[%c1_241, %c0_242, %c0_243] : memref<8x8x32xf32, #tpu.memory_space<vmem>>, vector<1x8x32xf32>
    %679 = vector.shape_cast %678 : vector<1x8x32xf32> to vector<8x32xf32>
    %680 = vector.shape_cast %677 : vector<8x32xf32> to vector<1x8x32xf32>
    tpu.vector_store %arg8[%c1_241, %c0_242, %c0_243], %680 {strides = array<i32>} : memref<8x8x32xf32, #tpu.memory_space<vmem>>, vector<1x8x32xf32>,
    %c2_244 = arith.constant 2 : index
    %c0_245 = arith.constant 0 : index
    %c0_246 = arith.constant 0 : index
    %681 = vector.load %arg7[%c2_244, %c0_245, %c0_246] : memref<8x8x128xf32, #tpu.memory_space<vmem>>, vector<1x8x128xf32>
    %682 = vector.shape_cast %681 : vector<1x8x128xf32> to vector<8x128xf32>
    %683 = arith.truncf %677 : vector<8x32xf32> to vector<8x32xbf16>
    %cst_247 = arith.constant dense<0.000000e+00> : vector<8x128xf32>
    %684 = tpu.matmul %683, %630, %cst_247 {dimension_numbers = #tpu.dot_dimension_numbers<[1], [0], [0], [1], [0, 0, 1, 1], [], []>} : vector<8x32xbf16>, vector<32x128xbf16>, vector<8x128xf32> -> vector<8x128xf32>
    %685 = arith.addf %682, %684 : vector<8x128xf32>
    %cst_248 = arith.constant 5.000000e-01 : f32
    %686 = vector.broadcast %cst_248 : f32 to vector<8x128xf32>
    %687 = arith.mulf %686, %685 : vector<8x128xf32>
    %688 = math.tanh %687 : vector<8x128xf32>
    %cst_249 = arith.constant 1.000000e+00 : f32
    %689 = vector.broadcast %cst_249 : f32 to vector<8x128xf32>
    %690 = arith.addf %688, %689 : vector<8x128xf32>
    %cst_250 = arith.constant 5.000000e-01 : f32
    %691 = vector.broadcast %cst_250 : f32 to vector<8x128xf32>
    %692 = arith.mulf %691, %690 : vector<8x128xf32>
    %693 = math.tanh %685 : vector<8x128xf32>
    %694 = vector.extract_strided_slice %692 {offsets = [0, 0], sizes = [8, 32], strides = [1, 1]} : vector<8x128xf32> to vector<8x32xf32>
    %695 = vector.extract_strided_slice %692 {offsets = [0, 32], sizes = [8, 32], strides = [1, 1]} : vector<8x128xf32> to vector<8x32xf32>
    %696 = vector.extract_strided_slice %693 {offsets = [0, 64], sizes = [8, 32], strides = [1, 1]} : vector<8x128xf32> to vector<8x32xf32>
    %697 = vector.extract_strided_slice %692 {offsets = [0, 96], sizes = [8, 32], strides = [1, 1]} : vector<8x128xf32> to vector<8x32xf32>
    %698 = arith.mulf %695, %675 : vector<8x32xf32>
    %699 = arith.mulf %694, %696 : vector<8x32xf32>
    %700 = arith.addf %698, %699 : vector<8x32xf32>
    %701 = math.tanh %700 : vector<8x32xf32>
    %702 = arith.mulf %697, %701 : vector<8x32xf32>
    %c2_251 = arith.constant 2 : index
    %c0_252 = arith.constant 0 : index
    %c0_253 = arith.constant 0 : index
    %703 = vector.load %arg8[%c2_251, %c0_252, %c0_253] : memref<8x8x32xf32, #tpu.memory_space<vmem>>, vector<1x8x32xf32>
    %704 = vector.shape_cast %703 : vector<1x8x32xf32> to vector<8x32xf32>
    %705 = vector.shape_cast %702 : vector<8x32xf32> to vector<1x8x32xf32>
    tpu.vector_store %arg8[%c2_251, %c0_252, %c0_253], %705 {strides = array<i32>} : memref<8x8x32xf32, #tpu.memory_space<vmem>>, vector<1x8x32xf32>,
    %c3_254 = arith.constant 3 : index
    %c0_255 = arith.constant 0 : index
    %c0_256 = arith.constant 0 : index
    %706 = vector.load %arg7[%c3_254, %c0_255, %c0_256] : memref<8x8x128xf32, #tpu.memory_space<vmem>>, vector<1x8x128xf32>
    %707 = vector.shape_cast %706 : vector<1x8x128xf32> to vector<8x128xf32>
    %708 = arith.truncf %702 : vector<8x32xf32> to vector<8x32xbf16>
    %cst_257 = arith.constant dense<0.000000e+00> : vector<8x128xf32>
    %709 = tpu.matmul %708, %630, %cst_257 {dimension_numbers = #tpu.dot_dimension_numbers<[1], [0], [0], [1], [0, 0, 1, 1], [], []>} : vector<8x32xbf16>, vector<32x128xbf16>, vector<8x128xf32> -> vector<8x128xf32>
    %710 = arith.addf %707, %709 : vector<8x128xf32>
    %cst_258 = arith.constant 5.000000e-01 : f32
    %711 = vector.broadcast %cst_258 : f32 to vector<8x128xf32>
    %712 = arith.mulf %711, %710 : vector<8x128xf32>
    %713 = math.tanh %712 : vector<8x128xf32>
    %cst_259 = arith.constant 1.000000e+00 : f32
    %714 = vector.broadcast %cst_259 : f32 to vector<8x128xf32>
    %715 = arith.addf %713, %714 : vector<8x128xf32>
    %cst_260 = arith.constant 5.000000e-01 : f32
    %716 = vector.broadcast %cst_260 : f32 to vector<8x128xf32>
    %717 = arith.mulf %716, %715 : vector<8x128xf32>
    %718 = math.tanh %710 : vector<8x128xf32>
    %719 = vector.extract_strided_slice %717 {offsets = [0, 0], sizes = [8, 32], strides = [1, 1]} : vector<8x128xf32> to vector<8x32xf32>
    %720 = vector.extract_strided_slice %717 {offsets = [0, 32], sizes = [8, 32], strides = [1, 1]} : vector<8x128xf32> to vector<8x32xf32>
    %721 = vector.extract_strided_slice %718 {offsets = [0, 64], sizes = [8, 32], strides = [1, 1]} : vector<8x128xf32> to vector<8x32xf32>
    %722 = vector.extract_strided_slice %717 {offsets = [0, 96], sizes = [8, 32], strides = [1, 1]} : vector<8x128xf32> to vector<8x32xf32>
    %723 = arith.mulf %720, %700 : vector<8x32xf32>
    %724 = arith.mulf %719, %721 : vector<8x32xf32>
    %725 = arith.addf %723, %724 : vector<8x32xf32>
    %726 = math.tanh %725 : vector<8x32xf32>
    %727 = arith.mulf %722, %726 : vector<8x32xf32>
    %c3_261 = arith.constant 3 : index
    %c0_262 = arith.constant 0 : index
    %c0_263 = arith.constant 0 : index
    %728 = vector.load %arg8[%c3_261, %c0_262, %c0_263] : memref<8x8x32xf32, #tpu.memory_space<vmem>>, vector<1x8x32xf32>
    %729 = vector.shape_cast %728 : vector<1x8x32xf32> to vector<8x32xf32>
    %730 = vector.shape_cast %727 : vector<8x32xf32> to vector<1x8x32xf32>
    tpu.vector_store %arg8[%c3_261, %c0_262, %c0_263], %730 {strides = array<i32>} : memref<8x8x32xf32, #tpu.memory_space<vmem>>, vector<1x8x32xf32>,
    %c4_264 = arith.constant 4 : index
    %c0_265 = arith.constant 0 : index
    %c0_266 = arith.constant 0 : index
    %731 = vector.load %arg7[%c4_264, %c0_265, %c0_266] : memref<8x8x128xf32, #tpu.memory_space<vmem>>, vector<1x8x128xf32>
    %732 = vector.shape_cast %731 : vector<1x8x128xf32> to vector<8x128xf32>
    %733 = arith.truncf %727 : vector<8x32xf32> to vector<8x32xbf16>
    %cst_267 = arith.constant dense<0.000000e+00> : vector<8x128xf32>
    %734 = tpu.matmul %733, %630, %cst_267 {dimension_numbers = #tpu.dot_dimension_numbers<[1], [0], [0], [1], [0, 0, 1, 1], [], []>} : vector<8x32xbf16>, vector<32x128xbf16>, vector<8x128xf32> -> vector<8x128xf32>
    %735 = arith.addf %732, %734 : vector<8x128xf32>
    %cst_268 = arith.constant 5.000000e-01 : f32
    %736 = vector.broadcast %cst_268 : f32 to vector<8x128xf32>
    %737 = arith.mulf %736, %735 : vector<8x128xf32>
    %738 = math.tanh %737 : vector<8x128xf32>
    %cst_269 = arith.constant 1.000000e+00 : f32
    %739 = vector.broadcast %cst_269 : f32 to vector<8x128xf32>
    %740 = arith.addf %738, %739 : vector<8x128xf32>
    %cst_270 = arith.constant 5.000000e-01 : f32
    %741 = vector.broadcast %cst_270 : f32 to vector<8x128xf32>
    %742 = arith.mulf %741, %740 : vector<8x128xf32>
    %743 = math.tanh %735 : vector<8x128xf32>
    %744 = vector.extract_strided_slice %742 {offsets = [0, 0], sizes = [8, 32], strides = [1, 1]} : vector<8x128xf32> to vector<8x32xf32>
    %745 = vector.extract_strided_slice %742 {offsets = [0, 32], sizes = [8, 32], strides = [1, 1]} : vector<8x128xf32> to vector<8x32xf32>
    %746 = vector.extract_strided_slice %743 {offsets = [0, 64], sizes = [8, 32], strides = [1, 1]} : vector<8x128xf32> to vector<8x32xf32>
    %747 = vector.extract_strided_slice %742 {offsets = [0, 96], sizes = [8, 32], strides = [1, 1]} : vector<8x128xf32> to vector<8x32xf32>
    %748 = arith.mulf %745, %725 : vector<8x32xf32>
    %749 = arith.mulf %744, %746 : vector<8x32xf32>
    %750 = arith.addf %748, %749 : vector<8x32xf32>
    %751 = math.tanh %750 : vector<8x32xf32>
    %752 = arith.mulf %747, %751 : vector<8x32xf32>
    %c4_271 = arith.constant 4 : index
    %c0_272 = arith.constant 0 : index
    %c0_273 = arith.constant 0 : index
    %753 = vector.load %arg8[%c4_271, %c0_272, %c0_273] : memref<8x8x32xf32, #tpu.memory_space<vmem>>, vector<1x8x32xf32>
    %754 = vector.shape_cast %753 : vector<1x8x32xf32> to vector<8x32xf32>
    %755 = vector.shape_cast %752 : vector<8x32xf32> to vector<1x8x32xf32>
    tpu.vector_store %arg8[%c4_271, %c0_272, %c0_273], %755 {strides = array<i32>} : memref<8x8x32xf32, #tpu.memory_space<vmem>>, vector<1x8x32xf32>,
    %c5_274 = arith.constant 5 : index
    %c0_275 = arith.constant 0 : index
    %c0_276 = arith.constant 0 : index
    %756 = vector.load %arg7[%c5_274, %c0_275, %c0_276] : memref<8x8x128xf32, #tpu.memory_space<vmem>>, vector<1x8x128xf32>
    %757 = vector.shape_cast %756 : vector<1x8x128xf32> to vector<8x128xf32>
    %758 = arith.truncf %752 : vector<8x32xf32> to vector<8x32xbf16>
    %cst_277 = arith.constant dense<0.000000e+00> : vector<8x128xf32>
    %759 = tpu.matmul %758, %630, %cst_277 {dimension_numbers = #tpu.dot_dimension_numbers<[1], [0], [0], [1], [0, 0, 1, 1], [], []>} : vector<8x32xbf16>, vector<32x128xbf16>, vector<8x128xf32> -> vector<8x128xf32>
    %760 = arith.addf %757, %759 : vector<8x128xf32>
    %cst_278 = arith.constant 5.000000e-01 : f32
    %761 = vector.broadcast %cst_278 : f32 to vector<8x128xf32>
    %762 = arith.mulf %761, %760 : vector<8x128xf32>
    %763 = math.tanh %762 : vector<8x128xf32>
    %cst_279 = arith.constant 1.000000e+00 : f32
    %764 = vector.broadcast %cst_279 : f32 to vector<8x128xf32>
    %765 = arith.addf %763, %764 : vector<8x128xf32>
    %cst_280 = arith.constant 5.000000e-01 : f32
    %766 = vector.broadcast %cst_280 : f32 to vector<8x128xf32>
    %767 = arith.mulf %766, %765 : vector<8x128xf32>
    %768 = math.tanh %760 : vector<8x128xf32>
    %769 = vector.extract_strided_slice %767 {offsets = [0, 0], sizes = [8, 32], strides = [1, 1]} : vector<8x128xf32> to vector<8x32xf32>
    %770 = vector.extract_strided_slice %767 {offsets = [0, 32], sizes = [8, 32], strides = [1, 1]} : vector<8x128xf32> to vector<8x32xf32>
    %771 = vector.extract_strided_slice %768 {offsets = [0, 64], sizes = [8, 32], strides = [1, 1]} : vector<8x128xf32> to vector<8x32xf32>
    %772 = vector.extract_strided_slice %767 {offsets = [0, 96], sizes = [8, 32], strides = [1, 1]} : vector<8x128xf32> to vector<8x32xf32>
    %773 = arith.mulf %770, %750 : vector<8x32xf32>
    %774 = arith.mulf %769, %771 : vector<8x32xf32>
    %775 = arith.addf %773, %774 : vector<8x32xf32>
    %776 = math.tanh %775 : vector<8x32xf32>
    %777 = arith.mulf %772, %776 : vector<8x32xf32>
    %c5_281 = arith.constant 5 : index
    %c0_282 = arith.constant 0 : index
    %c0_283 = arith.constant 0 : index
    %778 = vector.load %arg8[%c5_281, %c0_282, %c0_283] : memref<8x8x32xf32, #tpu.memory_space<vmem>>, vector<1x8x32xf32>
    %779 = vector.shape_cast %778 : vector<1x8x32xf32> to vector<8x32xf32>
    %780 = vector.shape_cast %777 : vector<8x32xf32> to vector<1x8x32xf32>
    tpu.vector_store %arg8[%c5_281, %c0_282, %c0_283], %780 {strides = array<i32>} : memref<8x8x32xf32, #tpu.memory_space<vmem>>, vector<1x8x32xf32>,
    %c6_284 = arith.constant 6 : index
    %c0_285 = arith.constant 0 : index
    %c0_286 = arith.constant 0 : index
    %781 = vector.load %arg7[%c6_284, %c0_285, %c0_286] : memref<8x8x128xf32, #tpu.memory_space<vmem>>, vector<1x8x128xf32>
    %782 = vector.shape_cast %781 : vector<1x8x128xf32> to vector<8x128xf32>
    %783 = arith.truncf %777 : vector<8x32xf32> to vector<8x32xbf16>
    %cst_287 = arith.constant dense<0.000000e+00> : vector<8x128xf32>
    %784 = tpu.matmul %783, %630, %cst_287 {dimension_numbers = #tpu.dot_dimension_numbers<[1], [0], [0], [1], [0, 0, 1, 1], [], []>} : vector<8x32xbf16>, vector<32x128xbf16>, vector<8x128xf32> -> vector<8x128xf32>
    %785 = arith.addf %782, %784 : vector<8x128xf32>
    %cst_288 = arith.constant 5.000000e-01 : f32
    %786 = vector.broadcast %cst_288 : f32 to vector<8x128xf32>
    %787 = arith.mulf %786, %785 : vector<8x128xf32>
    %788 = math.tanh %787 : vector<8x128xf32>
    %cst_289 = arith.constant 1.000000e+00 : f32
    %789 = vector.broadcast %cst_289 : f32 to vector<8x128xf32>
    %790 = arith.addf %788, %789 : vector<8x128xf32>
    %cst_290 = arith.constant 5.000000e-01 : f32
    %791 = vector.broadcast %cst_290 : f32 to vector<8x128xf32>
    %792 = arith.mulf %791, %790 : vector<8x128xf32>
    %793 = math.tanh %785 : vector<8x128xf32>
    %794 = vector.extract_strided_slice %792 {offsets = [0, 0], sizes = [8, 32], strides = [1, 1]} : vector<8x128xf32> to vector<8x32xf32>
    %795 = vector.extract_strided_slice %792 {offsets = [0, 32], sizes = [8, 32], strides = [1, 1]} : vector<8x128xf32> to vector<8x32xf32>
    %796 = vector.extract_strided_slice %793 {offsets = [0, 64], sizes = [8, 32], strides = [1, 1]} : vector<8x128xf32> to vector<8x32xf32>
    %797 = vector.extract_strided_slice %792 {offsets = [0, 96], sizes = [8, 32], strides = [1, 1]} : vector<8x128xf32> to vector<8x32xf32>
    %798 = arith.mulf %795, %775 : vector<8x32xf32>
    %799 = arith.mulf %794, %796 : vector<8x32xf32>
    %800 = arith.addf %798, %799 : vector<8x32xf32>
    %801 = math.tanh %800 : vector<8x32xf32>
    %802 = arith.mulf %797, %801 : vector<8x32xf32>
    %c6_291 = arith.constant 6 : index
    %c0_292 = arith.constant 0 : index
    %c0_293 = arith.constant 0 : index
    %803 = vector.load %arg8[%c6_291, %c0_292, %c0_293] : memref<8x8x32xf32, #tpu.memory_space<vmem>>, vector<1x8x32xf32>
    %804 = vector.shape_cast %803 : vector<1x8x32xf32> to vector<8x32xf32>
    %805 = vector.shape_cast %802 : vector<8x32xf32> to vector<1x8x32xf32>
    tpu.vector_store %arg8[%c6_291, %c0_292, %c0_293], %805 {strides = array<i32>} : memref<8x8x32xf32, #tpu.memory_space<vmem>>, vector<1x8x32xf32>,
    %c7_294 = arith.constant 7 : index
    %c0_295 = arith.constant 0 : index
    %c0_296 = arith.constant 0 : index
    %806 = vector.load %arg7[%c7_294, %c0_295, %c0_296] : memref<8x8x128xf32, #tpu.memory_space<vmem>>, vector<1x8x128xf32>
    %807 = vector.shape_cast %806 : vector<1x8x128xf32> to vector<8x128xf32>
    %808 = arith.truncf %802 : vector<8x32xf32> to vector<8x32xbf16>
    %cst_297 = arith.constant dense<0.000000e+00> : vector<8x128xf32>
    %809 = tpu.matmul %808, %630, %cst_297 {dimension_numbers = #tpu.dot_dimension_numbers<[1], [0], [0], [1], [0, 0, 1, 1], [], []>} : vector<8x32xbf16>, vector<32x128xbf16>, vector<8x128xf32> -> vector<8x128xf32>
    %810 = arith.addf %807, %809 : vector<8x128xf32>
    %cst_298 = arith.constant 5.000000e-01 : f32
    %811 = vector.broadcast %cst_298 : f32 to vector<8x128xf32>
    %812 = arith.mulf %811, %810 : vector<8x128xf32>
    %813 = math.tanh %812 : vector<8x128xf32>
    %cst_299 = arith.constant 1.000000e+00 : f32
    %814 = vector.broadcast %cst_299 : f32 to vector<8x128xf32>
    %815 = arith.addf %813, %814 : vector<8x128xf32>
    %cst_300 = arith.constant 5.000000e-01 : f32
    %816 = vector.broadcast %cst_300 : f32 to vector<8x128xf32>
    %817 = arith.mulf %816, %815 : vector<8x128xf32>
    %818 = math.tanh %810 : vector<8x128xf32>
    %819 = vector.extract_strided_slice %817 {offsets = [0, 0], sizes = [8, 32], strides = [1, 1]} : vector<8x128xf32> to vector<8x32xf32>
    %820 = vector.extract_strided_slice %817 {offsets = [0, 32], sizes = [8, 32], strides = [1, 1]} : vector<8x128xf32> to vector<8x32xf32>
    %821 = vector.extract_strided_slice %818 {offsets = [0, 64], sizes = [8, 32], strides = [1, 1]} : vector<8x128xf32> to vector<8x32xf32>
    %822 = vector.extract_strided_slice %817 {offsets = [0, 96], sizes = [8, 32], strides = [1, 1]} : vector<8x128xf32> to vector<8x32xf32>
    %823 = arith.mulf %820, %800 : vector<8x32xf32>
    %824 = arith.mulf %819, %821 : vector<8x32xf32>
    %825 = arith.addf %823, %824 : vector<8x32xf32>
    %826 = math.tanh %825 : vector<8x32xf32>
    %827 = arith.mulf %822, %826 : vector<8x32xf32>
    %c7_301 = arith.constant 7 : index
    %c0_302 = arith.constant 0 : index
    %c0_303 = arith.constant 0 : index
    %828 = vector.load %arg8[%c7_301, %c0_302, %c0_303] : memref<8x8x32xf32, #tpu.memory_space<vmem>>, vector<1x8x32xf32>
    %829 = vector.shape_cast %828 : vector<1x8x32xf32> to vector<8x32xf32>
    %830 = vector.shape_cast %827 : vector<8x32xf32> to vector<1x8x32xf32>
    tpu.vector_store %arg8[%c7_301, %c0_302, %c0_303], %830 {strides = array<i32>} : memref<8x8x32xf32, #tpu.memory_space<vmem>>, vector<1x8x32xf32>,
    %c2_304 = arith.constant 2 : index
    %c0_305 = arith.constant 0 : index
    %c0_306 = arith.constant 0 : index
    %831 = vector.load %arg5[%c2_304, %c0_305, %c0_306] : memref<3x128x128xbf16, #tpu.memory_space<vmem>>, vector<1x128x128xbf16>
    %832 = vector.shape_cast %831 : vector<1x128x128xbf16> to vector<128x128xbf16>
    %833 = vector.extract_strided_slice %832 {offsets = [0, 0], sizes = [32, 128], strides = [1, 1]} : vector<128x128xbf16> to vector<32x128xbf16>
    %c6_307 = arith.constant 6 : index
    %c0_308 = arith.constant 0 : index
    %834 = vector.load %arg4[%c6_307, %c0_308] : memref<7x128xf32, #tpu.memory_space<vmem>>, vector<1x128xf32>
    %c0_309 = arith.constant 0 : index
    %c0_310 = arith.constant 0 : index
    %c0_311 = arith.constant 0 : index
    %835 = vector.load %arg8[%c0_309, %c0_310, %c0_311] : memref<8x8x32xf32, #tpu.memory_space<vmem>>, vector<8x8x32xf32>
    %836 = vector.shape_cast %835 : vector<8x8x32xf32> to vector<64x32xf32>
    %837 = arith.truncf %836 : vector<64x32xf32> to vector<64x32xbf16>
    %cst_312 = arith.constant dense<0.000000e+00> : vector<64x128xf32>
    %838 = tpu.matmul %837, %833, %cst_312 {dimension_numbers = #tpu.dot_dimension_numbers<[1], [0], [0], [1], [0, 0, 1, 1], [], []>} : vector<64x32xbf16>, vector<32x128xbf16>, vector<64x128xf32> -> vector<64x128xf32>
    %839 = vector.broadcast %834 : vector<1x128xf32> to vector<64x128xf32>
    %840 = arith.addf %838, %839 : vector<64x128xf32>
    %841 = vector.extract_strided_slice %840 {offsets = [0, 0], sizes = [8, 128], strides = [1, 1]} : vector<64x128xf32> to vector<8x128xf32>
    %c0_313 = arith.constant 0 : index
    %c0_314 = arith.constant 0 : index
    %842 = vector.load %arg6[%c0_313, %c0_314] : memref<8x1024xf32, #tpu.memory_space<vmem>>, vector<8x128xf32>
    tpu.vector_store %arg6[%c0_313, %c0_314], %841 {strides = array<i32>} : memref<8x1024xf32, #tpu.memory_space<vmem>>, vector<8x128xf32>,
    %843 = vector.extract_strided_slice %840 {offsets = [8, 0], sizes = [8, 128], strides = [1, 1]} : vector<64x128xf32> to vector<8x128xf32>
    %c0_315 = arith.constant 0 : index
    %c128 = arith.constant 128 : index
    %844 = vector.load %arg6[%c0_315, %c128] : memref<8x1024xf32, #tpu.memory_space<vmem>>, vector<8x128xf32>
    tpu.vector_store %arg6[%c0_315, %c128], %843 {strides = array<i32>} : memref<8x1024xf32, #tpu.memory_space<vmem>>, vector<8x128xf32>,
    %845 = vector.extract_strided_slice %840 {offsets = [16, 0], sizes = [8, 128], strides = [1, 1]} : vector<64x128xf32> to vector<8x128xf32>
    %c0_316 = arith.constant 0 : index
    %c256 = arith.constant 256 : index
    %846 = vector.load %arg6[%c0_316, %c256] : memref<8x1024xf32, #tpu.memory_space<vmem>>, vector<8x128xf32>
    tpu.vector_store %arg6[%c0_316, %c256], %845 {strides = array<i32>} : memref<8x1024xf32, #tpu.memory_space<vmem>>, vector<8x128xf32>,
    %847 = vector.extract_strided_slice %840 {offsets = [24, 0], sizes = [8, 128], strides = [1, 1]} : vector<64x128xf32> to vector<8x128xf32>
    %c0_317 = arith.constant 0 : index
    %c384 = arith.constant 384 : index
    %848 = vector.load %arg6[%c0_317, %c384] : memref<8x1024xf32, #tpu.memory_space<vmem>>, vector<8x128xf32>
    tpu.vector_store %arg6[%c0_317, %c384], %847 {strides = array<i32>} : memref<8x1024xf32, #tpu.memory_space<vmem>>, vector<8x128xf32>,
    %849 = vector.extract_strided_slice %840 {offsets = [32, 0], sizes = [8, 128], strides = [1, 1]} : vector<64x128xf32> to vector<8x128xf32>
    %c0_318 = arith.constant 0 : index
    %c512 = arith.constant 512 : index
    %850 = vector.load %arg6[%c0_318, %c512] : memref<8x1024xf32, #tpu.memory_space<vmem>>, vector<8x128xf32>
    tpu.vector_store %arg6[%c0_318, %c512], %849 {strides = array<i32>} : memref<8x1024xf32, #tpu.memory_space<vmem>>, vector<8x128xf32>,
    %851 = vector.extract_strided_slice %840 {offsets = [40, 0], sizes = [8, 128], strides = [1, 1]} : vector<64x128xf32> to vector<8x128xf32>
    %c0_319 = arith.constant 0 : index
    %c640 = arith.constant 640 : index
    %852 = vector.load %arg6[%c0_319, %c640] : memref<8x1024xf32, #tpu.memory_space<vmem>>, vector<8x128xf32>
    tpu.vector_store %arg6[%c0_319, %c640], %851 {strides = array<i32>} : memref<8x1024xf32, #tpu.memory_space<vmem>>, vector<8x128xf32>,
    %853 = vector.extract_strided_slice %840 {offsets = [48, 0], sizes = [8, 128], strides = [1, 1]} : vector<64x128xf32> to vector<8x128xf32>
    %c0_320 = arith.constant 0 : index
    %c768 = arith.constant 768 : index
    %854 = vector.load %arg6[%c0_320, %c768] : memref<8x1024xf32, #tpu.memory_space<vmem>>, vector<8x128xf32>
    tpu.vector_store %arg6[%c0_320, %c768], %853 {strides = array<i32>} : memref<8x1024xf32, #tpu.memory_space<vmem>>, vector<8x128xf32>,
    %855 = vector.extract_strided_slice %840 {offsets = [56, 0], sizes = [8, 128], strides = [1, 1]} : vector<64x128xf32> to vector<8x128xf32>
    %c0_321 = arith.constant 0 : index
    %c896 = arith.constant 896 : index
    %856 = vector.load %arg6[%c0_321, %c896] : memref<8x1024xf32, #tpu.memory_space<vmem>>, vector<8x128xf32>
    tpu.vector_store %arg6[%c0_321, %c896], %855 {strides = array<i32>} : memref<8x1024xf32, #tpu.memory_space<vmem>>, vector<8x128xf32>,
    return
  }
}

</mosaic_0001>

<bundles_post_ra>
// kernel: lstm_autoencoder_forward.1
= control target key start
LH: loop header
LB: loop body
LE: loop exit
PB: predicated region body
PF: predicated region fallthrough
CT: control target
= control target key end

     0   :  { %11 = vsyncpa [#allocation5], 0  ;;  %s5081_s0 = inlined_call_operand.vmem [shape: f32[8,64], index: 0, kind: input, shape index: {}]   ;;  %s5082_s1 = inlined_call_operand.vmem [shape: bf16[8,128], index: 1, kind: input, shape index: {}]   ;;  %s5083_s2 = inlined_call_operand.vmem [shape: bf16[2,32,128], index: 2, kind: input, shape index: {}]   ;;  %s5084_s3 = inlined_call_operand.hbm [shape: bf16[4,32,128], index: 3, kind: input, shape index: {}]   ;;  %s5085_s4 = inlined_call_operand.vmem [shape: f32[7,128], index: 4, kind: input, shape index: {}]   ;;  %s5086_s5 = inlined_call_operand.hbm [shape: bf16[3,128,128], index: 5, kind: input, shape index: {}]   ;;  %s5087_s6 = inlined_call_operand.vmem [shape: f32[8,1024], index: 6, kind: output, shape index: {}]  }
   0x1   :  { %12 = vsyncpa [#allocation7], 0  ;;  %s4278_s21 = smov [#allocation4]  }
   0x2   :  { %s24_s22 = sshll.u32 %s4278_s21, 4  ;;  %s25_s22 = int_to_ptr.vmem [resolvable:$true] %s24_s22 }
   0x3   :  { %s4242_s23 = scalar_lea.vmem %s25_s22, 1024  ;;  %p4247_p1 = scmp.lt.s32.totalorder %s25_s22, %s25_s22 }
   0x4   :  { %p4243_p0 = scmp.ne.s32.totalorder %s25_s22, %s4242_s23  ;;  %p4248_p2 = scmp.lt.s32.totalorder %s4242_s23, %s4242_s23 }
   0x6   :  { %p4249_p3 = por %p4248_p2, %p4247_p1 }
   0x8   :  { %p4250_p4 = pnand %p4249_p3, %p4243_p0 }
   0xa   :  { %4253 = shalt.err (!%p4250_p4)
}
   0xb   :  { %s4279_s24 = smov 64   ;;  %s4280_s25 = smov 4  }
   0xc   :  { %30 = dma.hbm_to_vmem [thread:$0]  %s5084_s3, 1024, %s25_s22, [#allocation5], %s4279_s24, %s4279_s24, %s4280_s25  }
   0xd   :  { %s4281_s28 = smov [#allocation6]  }
   0xe   :  { %s38_s29 = sshll.u32 %s4281_s28, 4  ;;  %s39_s29 = int_to_ptr.vmem [resolvable:$true] %s38_s29 }
   0xf   :  { %s4262_s30 = scalar_lea.vmem %s39_s29, 3072  ;;  %p4267_p6 = scmp.lt.s32.totalorder %s39_s29, %s39_s29 }
  0x10   :  { %p4263_p5 = scmp.ne.s32.totalorder %s39_s29, %s4262_s30  ;;  %p4268_p7 = scmp.lt.s32.totalorder %s4262_s30, %s4262_s30 }
  0x12   :  { %p4269_p8 = por %p4268_p7, %p4267_p6 }
  0x14   :  { %p4270_p9 = pnand %p4269_p8, %p4263_p5 }
  0x16   :  { %4273 = shalt.err (!%p4270_p9)
}
  0x17   :  { %44 = dma.hbm_to_vmem [thread:$0]  %s5086_s5, 3072, %s39_s29, [#allocation7], %s4279_s24, %s4279_s24, %s4280_s25  }
  0x18   :  { %4274 = dma.done.wait [#allocation5], 1024  }
  0x19   :  { %4275 = vsyncadd [#allocation5], 4294966272 }
  0x1a   :  { %4276 = dma.done.wait [#allocation7], 3072  }
  0x1b   :  { %4277 = vsyncadd [#allocation7], 4294964224  ;;  %v4282_v0 = vmov 0.0   ;;  %vm4283_vm0 = vmmov 0   ;;  %vm68_vm1 = vcmask 1043456   ;;  %v52_v2 = vld [vmem:[%s5081_s0] sm:$0xff] }
  0x1c   :  { %3635 = vmatprep.subr.bf16.mxu0 %v4282_v0  ;;  %3637 = vmatprep.mubr.msk.bf16.mxu0 %vm4283_vm0, %v4282_v0  ;;  %v53_v1 = vld [vmem:[%s5082_s1] sm:$0xf]  ;;  %v4352_v4 = vpack.c.bf16 %v52_v2, %v52_v2  ;;  %v4354_v5 = vld [vmem:[#allocation4 + $0x8] sm:$0xff]   ;;  %vm64_vm2 = vcmask 64512   ;;  %v4284_v7 = vmov 0   ;;  %s4285_s11 = smov 32  }
  0x1d   :  { %3655 = vmatprep.subr.bf16.mxu1 %v4282_v0  ;;  %3659 = vmatprep.mubr.msk.bf16.mxu1 %vm4283_vm0, %v4282_v0  ;;  %v4350_v3 = vsel %vm68_vm1, %v53_v1, 0  ;;  %v4358_v6 = vld [vmem:[#allocation4] sm:$0xff]   ;;  %s4286_s12 = smov 120   ;;  %vm124_vm3 = vcmask 261120   ;;  %s4287_s13 = smov 112  }
  0x1e   :  { %3636 = vmatpush3.bf16.msra.mxu0 %v4350_v3  ;;  %3656 = vmatpush3.bf16.msra.mxu1 %v4354_v5  ;;  %v4380_v10 = vld [vmem:[%s5085_s4] ss:$0 sm:$0xff]  ;;  %s4288_s14 = smov 104   ;;  %s4289_s15 = smov 96  }
  0x1f   :  { %3641 = vmatprep.subr.bf16.mxu0 %v4282_v0  ;;  %3657 = vmatprep.subr.bf16.mxu1 %v4282_v0  ;;  %s4290_s16 = smov 88   ;;  %s4291_s17 = smov 80  }
  0x20   :  { %s4292_s18 = smov 72  }
  0x21   :  { %3638 = vmatmul.mubr.msk.bf16.vlgmr.msra.gmra.mxu0 %vm64_vm2, %v4352_v4 }
  0x22   :  { %3642 = vmatpush3.bf16.msra.mxu0 %v4354_v5  ;;  %3645 = vmatprep.mubr.msk.bf16.mxu0 %vm4283_vm0, %v4282_v0 }
  0x23   :  { %3643 = vmatprep.subr.bf16.mxu0 %v4282_v0  ;;  %3658 = vmatpush3.bf16.msra.mxu1 %v4358_v6 }
  0x24   :  { %3669 = vmatprep.subr.bf16.mxu1 %v4282_v0 }
  0x26   :  { %3644 = vmatpush3.bf16.msra.mxu0 %v4358_v6 }
  0x27   :  { %3649 = vmatprep.subr.bf16.mxu0 %v4282_v0 }
  0x29   :  { %3646 = vmatmul.mubr.bf16.vlgmr.msra.gmra.mxu0 %v4284_v7 }
  0x2a   :  { %3650 = vmatpush3.bf16.msra.mxu0 %v4350_v3  ;;  %3651 = vmatprep.mubr.msk.bf16.mxu0 %vm4283_vm0, %v4282_v0 }
  0x2b   :  { %3663 = vmatprep.subr.bf16.mxu0 %v4282_v0 }
  0xe1   :  { %v106_v8 = vpop.f32.mrf.mxu0 }
  0xe2   :  { %v107_v13 = vadd.f32 %v4380_v10, %v106_v8 }
  0xe3   :  { %v3639_v9 = vpop.f32.mrf.mxu0 }
  0xe5   :  { %v109_v11 = vpop.f32.mrf.mxu0 }
  0xe7   :  { %v3640_v12 = vpop.f32.mrf.mxu0 }
  0xe9   :  { %v162_v14 = vpop.f32.mrf.mxu0 }
  0xea   :  { %v168_v15 = vadd.f32 %v162_v14, %v107_v13 }
  0xeb   :  { %v3647_v16 = vpop.f32.mrf.mxu0 }
  0xec   :  { %4042 = vtanh.f32 %v168_v15  ;;  %v169_v20 = vmul.f32 0.5, %v168_v15 }
  0xed   :  { %v165_v17 = vpop.f32.mrf.mxu0 }
  0xee   :  { %4044 = vtanh.f32 %v169_v20 }
  0xef   :  { %v3648_v18 = vpop.f32.mrf.mxu0 }
  0xf9   :  { %v4043_v19 = vpop.eup %4042 }
  0xfa   :  { %176 = vrot.lane.b32.xlu0 %v4043_v19, %s4279_s24 }
  0xfb   :  { %v4045_v21 = vpop.eup %4044 }
  0xfc   :  { %v171_v22 = vadd.f32 1.0, %v4045_v21 }
  0xfe   :  { %v172_v23 = vmul.f32 0.5, %v171_v22 }
 0x100   :  { %v174_v26 = vmul.f32 0.0, %v172_v23 }
 0x16c   :  { %v177_v24 = vpop.permute.xlu0 %176 }
 0x16d   :  { %v179_v25 = vmul.f32 %v177_v24, %v172_v23 }
 0x16f   :  { %181 = vrot.lane.b32.xlu0 %v179_v25, %s4285_s11 }
 0x1e1   :  { %v182_v27 = vpop.permute.xlu0 %181 }
 0x1e2   :  { %v184_v28 = vadd.f32 %v182_v27, %v174_v26 }
 0x1e4   :  { %4046 = vtanh.f32 %v184_v28 }
 0x1f1   :  { %v4047_v29 = vpop.eup %4046 }
 0x1f2   :  { %187 = vrot.lane.b32.xlu1 %v4047_v29, %s4279_s24 }
 0x1f6   :  { %197 = vrot.lane.b32.xlu1 %v4352_v4, %s4286_s12 }
 0x264   :  { %v188_v30 = vpop.permute.xlu1 %187 }
 0x265   :  { %v4387_v31 = vmul.f32 %v188_v30, %v172_v23 }
 0x267   :  { %v242_v32 = vpack.c.bf16 %v4387_v31, %v4387_v31 }
 0x268   :  { %v198_v33 = vpop.permute.xlu1 %197 }
 0x269   :  { %244 = vrot.lane.b32.xlu0 %v242_v32, %s4285_s11  ;;  %3652 = vmatmul.mubr.msk.bf16.vlgmr.msra.gmra.mxu0 %vm64_vm2, %v198_v33 }
 0x26a   :  { %3664 = vmatpush3.bf16.msra.mxu0 %v4350_v3  ;;  %3665 = vmatprep.mubr.msk.bf16.mxu0 %vm4283_vm0, %v4282_v0 }
 0x26b   :  { %3677 = vmatprep.subr.bf16.mxu0 %v4282_v0 }
 0x2db   :  { %v245_v34 = vpop.permute.xlu0 %244 }
 0x2dc   :  { %3660 = vmatmul.mubr.msk.bf16.vlgmr.msra.gmra.mxu1 %vm124_vm3, %v245_v34 }
 0x2dd   :  { %3670 = vmatpush3.bf16.msra.mxu1 %v4354_v5  ;;  %3673 = vmatprep.mubr.msk.bf16.mxu1 %vm4283_vm0, %v4282_v0 }
 0x2de   :  { %3671 = vmatprep.subr.bf16.mxu1 %v4282_v0 }
 0x2e1   :  { %3672 = vmatpush3.bf16.msra.mxu1 %v4358_v6 }
 0x2e2   :  { %3683 = vmatprep.subr.bf16.mxu1 %v4282_v0 }
 0x329   :  { %v236_v35 = vpop.f32.mrf.mxu0 }
 0x32a   :  { %v237_v39 = vadd.f32 %v4380_v10, %v236_v35 }
 0x32b   :  { %v3653_v36 = vpop.f32.mrf.mxu0 }
 0x32d   :  { %v239_v37 = vpop.f32.mrf.mxu0 }
 0x32f   :  { %v3654_v38 = vpop.f32.mrf.mxu0 }
 0x39c   :  { %v283_v40 = vpop.f32.mrf.mxu1 }
 0x39d   :  { %v289_v41 = vadd.f32 %v283_v40, %v237_v39 }
 0x39e   :  { %v3661_v42 = vpop.f32.mrf.mxu1 }
 0x39f   :  { %4048 = vtanh.f32 %v289_v41  ;;  %v290_v46 = vmul.f32 0.5, %v289_v41 }
 0x3a0   :  { %v286_v43 = vpop.f32.mrf.mxu1 }
 0x3a1   :  { %4050 = vtanh.f32 %v290_v46 }
 0x3a2   :  { %v3662_v44 = vpop.f32.mrf.mxu1 }
 0x3ac   :  { %v4049_v45 = vpop.eup %4048 }
 0x3ad   :  { %297 = vrot.lane.b32.xlu1 %v4049_v45, %s4279_s24 }
 0x3ae   :  { %v4051_v47 = vpop.eup %4050 }
 0x3af   :  { %v292_v48 = vadd.f32 1.0, %v4051_v47 }
 0x3b1   :  { %v293_v49 = vmul.f32 0.5, %v292_v48 }
 0x3b3   :  { %v295_v52 = vmul.f32 %v293_v49, %v184_v28 }
 0x41f   :  { %v298_v50 = vpop.permute.xlu1 %297 }
 0x420   :  { %v300_v51 = vmul.f32 %v298_v50, %v293_v49 }
 0x422   :  { %302 = vrot.lane.b32.xlu0 %v300_v51, %s4285_s11 }
 0x426   :  { %318 = vrot.lane.b32.xlu0 %v4352_v4, %s4287_s13 }
 0x494   :  { %v303_v53 = vpop.permute.xlu0 %302 }
 0x495   :  { %v305_v54 = vadd.f32 %v303_v53, %v295_v52 }
 0x497   :  { %4052 = vtanh.f32 %v305_v54 }
 0x498   :  { %v319_v55 = vpop.permute.xlu0 %318 }
 0x499   :  { %3666 = vmatmul.mubr.msk.bf16.vlgmr.msra.gmra.mxu0 %vm64_vm2, %v319_v55 }
 0x49a   :  { %3678 = vmatpush3.bf16.msra.mxu0 %v4350_v3  ;;  %3679 = vmatprep.mubr.msk.bf16.mxu0 %vm4283_vm0, %v4282_v0 }
 0x49b   :  { %3691 = vmatprep.subr.bf16.mxu0 %v4282_v0 }
 0x4a4   :  { %v4053_v56 = vpop.eup %4052 }
 0x4a5   :  { %308 = vrot.lane.b32.xlu1 %v4053_v56, %s4279_s24 }
 0x517   :  { %v309_v57 = vpop.permute.xlu1 %308 }
 0x518   :  { %v4414_v58 = vmul.f32 %v309_v57, %v293_v49 }
 0x51a   :  { %v363_v59 = vpack.c.bf16 %v4414_v58, %v4414_v58 }
 0x51c   :  { %365 = vrot.lane.b32.xlu1 %v363_v59, %s4285_s11 }
 0x559   :  { %v357_v60 = vpop.f32.mrf.mxu0 }
 0x55a   :  { %v358_v2 = vadd.f32 %v4380_v10, %v357_v60 }
 0x55b   :  { %v3667_v61 = vpop.f32.mrf.mxu0 }
 0x55d   :  { %v360_v62 = vpop.f32.mrf.mxu0 }
 0x55f   :  { %v3668_v63 = vpop.f32.mrf.mxu0 }
 0x58e   :  { %v366_v1 = vpop.permute.xlu1 %365 }
 0x58f   :  { %3674 = vmatmul.mubr.msk.bf16.vlgmr.msra.gmra.mxu1 %vm124_vm3, %v366_v1 }
 0x590   :  { %3684 = vmatpush3.bf16.msra.mxu1 %v4354_v5  ;;  %3687 = vmatprep.mubr.msk.bf16.mxu1 %vm4283_vm0, %v4282_v0 }
 0x591   :  { %3685 = vmatprep.subr.bf16.mxu1 %v4282_v0 }
 0x594   :  { %3686 = vmatpush3.bf16.msra.mxu1 %v4358_v6 }
 0x595   :  { %3697 = vmatprep.subr.bf16.mxu1 %v4282_v0 }
 0x64f   :  { %v404_v8 = vpop.f32.mrf.mxu1 }
 0x650   :  { %v410_v9 = vadd.f32 %v404_v8, %v358_v2 }
 0x651   :  { %v3675_v11 = vpop.f32.mrf.mxu1 }
 0x652   :  { %4054 = vtanh.f32 %v410_v9  ;;  %v411_v15 = vmul.f32 0.5, %v410_v9 }
 0x653   :  { %v407_v12 = vpop.f32.mrf.mxu1 }
 0x654   :  { %4056 = vtanh.f32 %v411_v15 }
 0x655   :  { %v3676_v13 = vpop.f32.mrf.mxu1 }
 0x65f   :  { %v4055_v14 = vpop.eup %4054 }
 0x660   :  { %418 = vrot.lane.b32.xlu0 %v4055_v14, %s4279_s24 }
 0x661   :  { %v4057_v16 = vpop.eup %4056 }
 0x662   :  { %v413_v17 = vadd.f32 1.0, %v4057_v16 }
 0x664   :  { %v414_v18 = vmul.f32 0.5, %v413_v17 }
 0x666   :  { %v416_v21 = vmul.f32 %v414_v18, %v305_v54 }
 0x6d2   :  { %v419_v19 = vpop.permute.xlu0 %418 }
 0x6d3   :  { %v421_v20 = vmul.f32 %v419_v19, %v414_v18 }
 0x6d5   :  { %423 = vrot.lane.b32.xlu1 %v421_v20, %s4285_s11 }
 0x6d9   :  { %439 = vrot.lane.b32.xlu1 %v4352_v4, %s4288_s14 }
 0x747   :  { %v424_v22 = vpop.permute.xlu1 %423 }
 0x748   :  { %v426_v23 = vadd.f32 %v424_v22, %v416_v21 }
 0x74a   :  { %4058 = vtanh.f32 %v426_v23 }
 0x74b   :  { %v440_v24 = vpop.permute.xlu1 %439 }
 0x74c   :  { %3680 = vmatmul.mubr.msk.bf16.vlgmr.msra.gmra.mxu0 %vm64_vm2, %v440_v24 }
 0x74d   :  { %3692 = vmatpush3.bf16.msra.mxu0 %v4350_v3  ;;  %3693 = vmatprep.mubr.msk.bf16.mxu0 %vm4283_vm0, %v4282_v0 }
 0x74e   :  { %3705 = vmatprep.subr.bf16.mxu0 %v4282_v0 }
 0x757   :  { %v4059_v25 = vpop.eup %4058 }
 0x758   :  { %429 = vrot.lane.b32.xlu0 %v4059_v25, %s4279_s24 }
 0x7ca   :  { %v430_v26 = vpop.permute.xlu0 %429 }
 0x7cb   :  { %v4436_v27 = vmul.f32 %v430_v26, %v414_v18 }
 0x7cd   :  { %v484_v28 = vpack.c.bf16 %v4436_v27, %v4436_v27 }
 0x7cf   :  { %486 = vrot.lane.b32.xlu0 %v484_v28, %s4285_s11 }
 0x80c   :  { %v478_v29 = vpop.f32.mrf.mxu0 }
 0x80d   :  { %v479_v35 = vadd.f32 %v4380_v10, %v478_v29 }
 0x80e   :  { %v3681_v30 = vpop.f32.mrf.mxu0 }
 0x810   :  { %v481_v32 = vpop.f32.mrf.mxu0 }
 0x812   :  { %v3682_v33 = vpop.f32.mrf.mxu0 }
 0x841   :  { %v487_v34 = vpop.permute.xlu0 %486 }
 0x842   :  { %3688 = vmatmul.mubr.msk.bf16.vlgmr.msra.gmra.mxu1 %vm124_vm3, %v487_v34 }
 0x843   :  { %3698 = vmatpush3.bf16.msra.mxu1 %v4354_v5  ;;  %3701 = vmatprep.mubr.msk.bf16.mxu1 %vm4283_vm0, %v4282_v0 }
 0x844   :  { %3699 = vmatprep.subr.bf16.mxu1 %v4282_v0 }
 0x847   :  { %3700 = vmatpush3.bf16.msra.mxu1 %v4358_v6 }
 0x848   :  { %3711 = vmatprep.subr.bf16.mxu1 %v4282_v0 }
 0x902   :  { %v525_v36 = vpop.f32.mrf.mxu1 }
 0x903   :  { %v531_v37 = vadd.f32 %v525_v36, %v479_v35 }
 0x904   :  { %v3689_v38 = vpop.f32.mrf.mxu1 }
 0x905   :  { %4060 = vtanh.f32 %v531_v37  ;;  %v532_v42 = vmul.f32 0.5, %v531_v37 }
 0x906   :  { %v528_v39 = vpop.f32.mrf.mxu1 }
 0x907   :  { %4062 = vtanh.f32 %v532_v42 }
 0x908   :  { %v3690_v40 = vpop.f32.mrf.mxu1 }
 0x912   :  { %v4061_v41 = vpop.eup %4060 }
 0x913   :  { %539 = vrot.lane.b32.xlu1 %v4061_v41, %s4279_s24 }
 0x914   :  { %v4063_v43 = vpop.eup %4062 }
 0x915   :  { %v534_v44 = vadd.f32 1.0, %v4063_v43 }
 0x917   :  { %v535_v45 = vmul.f32 0.5, %v534_v44 }
 0x919   :  { %v537_v48 = vmul.f32 %v535_v45, %v426_v23 }
 0x985   :  { %v540_v46 = vpop.permute.xlu1 %539 }
 0x986   :  { %v542_v47 = vmul.f32 %v540_v46, %v535_v45 }
 0x988   :  { %544 = vrot.lane.b32.xlu0 %v542_v47, %s4285_s11 }
 0x98c   :  { %560 = vrot.lane.b32.xlu0 %v4352_v4, %s4289_s15 }
 0x9fa   :  { %v545_v49 = vpop.permute.xlu0 %544 }
 0x9fb   :  { %v547_v50 = vadd.f32 %v545_v49, %v537_v48 }
 0x9fd   :  { %4064 = vtanh.f32 %v547_v50 }
 0x9fe   :  { %v561_v51 = vpop.permute.xlu0 %560 }
 0x9ff   :  { %3694 = vmatmul.mubr.msk.bf16.vlgmr.msra.gmra.mxu0 %vm64_vm2, %v561_v51 }
 0xa00   :  { %3706 = vmatpush3.bf16.msra.mxu0 %v4350_v3  ;;  %3707 = vmatprep.mubr.msk.bf16.mxu0 %vm4283_vm0, %v4282_v0 }
 0xa01   :  { %3719 = vmatprep.subr.bf16.mxu0 %v4282_v0 }
 0xa0a   :  { %v4065_v52 = vpop.eup %4064 }
 0xa0b   :  { %550 = vrot.lane.b32.xlu1 %v4065_v52, %s4279_s24 }
 0xa7d   :  { %v551_v53 = vpop.permute.xlu1 %550 }
 0xa7e   :  { %v4458_v54 = vmul.f32 %v551_v53, %v535_v45 }
 0xa80   :  { %v605_v55 = vpack.c.bf16 %v4458_v54, %v4458_v54 }
 0xa82   :  { %607 = vrot.lane.b32.xlu1 %v605_v55, %s4285_s11 }
 0xabf   :  { %v599_v56 = vpop.f32.mrf.mxu0 }
 0xac0   :  { %v600_v62 = vadd.f32 %v4380_v10, %v599_v56 }
 0xac1   :  { %v3695_v57 = vpop.f32.mrf.mxu0 }
 0xac3   :  { %v602_v59 = vpop.f32.mrf.mxu0 }
 0xac5   :  { %v3696_v60 = vpop.f32.mrf.mxu0 }
 0xaf4   :  { %v608_v61 = vpop.permute.xlu1 %607 }
 0xaf5   :  { %3702 = vmatmul.mubr.msk.bf16.vlgmr.msra.gmra.mxu1 %vm124_vm3, %v608_v61 }
 0xaf6   :  { %3712 = vmatpush3.bf16.msra.mxu1 %v4354_v5  ;;  %3715 = vmatprep.mubr.msk.bf16.mxu1 %vm4283_vm0, %v4282_v0 }
 0xaf7   :  { %3713 = vmatprep.subr.bf16.mxu1 %v4282_v0 }
 0xafa   :  { %3714 = vmatpush3.bf16.msra.mxu1 %v4358_v6 }
 0xafb   :  { %3725 = vmatprep.subr.bf16.mxu1 %v4282_v0 }
 0xbb5   :  { %v646_v63 = vpop.f32.mrf.mxu1 }
 0xbb6   :  { %v652_v1 = vadd.f32 %v646_v63, %v600_v62 }
 0xbb7   :  { %v3703_v2 = vpop.f32.mrf.mxu1 }
 0xbb8   :  { %4066 = vtanh.f32 %v652_v1  ;;  %v653_v12 = vmul.f32 0.5, %v652_v1 }
 0xbb9   :  { %v649_v8 = vpop.f32.mrf.mxu1 }
 0xbba   :  { %4068 = vtanh.f32 %v653_v12 }
 0xbbb   :  { %v3704_v9 = vpop.f32.mrf.mxu1 }
 0xbc5   :  { %v4067_v11 = vpop.eup %4066 }
 0xbc6   :  { %660 = vrot.lane.b32.xlu0 %v4067_v11, %s4279_s24 }
 0xbc7   :  { %v4069_v13 = vpop.eup %4068 }
 0xbc8   :  { %v655_v14 = vadd.f32 1.0, %v4069_v13 }
 0xbca   :  { %v656_v15 = vmul.f32 0.5, %v655_v14 }
 0xbcc   :  { %v658_v18 = vmul.f32 %v656_v15, %v547_v50 }
 0xc38   :  { %v661_v16 = vpop.permute.xlu0 %660 }
 0xc39   :  { %v663_v17 = vmul.f32 %v661_v16, %v656_v15 }
 0xc3b   :  { %665 = vrot.lane.b32.xlu1 %v663_v17, %s4285_s11 }
 0xc3f   :  { %681 = vrot.lane.b32.xlu1 %v4352_v4, %s4290_s16 }
 0xcad   :  { %v666_v19 = vpop.permute.xlu1 %665 }
 0xcae   :  { %v668_v20 = vadd.f32 %v666_v19, %v658_v18 }
 0xcb0   :  { %4070 = vtanh.f32 %v668_v20 }
 0xcb1   :  { %v682_v21 = vpop.permute.xlu1 %681 }
 0xcb2   :  { %3708 = vmatmul.mubr.msk.bf16.vlgmr.msra.gmra.mxu0 %vm64_vm2, %v682_v21 }
 0xcb3   :  { %3720 = vmatpush3.bf16.msra.mxu0 %v4350_v3  ;;  %3721 = vmatprep.mubr.msk.bf16.mxu0 %vm4283_vm0, %v4282_v0 }
 0xcb4   :  { %3733 = vmatprep.subr.bf16.mxu0 %v4282_v0 }
 0xcbd   :  { %v4071_v22 = vpop.eup %4070 }
 0xcbe   :  { %671 = vrot.lane.b32.xlu0 %v4071_v22, %s4279_s24 }
 0xd30   :  { %v672_v23 = vpop.permute.xlu0 %671 }
 0xd31   :  { %v4480_v24 = vmul.f32 %v672_v23, %v656_v15 }
 0xd33   :  { %v726_v25 = vpack.c.bf16 %v4480_v24, %v4480_v24 }
 0xd35   :  { %728 = vrot.lane.b32.xlu0 %v726_v25, %s4285_s11 }
 0xd72   :  { %v720_v26 = vpop.f32.mrf.mxu0 }
 0xd73   :  { %v721_v33 = vadd.f32 %v4380_v10, %v720_v26 }
 0xd74   :  { %v3709_v28 = vpop.f32.mrf.mxu0 }
 0xd76   :  { %v723_v29 = vpop.f32.mrf.mxu0 }
 0xd78   :  { %v3710_v30 = vpop.f32.mrf.mxu0 }
 0xda7   :  { %v729_v32 = vpop.permute.xlu0 %728 }
 0xda8   :  { %3716 = vmatmul.mubr.msk.bf16.vlgmr.msra.gmra.mxu1 %vm124_vm3, %v729_v32  ;;  %v4547_v32 = vld [vmem:[#allocation4 + $0x18] sm:$0xff]  }
 0xda9   :  { %3726 = vmatpush3.bf16.msra.mxu1 %v4354_v5  ;;  %3729 = vmatprep.mubr.msk.bf16.mxu1 %vm4283_vm0, %v4282_v0 }
 0xdaa   :  { %3727 = vmatprep.subr.bf16.mxu1 %v4282_v0 }
 0xdad   :  { %3728 = vmatpush3.bf16.msra.mxu1 %v4358_v6 }
 0xdae   :  { %3739 = vmatprep.subr.bf16.mxu1 %v4282_v0 }
 0xe68   :  { %v767_v34 = vpop.f32.mrf.mxu1 }
 0xe69   :  { %v773_v35 = vadd.f32 %v767_v34, %v721_v33  ;;  %v4552_v33 = vld [vmem:[#allocation4 + $0x10] sm:$0xff]  }
 0xe6a   :  { %v3717_v36 = vpop.f32.mrf.mxu1 }
 0xe6b   :  { %4072 = vtanh.f32 %v773_v35  ;;  %v774_v40 = vmul.f32 0.5, %v773_v35 }
 0xe6c   :  { %v770_v37 = vpop.f32.mrf.mxu1 }
 0xe6d   :  { %4074 = vtanh.f32 %v774_v40 }
 0xe6e   :  { %v3718_v38 = vpop.f32.mrf.mxu1 }
 0xe78   :  { %v4073_v39 = vpop.eup %4072 }
 0xe79   :  { %781 = vrot.lane.b32.xlu1 %v4073_v39, %s4279_s24 }
 0xe7a   :  { %v4075_v41 = vpop.eup %4074 }
 0xe7b   :  { %v776_v42 = vadd.f32 1.0, %v4075_v41 }
 0xe7d   :  { %v777_v43 = vmul.f32 0.5, %v776_v42 }
 0xe7f   :  { %v779_v46 = vmul.f32 %v777_v43, %v668_v20 }
 0xeeb   :  { %v782_v44 = vpop.permute.xlu1 %781 }
 0xeec   :  { %v784_v45 = vmul.f32 %v782_v44, %v777_v43 }
 0xeee   :  { %786 = vrot.lane.b32.xlu0 %v784_v45, %s4285_s11  ;;  %v4576_v45 = vld [vmem:[%s5085_s4 + $0x1] ss:$0 sm:$0xff] }
 0xef2   :  { %802 = vrot.lane.b32.xlu0 %v4352_v4, %s4291_s17 }
 0xf60   :  { %v787_v47 = vpop.permute.xlu0 %786 }
 0xf61   :  { %v789_v48 = vadd.f32 %v787_v47, %v779_v46 }
 0xf63   :  { %4076 = vtanh.f32 %v789_v48 }
 0xf64   :  { %v803_v49 = vpop.permute.xlu0 %802 }
 0xf65   :  { %3722 = vmatmul.mubr.msk.bf16.vlgmr.msra.gmra.mxu0 %vm64_vm2, %v803_v49 }
 0xf66   :  { %3734 = vmatpush3.bf16.msra.mxu0 %v4350_v3  ;;  %3735 = vmatprep.mubr.msk.bf16.mxu0 %vm4283_vm0, %v4282_v0 }
 0xf70   :  { %v4077_v50 = vpop.eup %4076 }
 0xf71   :  { %792 = vrot.lane.b32.xlu1 %v4077_v50, %s4279_s24 }
 0xfe3   :  { %v793_v51 = vpop.permute.xlu1 %792 }
 0xfe4   :  { %v4501_v52 = vmul.f32 %v793_v51, %v777_v43 }
 0xfe6   :  { %v847_v53 = vpack.c.bf16 %v4501_v52, %v4501_v52 }
 0xfe8   :  { %849 = vrot.lane.b32.xlu1 %v847_v53, %s4285_s11 }
0x1025   :  { %v841_v55 = vpop.f32.mrf.mxu0 }
0x1026   :  { %v842_v3 = vadd.f32 %v4380_v10, %v841_v55 }
0x1027   :  { %v3723_v56 = vpop.f32.mrf.mxu0 }
0x1029   :  { %v844_v57 = vpop.f32.mrf.mxu0 }
0x102b   :  { %v3724_v59 = vpop.f32.mrf.mxu0 }
0x105a   :  { %v850_v60 = vpop.permute.xlu1 %849 }
0x105b   :  { %3730 = vmatmul.mubr.msk.bf16.vlgmr.msra.gmra.mxu1 %vm124_vm3, %v850_v60 }
0x105c   :  { %3740 = vmatpush3.bf16.msra.mxu1 %v4354_v5  ;;  %3743 = vmatprep.mubr.msk.bf16.mxu1 %vm4283_vm0, %v4282_v0 }
0x105d   :  { %3741 = vmatprep.subr.bf16.mxu1 %v4282_v0 }
0x1060   :  { %3742 = vmatpush3.bf16.msra.mxu1 %v4358_v6 }
0x1061   :  { %3759 = vmatprep.subr.bf16.mxu1 %v4282_v0 }
0x111b   :  { %v888_v61 = vpop.f32.mrf.mxu1 }
0x111c   :  { %v894_v62 = vadd.f32 %v888_v61, %v842_v3 }
0x111d   :  { %v3731_v63 = vpop.f32.mrf.mxu1 }
0x111e   :  { %4078 = vtanh.f32 %v894_v62  ;;  %v895_v5 = vmul.f32 0.5, %v894_v62 }
0x111f   :  { %v891_v1 = vpop.f32.mrf.mxu1 }
0x1120   :  { %4080 = vtanh.f32 %v895_v5 }
0x1121   :  { %v3732_v2 = vpop.f32.mrf.mxu1 }
0x112b   :  { %v4079_v8 = vpop.eup %4078 }
0x112c   :  { %902 = vrot.lane.b32.xlu0 %v4079_v8, %s4279_s24 }
0x112d   :  { %v4081_v9 = vpop.eup %4080 }
0x112e   :  { %v897_v11 = vadd.f32 1.0, %v4081_v9 }
0x1130   :  { %v898_v12 = vmul.f32 0.5, %v897_v11 }
0x1132   :  { %v900_v14 = vmul.f32 %v898_v12, %v789_v48 }
0x119e   :  { %v903_v13 = vpop.permute.xlu0 %902 }
0x119f   :  { %v905_v6 = vmul.f32 %v903_v13, %v898_v12 }
0x11a1   :  { %907 = vrot.lane.b32.xlu1 %v905_v6, %s4285_s11 }
0x11a5   :  { %192 = vrot.lane.b32.xlu1 %v4387_v31, %s4285_s11  ;;  %v4020_v31 = vld [vmem:[%s5083_s2 + $0x8] sm:$0xff]  }
0x11a6   :  { %3747 = vmatprep.subr.bf16.mxu0 %v4020_v31 }
0x11a9   :  { %434 = vrot.lane.b32.xlu1 %v4436_v27, %s4285_s11 }
0x11ad   :  { %923 = vrot.lane.b32.xlu1 %v4352_v4, %s4292_s18  ;;  %v4021_v4 = vld [vmem:[%s5083_s2] sm:$0xff]  }
0x1213   :  { %v908_v15 = vpop.permute.xlu1 %907 }
0x1214   :  { %v4521_v16 = vadd.f32 %v908_v15, %v900_v14 }
0x1216   :  { %4082 = vtanh.f32 %v4521_v16 }
0x1217   :  { %v193_v17 = vpop.permute.xlu1 %192 }
0x1218   :  { %195 = vst.msk [vmem:[#allocation3] sm:$0xff] %vm124_vm3, %v193_v17 }
0x121b   :  { %v435_v18 = vpop.permute.xlu1 %434 }
0x121c   :  { %438 = vst.msk [vmem:[#allocation3 + $0x10] sm:$0xff] %vm124_vm3, %v435_v18 }
0x121f   :  { %v924_v19 = vpop.permute.xlu1 %923  ;;  %v1049_v26 = vld [vmem:[#allocation3] sm:$0xff] }
0x1220   :  { %3736 = vmatmul.mubr.msk.bf16.vlgmr.msra.gmra.mxu0 %vm64_vm2, %v924_v19 }
0x1221   :  { %3748 = vmatpush3.bf16.msra.mxu0 %v4020_v31 }
0x1222   :  { %3749 = vmatprep.subr.bf16.mxu0 %v4021_v4 }
0x1223   :  { %v4083_v27 = vpop.eup %4082 }
0x1224   :  { %913 = vrot.lane.b32.xlu0 %v4083_v27, %s4279_s24 }
0x1225   :  { %3750 = vmatpush3.bf16.msra.mxu0 %v4021_v4 }
0x1226   :  { %3775 = vmatprep.subr.bf16.mxu0 %v4282_v0 }
0x1228   :  { %313 = vrot.lane.b32.xlu0 %v4414_v58, %s4285_s11 }
0x122c   :  { %555 = vrot.lane.b32.xlu0 %v4458_v54, %s4285_s11  ;;  %v1051_v54 = vld [vmem:[#allocation3 + $0x10] sm:$0xff] }
0x1296   :  { %v914_v20 = vpop.permute.xlu0 %913 }
0x1297   :  { %v4539_v21 = vmul.f32 %v914_v20, %v898_v12 }
0x1299   :  { %v968_v22 = vpack.c.bf16 %v4539_v21, %v4539_v21 }
0x129a   :  { %v314_v23 = vpop.permute.xlu0 %313 }
0x129b   :  { %317 = vst.msk [vmem:[#allocation3 + $0x8] sm:$0xff] %vm124_vm3, %v314_v23  ;;  %970 = vrot.lane.b32.xlu0 %v968_v22, %s4285_s11 }
0x129e   :  { %v556_v25 = vpop.permute.xlu0 %555 }
0x129f   :  { %559 = vst.msk [vmem:[#allocation3 + $0x18] sm:$0xff] %vm124_vm3, %v556_v25 }
0x12a2   :  { %v1050_v28 = vld [vmem:[#allocation3 + $0x8] sm:$0xff] }
0x12a3   :  { %v1057_v58 = vpack.c.bf16 %v1050_v28, %v1049_v26 }
0x12a5   :  { %3751 = vmatprep.mubr.msk.bf16.mxu0 %vm124_vm3, %v1057_v58 }
0x12a6   :  { %v1052_v29 = vld [vmem:[#allocation3 + $0x18] sm:$0xff] }
0x12a7   :  { %v1058_v30 = vpack.c.bf16 %v1052_v29, %v1051_v54 }
0x12a9   :  { %3752 = vmatmul.mubr.msk.bf16.vlgmr.msra.gmra.mxu0 %vm124_vm3, %v1058_v30 }
0x12aa   :  { %3776 = vmatpush3.bf16.msra.mxu0 %v4547_v32 }
0x12ab   :  { %3777 = vmatprep.subr.bf16.mxu0 %v4282_v0 }
0x12ae   :  { %3778 = vmatpush3.bf16.msra.mxu0 %v4552_v33 }
0x12af   :  { %3791 = vmatprep.subr.bf16.mxu0 %v4282_v0 }
0x12e0   :  { %v962_v34 = vpop.f32.mrf.mxu0 }
0x12e1   :  { %v963_v39 = vadd.f32 %v4380_v10, %v962_v34 }
0x12e2   :  { %v3737_v35 = vpop.f32.mrf.mxu0 }
0x12e4   :  { %v965_v36 = vpop.f32.mrf.mxu0 }
0x12e6   :  { %v3738_v37 = vpop.f32.mrf.mxu0 }
0x130d   :  { %v971_v38 = vpop.permute.xlu0 %970 }
0x130e   :  { %3744 = vmatmul.mubr.msk.bf16.vlgmr.msra.gmra.mxu1 %vm124_vm3, %v971_v38 }
0x130f   :  { %3760 = vmatpush3.bf16.msra.mxu1 %v4547_v32  ;;  %3763 = vmatprep.mubr.msk.bf16.mxu1 %vm4283_vm0, %v4282_v0 }
0x1310   :  { %3761 = vmatprep.subr.bf16.mxu1 %v4282_v0 }
0x1313   :  { %3762 = vmatpush3.bf16.msra.mxu1 %v4552_v33 }
0x1314   :  { %3767 = vmatprep.subr.bf16.mxu1 %v4282_v0 }
0x1316   :  { %3764 = vmatmul.mubr.bf16.vlgmr.msra.gmra.mxu1 %v4284_v7 }
0x1317   :  { %3768 = vmatpush3.bf16.msra.mxu1 %v4547_v32  ;;  %3771 = vmatprep.mubr.msk.bf16.mxu1 %vm4283_vm0, %v4282_v0 }
0x1318   :  { %3769 = vmatprep.subr.bf16.mxu1 %v4282_v0 }
0x131b   :  { %3770 = vmatpush3.bf16.msra.mxu1 %v4552_v33 }
0x131c   :  { %3783 = vmatprep.subr.bf16.mxu1 %v4282_v0 }
0x1369   :  { %v4571_v40 = vpop.f32.mrf.mxu0 }
0x136b   :  { %v1123_v44 = vpop.f32.mrf.mxu0 }
0x136c   :  { %v1124_v47 = vadd.f32 %v4576_v45, %v1123_v44 }
0x136d   :  { %v4600_v22 = vpop.f32.mrf.mxu0 }
0x136f   :  { %v1126_v23 = vpop.f32.mrf.mxu0 }
0x1370   :  { %v1127_v25 = vadd.f32 %v4576_v45, %v1126_v23 }
0x13ce   :  { %v1009_v41 = vpop.f32.mrf.mxu1 }
0x13cf   :  { %v1015_v42 = vadd.f32 %v1009_v41, %v963_v39 }
0x13d0   :  { %v3745_v43 = vpop.f32.mrf.mxu1 }
0x13d1   :  { %v1016_v8 = vmul.f32 0.5, %v1015_v42 }
0x13d2   :  { %v1012_v7 = vpop.f32.mrf.mxu1 }
0x13d4   :  { %v3746_v46 = vpop.f32.mrf.mxu1 }
0x13d6   :  { %v1214_v48 = vpop.f32.mrf.mxu1 }
0x13d7   :  { %v1220_v49 = vadd.f32 %v1214_v48, %v1124_v47 }
0x13d8   :  { %v3765_v50 = vpop.f32.mrf.mxu1 }
0x13d9   :  { %4084 = vtanh.f32 %v1220_v49  ;;  %v1221_v55 = vmul.f32 0.5, %v1220_v49 }
0x13da   :  { %v1217_v10 = vpop.f32.mrf.mxu1 }
0x13db   :  { %4086 = vtanh.f32 %v1221_v55 }
0x13dc   :  { %v3766_v51 = vpop.f32.mrf.mxu1 }
0x13e6   :  { %v4085_v53 = vpop.eup %4084 }
0x13e7   :  { %1228 = vrot.lane.b32.xlu1 %v4085_v53, %s4279_s24 }
0x13e8   :  { %v4087_v56 = vpop.eup %4086 }
0x13e9   :  { %v1223_v57 = vadd.f32 1.0, %v4087_v56 }
0x13eb   :  { %v1224_v59 = vmul.f32 0.5, %v1223_v57 }
0x13ed   :  { %v1226_v61 = vmul.f32 0.0, %v1224_v59 }
0x1459   :  { %v1229_v60 = vpop.permute.xlu1 %1228 }
0x145a   :  { %v1231_v3 = vmul.f32 %v1229_v60, %v1224_v59 }
0x145c   :  { %1233 = vrot.lane.b32.xlu0 %v1231_v3, %s4285_s11  ;;  %v1132_v3 = vadd.f32 %v4571_v40, %v4576_v45 }
0x14ce   :  { %v1234_v62 = vpop.permute.xlu0 %1233 }
0x14cf   :  { %v1236_v63 = vadd.f32 %v1234_v62, %v1226_v61 }
0x14d1   :  { %4088 = vtanh.f32 %v1236_v63 }
0x14d2   :  { %4090 = vtanh.f32 %v1015_v42 }
0x14d3   :  { %4092 = vtanh.f32 %v1016_v8 }
0x14de   :  { %v4089_v1 = vpop.eup %4088 }
0x14df   :  { %1239 = vrot.lane.b32.xlu1 %v4089_v1, %s4279_s24  ;;  %v4091_v2 = vpop.eup %4090 }
0x14e0   :  { %v4093_v5 = vpop.eup %4092 }
0x14e1   :  { %v1018_v9 = vadd.f32 1.0, %v4093_v5 }
0x14e3   :  { %1023 = vrot.lane.b32.xlu1 %v4091_v2, %s4279_s24  ;;  %v1019_v6 = vmul.f32 0.5, %v1018_v9 }
0x14e5   :  { %v1021_v18 = vmul.f32 %v1019_v6, %v4521_v16 }
0x1551   :  { %v1240_v11 = vpop.permute.xlu1 %1239 }
0x1552   :  { %v1242_v12 = vmul.f32 %v1240_v11, %v1224_v59 }
0x1554   :  { %v1245_v13 = vpack.c.bf16 %v1242_v12, %v1242_v12 }
0x1555   :  { %v1024_v14 = vpop.permute.xlu1 %1023 }
0x1556   :  { %v1026_v15 = vmul.f32 %v1024_v14, %v1019_v6  ;;  %1247 = vrot.lane.b32.xlu0 %v1245_v13, %s4285_s11 }
0x1558   :  { %1028 = vrot.lane.b32.xlu1 %v1026_v15, %s4285_s11 }
0x15c8   :  { %v1248_v17 = vpop.permute.xlu0 %1247 }
0x15c9   :  { %3772 = vmatmul.mubr.msk.bf16.vlgmr.msra.gmra.mxu1 %vm124_vm3, %v1248_v17 }
0x15ca   :  { %v1029_v19 = vpop.permute.xlu1 %1028  ;;  %3784 = vmatpush3.bf16.msra.mxu1 %v4547_v32  ;;  %3787 = vmatprep.mubr.msk.bf16.mxu1 %vm4283_vm0, %v4282_v0 }
0x15cb   :  { %v1031_v31 = vadd.f32 %v1029_v19, %v1021_v18  ;;  %3785 = vmatprep.subr.bf16.mxu1 %v4282_v0 }
0x15cd   :  { %4094 = vtanh.f32 %v1031_v31 }
0x15ce   :  { %3786 = vmatpush3.bf16.msra.mxu1 %v4552_v33 }
0x15cf   :  { %3799 = vmatprep.subr.bf16.mxu1 %v4282_v0 }
0x15da   :  { %v4095_v4 = vpop.eup %4094 }
0x15db   :  { %1034 = vrot.lane.b32.xlu1 %v4095_v4, %s4279_s24 }
0x15df   :  { %676 = vrot.lane.b32.xlu1 %v4480_v24, %s4285_s11 }
0x15e3   :  { %918 = vrot.lane.b32.xlu1 %v4539_v21, %s4285_s11 }
0x164d   :  { %v1035_v16 = vpop.permute.xlu1 %1034 }
0x164e   :  { %v1037_v43 = vmul.f32 %v1035_v16, %v1019_v6  ;;  %v1135_v16 = vadd.f32 %v4600_v22, %v4576_v45 }
0x1651   :  { %v677_v27 = vpop.permute.xlu1 %676 }
0x1652   :  { %680 = vst.msk [vmem:[#allocation3 + $0x20] sm:$0xff] %vm124_vm3, %v677_v27 }
0x1655   :  { %v919_v20 = vpop.permute.xlu1 %918 }
0x1656   :  { %922 = vst.msk [vmem:[#allocation3 + $0x30] sm:$0xff] %vm124_vm3, %v919_v20 }
0x1659   :  { %v1053_v49 = vld [vmem:[#allocation3 + $0x20] sm:$0xff] }
0x1689   :  { %v1286_v26 = vpop.f32.mrf.mxu1 }
0x168a   :  { %v1292_v28 = vadd.f32 %v1286_v26, %v1127_v25 }
0x168b   :  { %v3773_v58 = vpop.f32.mrf.mxu1 }
0x168c   :  { %4096 = vtanh.f32 %v1292_v28  ;;  %v1293_v21 = vmul.f32 0.5, %v1292_v28 }
0x168d   :  { %v1289_v24 = vpop.f32.mrf.mxu1 }
0x168e   :  { %4098 = vtanh.f32 %v1293_v21 }
0x168f   :  { %v3774_v54 = vpop.f32.mrf.mxu1 }
0x1699   :  { %v4097_v29 = vpop.eup %4096 }
0x169a   :  { %1300 = vrot.lane.b32.xlu0 %v4097_v29, %s4279_s24 }
0x169b   :  { %v4099_v30 = vpop.eup %4098 }
0x169c   :  { %v1295_v34 = vadd.f32 1.0, %v4099_v30 }
0x169e   :  { %v1296_v35 = vmul.f32 0.5, %v1295_v34 }
0x16a0   :  { %v1298_v38 = vmul.f32 %v1296_v35, %v1236_v63 }
0x170c   :  { %v1301_v36 = vpop.permute.xlu0 %1300 }
0x170d   :  { %v1303_v37 = vmul.f32 %v1301_v36, %v1296_v35 }
0x170f   :  { %1305 = vrot.lane.b32.xlu0 %v1303_v37, %s4285_s11 }
0x1781   :  { %v1306_v39 = vpop.permute.xlu0 %1305 }
0x1782   :  { %v1308_v41 = vadd.f32 %v1306_v39, %v1298_v38 }
0x1784   :  { %4100 = vtanh.f32 %v1308_v41 }
0x1791   :  { %v4101_v42 = vpop.eup %4100 }
0x1792   :  { %1311 = vrot.lane.b32.xlu0 %v4101_v42, %s4279_s24 }
0x1796   :  { %797 = vrot.lane.b32.xlu0 %v4501_v52, %s4285_s11  ;;  %v1055_v52 = vld [vmem:[#allocation3 + $0x30] sm:$0xff] }
0x179a   :  { %1039 = vrot.lane.b32.xlu0 %v1037_v43, %s4285_s11 }
0x1804   :  { %v1312_v44 = vpop.permute.xlu0 %1311 }
0x1805   :  { %v1314_v7 = vmul.f32 %v1312_v44, %v1296_v35 }
0x1807   :  { %v1317_v46 = vpack.c.bf16 %v1314_v7, %v1314_v7 }
0x1808   :  { %v798_v47 = vpop.permute.xlu0 %797 }
0x1809   :  { %801 = vst.msk [vmem:[#allocation3 + $0x28] sm:$0xff] %vm124_vm3, %v798_v47  ;;  %1319 = vrot.lane.b32.xlu1 %v1317_v46, %s4285_s11 }
0x180c   :  { %v1040_v48 = vpop.permute.xlu0 %1039 }
0x180d   :  { %1043 = vst.msk [vmem:[#allocation3 + $0x38] sm:$0xff] %vm124_vm3, %v1040_v48 }
0x1810   :  { %v1054_v50 = vld [vmem:[#allocation3 + $0x28] sm:$0xff] }
0x1811   :  { %v1059_v10 = vpack.c.bf16 %v1054_v50, %v1053_v49 }
0x1813   :  { %3755 = vmatprep.mubr.msk.bf16.mxu0 %vm124_vm3, %v1059_v10 }
0x1814   :  { %v1056_v51 = vld [vmem:[#allocation3 + $0x38] sm:$0xff] }
0x1815   :  { %v1060_v53 = vpack.c.bf16 %v1056_v51, %v1055_v52 }
0x1817   :  { %3756 = vmatmul.mubr.msk.bf16.gmra.mxu0 %vm124_vm3, %v1060_v53 }
0x1818   :  { %3779 = vmatprep.mubr.msk.bf16.mxu0 %vm4283_vm0, %v4282_v0 }
0x187b   :  { %v1320_v55 = vpop.permute.xlu1 %1319 }
0x187c   :  { %3780 = vmatmul.mubr.msk.bf16.vlgmr.msra.gmra.mxu0 %vm124_vm3, %v1320_v55 }
0x187d   :  { %3792 = vmatpush3.bf16.msra.mxu0 %v4547_v32  ;;  %3795 = vmatprep.mubr.msk.bf16.mxu0 %vm4283_vm0, %v4282_v0 }
0x187e   :  { %3793 = vmatprep.subr.bf16.mxu0 %v4282_v0 }
0x1881   :  { %3794 = vmatpush3.bf16.msra.mxu0 %v4552_v33 }
0x1882   :  { %3807 = vmatprep.subr.bf16.mxu0 %v4282_v0 }
0x18d7   :  { %v4623_v56 = vpop.f32.mrf.mxu0 }
0x18d9   :  { %v4625_v57 = vpop.f32.mrf.mxu0 }
0x18da   :  { %v1140_v42 = vadd.f32 %v4576_v45, %v4625_v57 }
0x18db   :  { %v4627_v59 = vpop.f32.mrf.mxu0 }
0x18dd   :  { %v4629_v60 = vpop.f32.mrf.mxu0 }
0x193c   :  { %v1358_v61 = vpop.f32.mrf.mxu0 }
0x193d   :  { %v1364_v62 = vadd.f32 %v1358_v61, %v1132_v3 }
0x193e   :  { %v3781_v63 = vpop.f32.mrf.mxu0 }
0x193f   :  { %4102 = vtanh.f32 %v1364_v62  ;;  %v1365_v5 = vmul.f32 0.5, %v1364_v62 }
0x1940   :  { %v1361_v1 = vpop.f32.mrf.mxu0 }
0x1941   :  { %4104 = vtanh.f32 %v1365_v5 }
0x1942   :  { %v3782_v2 = vpop.f32.mrf.mxu0 }
0x194c   :  { %v4103_v8 = vpop.eup %4102 }
0x194d   :  { %1372 = vrot.lane.b32.xlu0 %v4103_v8, %s4279_s24  ;;  %v1143_v8 = vadd.f32 %v4576_v45, %v4629_v60 }
0x194e   :  { %v4105_v9 = vpop.eup %4104 }
0x194f   :  { %v1367_v11 = vadd.f32 1.0, %v4105_v9 }
0x1951   :  { %v1368_v12 = vmul.f32 0.5, %v1367_v11 }
0x1953   :  { %v1370_v14 = vmul.f32 %v1368_v12, %v1308_v41 }
0x19bf   :  { %v1373_v13 = vpop.permute.xlu0 %1372 }
0x19c0   :  { %v1375_v6 = vmul.f32 %v1373_v13, %v1368_v12 }
0x19c2   :  { %1377 = vrot.lane.b32.xlu1 %v1375_v6, %s4285_s11 }
0x1a34   :  { %v1378_v40 = vpop.permute.xlu1 %1377 }
0x1a35   :  { %v1380_v15 = vadd.f32 %v1378_v40, %v1370_v14 }
0x1a37   :  { %4106 = vtanh.f32 %v1380_v15 }
0x1a44   :  { %v4107_v17 = vpop.eup %4106 }
0x1a45   :  { %1383 = vrot.lane.b32.xlu0 %v4107_v17, %s4279_s24 }
0x1ab7   :  { %v1384_v18 = vpop.permute.xlu0 %1383 }
0x1ab8   :  { %v1386_v19 = vmul.f32 %v1384_v18, %v1368_v12 }
0x1aba   :  { %v1389_v31 = vpack.c.bf16 %v1386_v19, %v1386_v19 }
0x1abc   :  { %1391 = vrot.lane.b32.xlu1 %v1389_v31, %s4285_s11 }
0x1b2e   :  { %v1392_v4 = vpop.permute.xlu1 %1391 }
0x1b2f   :  { %3788 = vmatmul.mubr.msk.bf16.vlgmr.msra.gmra.mxu1 %vm124_vm3, %v1392_v4 }
0x1b30   :  { %3800 = vmatpush3.bf16.msra.mxu1 %v4547_v32  ;;  %3803 = vmatprep.mubr.msk.bf16.mxu1 %vm4283_vm0, %v4282_v0 }
0x1b31   :  { %3801 = vmatprep.subr.bf16.mxu1 %v4282_v0 }
0x1b34   :  { %3802 = vmatpush3.bf16.msra.mxu1 %v4552_v33 }
0x1b35   :  { %3815 = vmatprep.subr.bf16.mxu1 %v4282_v0 }
0x1bef   :  { %v1430_v27 = vpop.f32.mrf.mxu1 }
0x1bf0   :  { %v1436_v20 = vadd.f32 %v1430_v27, %v1135_v16 }
0x1bf1   :  { %v3789_v23 = vpop.f32.mrf.mxu1 }
0x1bf2   :  { %4108 = vtanh.f32 %v1436_v20  ;;  %v1437_v58 = vmul.f32 0.5, %v1436_v20  ;;  %v1148_v23 = vadd.f32 %v4623_v56, %v4576_v45 }
0x1bf3   :  { %v1433_v25 = vpop.f32.mrf.mxu1 }
0x1bf4   :  { %4110 = vtanh.f32 %v1437_v58 }
0x1bf5   :  { %v3790_v26 = vpop.f32.mrf.mxu1 }
0x1bff   :  { %v4109_v28 = vpop.eup %4108 }
0x1c00   :  { %1444 = vrot.lane.b32.xlu0 %v4109_v28, %s4279_s24 }
0x1c01   :  { %v4111_v24 = vpop.eup %4110 }
0x1c02   :  { %v1439_v54 = vadd.f32 1.0, %v4111_v24 }
0x1c04   :  { %v1440_v29 = vmul.f32 0.5, %v1439_v54 }
0x1c06   :  { %v1442_v34 = vmul.f32 %v1440_v29, %v1380_v15 }
0x1c72   :  { %v1445_v21 = vpop.permute.xlu0 %1444 }
0x1c73   :  { %v1447_v30 = vmul.f32 %v1445_v21, %v1440_v29 }
0x1c75   :  { %1449 = vrot.lane.b32.xlu1 %v1447_v30, %s4285_s11 }
0x1ce7   :  { %v1450_v22 = vpop.permute.xlu1 %1449 }
0x1ce8   :  { %v1452_v35 = vadd.f32 %v1450_v22, %v1442_v34 }
0x1cea   :  { %4112 = vtanh.f32 %v1452_v35 }
0x1cf7   :  { %v4113_v36 = vpop.eup %4112 }
0x1cf8   :  { %1455 = vrot.lane.b32.xlu0 %v4113_v36, %s4279_s24 }
0x1d6a   :  { %v1456_v37 = vpop.permute.xlu0 %1455 }
0x1d6b   :  { %v1458_v38 = vmul.f32 %v1456_v37, %v1440_v29 }
0x1d6d   :  { %v1461_v39 = vpack.c.bf16 %v1458_v38, %v1458_v38 }
0x1d6f   :  { %1463 = vrot.lane.b32.xlu1 %v1461_v39, %s4285_s11 }
0x1de1   :  { %v1464_v41 = vpop.permute.xlu1 %1463 }
0x1de2   :  { %3796 = vmatmul.mubr.msk.bf16.vlgmr.msra.gmra.mxu0 %vm124_vm3, %v1464_v41 }
0x1de3   :  { %3808 = vmatpush3.bf16.msra.mxu0 %v4547_v32  ;;  %3811 = vmatprep.mubr.msk.bf16.mxu0 %vm4283_vm0, %v4282_v0 }
0x1de4   :  { %3809 = vmatprep.subr.bf16.mxu0 %v4282_v0 }
0x1de7   :  { %3810 = vmatpush3.bf16.msra.mxu0 %v4552_v33 }
0x1de8   :  { %3823 = vmatprep.subr.bf16.mxu0 %v4282_v0 }
0x1ea2   :  { %v1502_v43 = vpop.f32.mrf.mxu0 }
0x1ea3   :  { %v1508_v44 = vadd.f32 %v1502_v43, %v1140_v42 }
0x1ea4   :  { %v3797_v7 = vpop.f32.mrf.mxu0 }
0x1ea5   :  { %4114 = vtanh.f32 %v1508_v44  ;;  %v1509_v49 = vmul.f32 0.5, %v1508_v44  ;;  %v1151_v44 = vadd.f32 %v4627_v59, %v4576_v45 }
0x1ea6   :  { %v1505_v46 = vpop.f32.mrf.mxu0 }
0x1ea7   :  { %4116 = vtanh.f32 %v1509_v49 }
0x1ea8   :  { %v3798_v47 = vpop.f32.mrf.mxu0 }
0x1eb2   :  { %v4115_v48 = vpop.eup %4114 }
0x1eb3   :  { %1516 = vrot.lane.b32.xlu0 %v4115_v48, %s4279_s24 }
0x1eb4   :  { %v4117_v50 = vpop.eup %4116 }
0x1eb5   :  { %v1511_v10 = vadd.f32 1.0, %v4117_v50 }
0x1eb7   :  { %v1512_v52 = vmul.f32 0.5, %v1511_v10 }
0x1eb9   :  { %v1514_v55 = vmul.f32 %v1512_v52, %v1452_v35 }
0x1f25   :  { %v1517_v51 = vpop.permute.xlu0 %1516 }
0x1f26   :  { %v1519_v53 = vmul.f32 %v1517_v51, %v1512_v52 }
0x1f28   :  { %1521 = vrot.lane.b32.xlu1 %v1519_v53, %s4285_s11 }
0x1f9a   :  { %v1522_v57 = vpop.permute.xlu1 %1521 }
0x1f9b   :  { %v1524_v3 = vadd.f32 %v1522_v57, %v1514_v55 }
0x1f9d   :  { %4118 = vtanh.f32 %v1524_v3 }
0x1faa   :  { %v4119_v61 = vpop.eup %4118 }
0x1fab   :  { %1527 = vrot.lane.b32.xlu0 %v4119_v61, %s4279_s24  ;;  %v4024_v61 = vld [vmem:[#allocation6 + $0x8] sm:$0xff]  }
0x201d   :  { %v1528_v62 = vpop.permute.xlu0 %1527 }
0x201e   :  { %v1530_v63 = vmul.f32 %v1528_v62, %v1512_v52  ;;  %v4025_v62 = vld [vmem:[#allocation6] sm:$0xff]  }
0x2020   :  { %v1533_v1 = vpack.c.bf16 %v1530_v63, %v1530_v63 }
0x2022   :  { %1535 = vrot.lane.b32.xlu1 %v1533_v1, %s4285_s11  ;;  %v4026_v1 = vld [vmem:[#allocation6 + $0x78] sm:$0xff]  }
0x2094   :  { %v1536_v2 = vpop.permute.xlu1 %1535 }
0x2095   :  { %3804 = vmatmul.mubr.msk.bf16.vlgmr.msra.gmra.mxu1 %vm124_vm3, %v1536_v2  ;;  %v4027_v2 = vld [vmem:[#allocation6 + $0x70] sm:$0xff]  }
0x2096   :  { %3816 = vmatpush3.bf16.msra.mxu1 %v4547_v32  ;;  %3819 = vmatprep.mubr.msk.bf16.mxu1 %vm4283_vm0, %v4282_v0 }
0x2097   :  { %3817 = vmatprep.subr.bf16.mxu1 %v4282_v0 }
0x209a   :  { %3818 = vmatpush3.bf16.msra.mxu1 %v4552_v33 }
0x209b   :  { %3831 = vmatprep.subr.bf16.mxu1 %v4282_v0 }
0x2155   :  { %v1574_v5 = vpop.f32.mrf.mxu1 }
0x2156   :  { %v1580_v9 = vadd.f32 %v1574_v5, %v1143_v8  ;;  %v4028_v8 = vld [vmem:[#allocation6 + $0x68] sm:$0xff]  }
0x2157   :  { %v3805_v11 = vpop.f32.mrf.mxu1 }
0x2158   :  { %4120 = vtanh.f32 %v1580_v9  ;;  %v1581_v32 = vmul.f32 0.5, %v1580_v9  ;;  %v4029_v11 = vld [vmem:[#allocation6 + $0x60] sm:$0xff]  }
0x2159   :  { %v1577_v12 = vpop.f32.mrf.mxu1 }
0x215a   :  { %4122 = vtanh.f32 %v1581_v32  ;;  %v4032_v32 = vld [vmem:[#allocation6 + $0x48] sm:$0xff]  }
0x215b   :  { %v3806_v13 = vpop.f32.mrf.mxu1 }
0x215c   :  { %v4030_v13 = vld [vmem:[#allocation6 + $0x58] sm:$0xff]  }
0x2165   :  { %v4121_v6 = vpop.eup %4120 }
0x2166   :  { %1588 = vrot.lane.b32.xlu0 %v4121_v6, %s4279_s24  ;;  %v4031_v6 = vld [vmem:[#allocation6 + $0x50] sm:$0xff]  }
0x2167   :  { %v4123_v14 = vpop.eup %4122 }
0x2168   :  { %v1583_v40 = vadd.f32 1.0, %v4123_v14 }
0x216a   :  { %v1584_v15 = vmul.f32 0.5, %v1583_v40  ;;  %v4033_v40 = vld [vmem:[#allocation6 + $0x40] sm:$0xff]  }
0x216c   :  { %v1586_v18 = vmul.f32 %v1584_v15, %v1524_v3 }
0x21d8   :  { %v1589_v33 = vpop.permute.xlu0 %1588 }
0x21d9   :  { %v1591_v17 = vmul.f32 %v1589_v33, %v1584_v15  ;;  %v3441_v33 = vld [vmem:[%s5085_s4 + $0x4] ss:$0 sm:$0xff] }
0x21db   :  { %1593 = vrot.lane.b32.xlu1 %v1591_v17, %s4285_s11 }
0x224d   :  { %v1594_v60 = vpop.permute.xlu1 %1593 }
0x224e   :  { %v1596_v19 = vadd.f32 %v1594_v60, %v1586_v18 }
0x2250   :  { %4124 = vtanh.f32 %v1596_v19 }
0x225d   :  { %v4125_v31 = vpop.eup %4124 }
0x225e   :  { %1599 = vrot.lane.b32.xlu0 %v4125_v31, %s4279_s24 }
0x22d0   :  { %v1600_v4 = vpop.permute.xlu0 %1599 }
0x22d1   :  { %v1602_v16 = vmul.f32 %v1600_v4, %v1584_v15  ;;  %v4707_v15 = vld [vmem:[#allocation4 + $0x28] sm:$0xff]  }
0x22d3   :  { %v1605_v27 = vpack.c.bf16 %v1602_v16, %v1602_v16  ;;  %v4718_v16 = vld [vmem:[#allocation4 + $0x20] sm:$0xff]  }
0x22d5   :  { %1607 = vrot.lane.b32.xlu1 %v1605_v27, %s4285_s11  ;;  %v3445_v27 = vld [vmem:[%s5085_s4 + $0x5] ss:$0 sm:$0xff] }
0x2347   :  { %v1608_v20 = vpop.permute.xlu1 %1607 }
0x2348   :  { %3812 = vmatmul.mubr.msk.bf16.vlgmr.msra.gmra.mxu0 %vm124_vm3, %v1608_v20 }
0x2349   :  { %3827 = vmatprep.mubr.msk.bf16.mxu0 %vm4283_vm0, %v4282_v0  ;;  %3824 = vmatpush3.bf16.msra.mxu0 %v4024_v61 }
0x234a   :  { %3825 = vmatprep.subr.bf16.mxu0 %v4282_v0 }
0x234d   :  { %3826 = vmatpush3.bf16.msra.mxu0 %v4025_v62 }
0x234e   :  { %3851 = vmatprep.subr.bf16.mxu0 %v4282_v0 }
0x2408   :  { %v1646_v25 = vpop.f32.mrf.mxu0 }
0x2409   :  { %v1652_v26 = vadd.f32 %v1646_v25, %v1148_v23 }
0x240a   :  { %v3813_v28 = vpop.f32.mrf.mxu0 }
0x240b   :  { %4126 = vtanh.f32 %v1652_v26  ;;  %v1653_v29 = vmul.f32 0.5, %v1652_v26 }
0x240c   :  { %v1649_v58 = vpop.f32.mrf.mxu0 }
0x240d   :  { %4128 = vtanh.f32 %v1653_v29 }
0x240e   :  { %v3814_v24 = vpop.f32.mrf.mxu0 }
0x240f   :  { %v4740_v24 = vld [vmem:[%s5085_s4 + $0x2] ss:$0 sm:$0xff] }
0x2418   :  { %v4127_v54 = vpop.eup %4126 }
0x2419   :  { %1660 = vrot.lane.b32.xlu0 %v4127_v54, %s4279_s24 }
0x241a   :  { %v4129_v21 = vpop.eup %4128 }
0x241b   :  { %v1655_v30 = vadd.f32 1.0, %v4129_v21 }
0x241d   :  { %v1656_v34 = vmul.f32 0.5, %v1655_v30 }
0x241f   :  { %v1658_v36 = vmul.f32 %v1656_v34, %v1596_v19 }
0x248b   :  { %v1661_v22 = vpop.permute.xlu0 %1660 }
0x248c   :  { %v1663_v35 = vmul.f32 %v1661_v22, %v1656_v34 }
0x248e   :  { %1665 = vrot.lane.b32.xlu1 %v1663_v35, %s4285_s11 }
0x2500   :  { %v1666_v56 = vpop.permute.xlu1 %1665 }
0x2501   :  { %v1668_v37 = vadd.f32 %v1666_v56, %v1658_v36 }
0x2503   :  { %4130 = vtanh.f32 %v1668_v37 }
0x2510   :  { %v4131_v38 = vpop.eup %4130 }
0x2511   :  { %1671 = vrot.lane.b32.xlu0 %v4131_v38, %s4279_s24 }
0x2583   :  { %v1672_v39 = vpop.permute.xlu0 %1671 }
0x2584   :  { %v1674_v41 = vmul.f32 %v1672_v39, %v1656_v34 }
0x2586   :  { %v1677_v42 = vpack.c.bf16 %v1674_v41, %v1674_v41 }
0x2588   :  { %1679 = vrot.lane.b32.xlu1 %v1677_v42, %s4285_s11 }
0x25fa   :  { %v1680_v43 = vpop.permute.xlu1 %1679 }
0x25fb   :  { %3820 = vmatmul.mubr.msk.bf16.vlgmr.msra.gmra.mxu1 %vm124_vm3, %v1680_v43 }
0x25fc   :  { %3847 = vmatprep.mubr.msk.bf16.mxu1 %vm4283_vm0, %v4282_v0  ;;  %3832 = vmatpush3.bf16.msra.mxu1 %v4026_v1 }
0x25fd   :  { %3833 = vmatprep.subr.bf16.mxu1 %v4282_v0 }
0x2600   :  { %3834 = vmatpush3.bf16.msra.mxu1 %v4027_v2 }
0x2601   :  { %3835 = vmatprep.subr.bf16.mxu1 %v4282_v0 }
0x2604   :  { %3836 = vmatpush3.bf16.msra.mxu1 %v4028_v8 }
0x2605   :  { %3837 = vmatprep.subr.bf16.mxu1 %v4282_v0 }
0x2608   :  { %3838 = vmatpush3.bf16.msra.mxu1 %v4029_v11 }
0x2609   :  { %3839 = vmatprep.subr.bf16.mxu1 %v4282_v0 }
0x260c   :  { %3840 = vmatpush3.bf16.msra.mxu1 %v4030_v13 }
0x260d   :  { %3841 = vmatprep.subr.bf16.mxu1 %v4282_v0 }
0x2610   :  { %3842 = vmatpush3.bf16.msra.mxu1 %v4031_v6 }
0x2611   :  { %3843 = vmatprep.subr.bf16.mxu1 %v4282_v0 }
0x2614   :  { %3844 = vmatpush3.bf16.msra.mxu1 %v4032_v32 }
0x2615   :  { %3845 = vmatprep.subr.bf16.mxu1 %v4282_v0 }
0x2618   :  { %3846 = vmatpush3.bf16.msra.mxu1 %v4033_v40 }
0x2619   :  { %3883 = vmatprep.subr.bf16.mxu1 %v4282_v0 }
0x26bb   :  { %v1718_v7 = vpop.f32.mrf.mxu1 }
0x26bc   :  { %v1724_v46 = vadd.f32 %v1718_v7, %v1151_v44 }
0x26bd   :  { %v3821_v47 = vpop.f32.mrf.mxu1 }
0x26be   :  { %4132 = vtanh.f32 %v1724_v46  ;;  %v1725_v10 = vmul.f32 0.5, %v1724_v46 }
0x26bf   :  { %v1721_v48 = vpop.f32.mrf.mxu1 }
0x26c0   :  { %4134 = vtanh.f32 %v1725_v10 }
0x26c1   :  { %v3822_v49 = vpop.f32.mrf.mxu1 }
0x26cb   :  { %v4133_v50 = vpop.eup %4132 }
0x26cc   :  { %1732 = vrot.lane.b32.xlu0 %v4133_v50, %s4279_s24 }
0x26cd   :  { %v4135_v52 = vpop.eup %4134 }
0x26ce   :  { %v1727_v51 = vadd.f32 1.0, %v4135_v52 }
0x26d0   :  { %v1728_v53 = vmul.f32 0.5, %v1727_v51 }
0x26d2   :  { %v1730_v3 = vmul.f32 %v1728_v53, %v1668_v37 }
0x273e   :  { %v1733_v55 = vpop.permute.xlu0 %1732 }
0x273f   :  { %v1735_v57 = vmul.f32 %v1733_v55, %v1728_v53 }
0x2741   :  { %1737 = vrot.lane.b32.xlu1 %v1735_v57, %s4285_s11 }
0x27b3   :  { %v1738_v45 = vpop.permute.xlu1 %1737 }
0x27b4   :  { %v1740_v59 = vadd.f32 %v1738_v45, %v1730_v3 }
0x27b6   :  { %4136 = vtanh.f32 %v1740_v59 }
0x27c3   :  { %v4137_v63 = vpop.eup %4136 }
0x27c4   :  { %1743 = vrot.lane.b32.xlu0 %v4137_v63, %s4279_s24 }
0x2836   :  { %v1744_v5 = vpop.permute.xlu0 %1743 }
0x2837   :  { %v1746_v9 = vmul.f32 %v1744_v5, %v1728_v53 }
0x2839   :  { %v1768_v12 = vpack.c.bf16 %v1746_v9, %v1746_v9 }
0x283b   :  { %1775 = vrot.lane.b32.xlu1 %v1768_v12, %s4285_s11 }
0x28ad   :  { %v1776_v14 = vpop.permute.xlu1 %1775 }
0x28ae   :  { %3828 = vmatmul.mubr.msk.bf16.vlgmr.msra.gmra.mxu0 %vm124_vm3, %v1776_v14 }
0x28af   :  { %3855 = vmatprep.mubr.msk.bf16.mxu0 %vm4283_vm0, %v4282_v0  ;;  %3852 = vmatpush3.bf16.msra.mxu0 %v4707_v15 }
0x28b0   :  { %3853 = vmatprep.subr.bf16.mxu0 %v4282_v0 }
0x28b3   :  { %3854 = vmatpush3.bf16.msra.mxu0 %v4718_v16 }
0x28b4   :  { %3859 = vmatprep.subr.bf16.mxu0 %v4282_v0 }
0x296e   :  { %v1826_v17 = vpop.f32.mrf.mxu0 }
0x296f   :  { %v1827_v18 = vadd.f32 %v3441_v33, %v1826_v17 }
0x2970   :  { %v3829_v60 = vpop.f32.mrf.mxu0 }
0x2971   :  { %v1832_v19 = vpack.c.bf16 %v1827_v18, %v1827_v18 }
0x2972   :  { %v1829_v31 = vpop.f32.mrf.mxu0 }
0x2973   :  { %3848 = vmatmul.mubr.bf16.vlgmr.msra.gmra.mxu1 %v1832_v19 }
0x2974   :  { %v3830_v4 = vpop.f32.mrf.mxu0  ;;  %3884 = vmatpush3.bf16.msra.mxu1 %v4707_v15  ;;  %3887 = vmatprep.mubr.msk.bf16.mxu1 %vm4283_vm0, %v4282_v0 }
0x2975   :  { %3885 = vmatprep.subr.bf16.mxu1 %v4282_v0 }
0x2978   :  { %3886 = vmatpush3.bf16.msra.mxu1 %v4718_v16 }
0x2979   :  { %3899 = vmatprep.subr.bf16.mxu1 %v4282_v0 }
0x2a33   :  { %v1920_v20 = vpop.f32.mrf.mxu1 }
0x2a34   :  { %v1921_v23 = vadd.f32 %v3445_v27, %v1920_v20 }
0x2a35   :  { %v3849_v25 = vpop.f32.mrf.mxu1 }
0x2a36   :  { %v4727_v26 = vpack.c.bf16 %v1921_v23, %v1921_v23 }
0x2a37   :  { %v1923_v28 = vpop.f32.mrf.mxu1 }
0x2a38   :  { %3856 = vmatmul.mubr.msk.bf16.vlgmr.msra.gmra.mxu0 %vm124_vm3, %v4727_v26 }
0x2a39   :  { %v3850_v58 = vpop.f32.mrf.mxu1  ;;  %3860 = vmatpush3.bf16.msra.mxu0 %v4707_v15  ;;  %3863 = vmatprep.mubr.msk.bf16.mxu0 %vm4283_vm0, %v4282_v0 }
0x2a3a   :  { %3861 = vmatprep.subr.bf16.mxu0 %v4282_v0 }
0x2a3d   :  { %3862 = vmatpush3.bf16.msra.mxu0 %v4718_v16 }
0x2a3e   :  { %3867 = vmatprep.subr.bf16.mxu0 %v4282_v0 }
0x2af8   :  { %v1986_v54 = vpop.f32.mrf.mxu0 }
0x2af9   :  { %v1992_v29 = vadd.f32 %v4740_v24, %v1986_v54 }
0x2afa   :  { %v3857_v21 = vpop.f32.mrf.mxu0 }
0x2afb   :  { %4138 = vtanh.f32 %v1992_v29  ;;  %v1993_v35 = vmul.f32 0.5, %v1992_v29 }
0x2afc   :  { %v1989_v30 = vpop.f32.mrf.mxu0 }
0x2afd   :  { %4140 = vtanh.f32 %v1993_v35 }
0x2afe   :  { %v3858_v34 = vpop.f32.mrf.mxu0 }
0x2b08   :  { %v4139_v22 = vpop.eup %4138 }
0x2b09   :  { %2000 = vrot.lane.b32.xlu0 %v4139_v22, %s4279_s24 }
0x2b0a   :  { %v4141_v36 = vpop.eup %4140 }
0x2b0b   :  { %v1995_v56 = vadd.f32 1.0, %v4141_v36 }
0x2b0d   :  { %v1996_v37 = vmul.f32 0.5, %v1995_v56 }
0x2b0f   :  { %v1998_v41 = vmul.f32 0.0, %v1996_v37 }
0x2b7b   :  { %v2001_v38 = vpop.permute.xlu0 %2000 }
0x2b7c   :  { %v2003_v39 = vmul.f32 %v2001_v38, %v1996_v37 }
0x2b7e   :  { %2005 = vrot.lane.b32.xlu1 %v2003_v39, %s4285_s11 }
0x2bf0   :  { %v2006_v42 = vpop.permute.xlu1 %2005 }
0x2bf1   :  { %v2008_v43 = vadd.f32 %v2006_v42, %v1998_v41 }
0x2bf3   :  { %4142 = vtanh.f32 %v2008_v43 }
0x2c00   :  { %v4143_v44 = vpop.eup %4142 }
0x2c01   :  { %2011 = vrot.lane.b32.xlu0 %v4143_v44, %s4279_s24 }
0x2c73   :  { %v2012_v7 = vpop.permute.xlu0 %2011 }
0x2c74   :  { %v4746_v46 = vmul.f32 %v2012_v7, %v1996_v37 }
0x2c76   :  { %v2020_v47 = vpack.c.bf16 %v4746_v46, %v4746_v46 }
0x2c78   :  { %2022 = vrot.lane.b32.xlu1 %v2020_v47, %s4285_s11 }
0x2cea   :  { %v2023_v48 = vpop.permute.xlu1 %2022 }
0x2ceb   :  { %3864 = vmatmul.mubr.msk.bf16.vlgmr.msra.gmra.mxu0 %vm124_vm3, %v2023_v48 }
0x2cec   :  { %3868 = vmatpush3.bf16.msra.mxu0 %v4707_v15  ;;  %3871 = vmatprep.mubr.msk.bf16.mxu0 %vm4283_vm0, %v4282_v0 }
0x2ced   :  { %3869 = vmatprep.subr.bf16.mxu0 %v4282_v0 }
0x2cf0   :  { %3870 = vmatpush3.bf16.msra.mxu0 %v4718_v16 }
0x2cf1   :  { %3875 = vmatprep.subr.bf16.mxu0 %v4282_v0 }
0x2dab   :  { %v2061_v49 = vpop.f32.mrf.mxu0 }
0x2dac   :  { %v2067_v50 = vadd.f32 %v4740_v24, %v2061_v49 }
0x2dad   :  { %v3865_v10 = vpop.f32.mrf.mxu0 }
0x2dae   :  { %4144 = vtanh.f32 %v2067_v50  ;;  %v2068_v55 = vmul.f32 0.5, %v2067_v50 }
0x2daf   :  { %v2064_v52 = vpop.f32.mrf.mxu0 }
0x2db0   :  { %4146 = vtanh.f32 %v2068_v55 }
0x2db1   :  { %v3866_v51 = vpop.f32.mrf.mxu0 }
0x2dbb   :  { %v4145_v53 = vpop.eup %4144 }
0x2dbc   :  { %2075 = vrot.lane.b32.xlu0 %v4145_v53, %s4279_s24 }
0x2dbd   :  { %v4147_v57 = vpop.eup %4146 }
0x2dbe   :  { %v2070_v3 = vadd.f32 1.0, %v4147_v57 }
0x2dc0   :  { %v2071_v45 = vmul.f32 0.5, %v2070_v3 }
0x2dc2   :  { %v2073_v62 = vmul.f32 %v2071_v45, %v2008_v43 }
0x2e2e   :  { %v2076_v59 = vpop.permute.xlu0 %2075 }
0x2e2f   :  { %v2078_v61 = vmul.f32 %v2076_v59, %v2071_v45 }
0x2e31   :  { %2080 = vrot.lane.b32.xlu1 %v2078_v61, %s4285_s11 }
0x2ea3   :  { %v2081_v63 = vpop.permute.xlu1 %2080 }
0x2ea4   :  { %v2083_v1 = vadd.f32 %v2081_v63, %v2073_v62 }
0x2ea6   :  { %4148 = vtanh.f32 %v2083_v1 }
0x2eb3   :  { %v4149_v2 = vpop.eup %4148 }
0x2eb4   :  { %2086 = vrot.lane.b32.xlu0 %v4149_v2, %s4279_s24 }
0x2f26   :  { %v2087_v8 = vpop.permute.xlu0 %2086 }
0x2f27   :  { %v4762_v5 = vmul.f32 %v2087_v8, %v2071_v45 }
0x2f29   :  { %v2095_v9 = vpack.c.bf16 %v4762_v5, %v4762_v5 }
0x2f2b   :  { %2097 = vrot.lane.b32.xlu1 %v2095_v9, %s4285_s11 }
0x2f9d   :  { %v2098_v11 = vpop.permute.xlu1 %2097 }
0x2f9e   :  { %3872 = vmatmul.mubr.msk.bf16.vlgmr.msra.gmra.mxu0 %vm124_vm3, %v2098_v11 }
0x2f9f   :  { %3876 = vmatpush3.bf16.msra.mxu0 %v4707_v15  ;;  %3879 = vmatprep.mubr.msk.bf16.mxu0 %vm4283_vm0, %v4282_v0 }
0x2fa0   :  { %3877 = vmatprep.subr.bf16.mxu0 %v4282_v0 }
0x2fa3   :  { %3878 = vmatpush3.bf16.msra.mxu0 %v4718_v16 }
0x2fa4   :  { %3891 = vmatprep.subr.bf16.mxu0 %v4282_v0 }
0x305e   :  { %v2136_v12 = vpop.f32.mrf.mxu0 }
0x305f   :  { %v2142_v13 = vadd.f32 %v4740_v24, %v2136_v12 }
0x3060   :  { %v3873_v6 = vpop.f32.mrf.mxu0 }
0x3061   :  { %4150 = vtanh.f32 %v2142_v13  ;;  %v2143_v33 = vmul.f32 0.5, %v2142_v13 }
0x3062   :  { %v2139_v32 = vpop.f32.mrf.mxu0 }
0x3063   :  { %4152 = vtanh.f32 %v2143_v33 }
0x3064   :  { %v3874_v14 = vpop.f32.mrf.mxu0 }
0x306e   :  { %v4151_v40 = vpop.eup %4150 }
0x306f   :  { %2150 = vrot.lane.b32.xlu0 %v4151_v40, %s4279_s24 }
0x3070   :  { %v4153_v17 = vpop.eup %4152 }
0x3071   :  { %v2145_v18 = vadd.f32 1.0, %v4153_v17 }
0x3073   :  { %v2146_v60 = vmul.f32 0.5, %v2145_v18 }
0x3075   :  { %v2148_v4 = vmul.f32 %v2146_v60, %v2083_v1 }
0x30e1   :  { %v2151_v19 = vpop.permute.xlu0 %2150 }
0x30e2   :  { %v2153_v31 = vmul.f32 %v2151_v19, %v2146_v60 }
0x30e4   :  { %2155 = vrot.lane.b32.xlu1 %v2153_v31, %s4285_s11 }
0x3156   :  { %v2156_v27 = vpop.permute.xlu1 %2155 }
0x3157   :  { %v2158_v20 = vadd.f32 %v2156_v27, %v2148_v4 }
0x3159   :  { %4154 = vtanh.f32 %v2158_v20 }
0x3166   :  { %v4155_v23 = vpop.eup %4154 }
0x3167   :  { %2161 = vrot.lane.b32.xlu0 %v4155_v23, %s4279_s24 }
0x31d9   :  { %v2162_v25 = vpop.permute.xlu0 %2161 }
0x31da   :  { %v4778_v28 = vmul.f32 %v2162_v25, %v2146_v60 }
0x31dc   :  { %v2170_v58 = vpack.c.bf16 %v4778_v28, %v4778_v28 }
0x31de   :  { %2172 = vrot.lane.b32.xlu1 %v2170_v58, %s4285_s11 }
0x3250   :  { %v2173_v54 = vpop.permute.xlu1 %2172 }
0x3251   :  { %3880 = vmatmul.mubr.msk.bf16.vlgmr.msra.gmra.mxu0 %vm124_vm3, %v2173_v54 }
0x3252   :  { %3892 = vmatpush3.bf16.msra.mxu0 %v4707_v15  ;;  %3895 = vmatprep.mubr.msk.bf16.mxu0 %vm4283_vm0, %v4282_v0 }
0x3253   :  { %3893 = vmatprep.subr.bf16.mxu0 %v4282_v0 }
0x3256   :  { %3894 = vmatpush3.bf16.msra.mxu0 %v4718_v16 }
0x3257   :  { %3907 = vmatprep.subr.bf16.mxu0 %v4282_v0 }
0x3311   :  { %v2211_v29 = vpop.f32.mrf.mxu0 }
0x3312   :  { %v2217_v21 = vadd.f32 %v4740_v24, %v2211_v29 }
0x3313   :  { %v3881_v30 = vpop.f32.mrf.mxu0 }
0x3314   :  { %4156 = vtanh.f32 %v2217_v21  ;;  %v2218_v36 = vmul.f32 0.5, %v2217_v21 }
0x3315   :  { %v2214_v34 = vpop.f32.mrf.mxu0 }
0x3316   :  { %4158 = vtanh.f32 %v2218_v36 }
0x3317   :  { %v3882_v22 = vpop.f32.mrf.mxu0 }
0x3321   :  { %v4157_v35 = vpop.eup %4156 }
0x3322   :  { %2225 = vrot.lane.b32.xlu0 %v4157_v35, %s4279_s24 }
0x3323   :  { %v4159_v56 = vpop.eup %4158 }
0x3324   :  { %v2220_v37 = vadd.f32 1.0, %v4159_v56 }
0x3326   :  { %v2221_v38 = vmul.f32 0.5, %v2220_v37 }
0x3328   :  { %v2223_v42 = vmul.f32 %v2221_v38, %v2158_v20 }
0x3394   :  { %v2226_v39 = vpop.permute.xlu0 %2225 }
0x3395   :  { %v2228_v41 = vmul.f32 %v2226_v39, %v2221_v38 }
0x3397   :  { %2230 = vrot.lane.b32.xlu1 %v2228_v41, %s4285_s11 }
0x3409   :  { %v2231_v43 = vpop.permute.xlu1 %2230 }
0x340a   :  { %v2233_v44 = vadd.f32 %v2231_v43, %v2223_v42 }
0x340c   :  { %4160 = vtanh.f32 %v2233_v44 }
0x3419   :  { %v4161_v7 = vpop.eup %4160 }
0x341a   :  { %2236 = vrot.lane.b32.xlu0 %v4161_v7, %s4279_s24 }
0x348c   :  { %v2237_v47 = vpop.permute.xlu0 %2236 }
0x348d   :  { %v4794_v48 = vmul.f32 %v2237_v47, %v2221_v38 }
0x348f   :  { %v2245_v49 = vpack.c.bf16 %v4794_v48, %v4794_v48 }
0x3491   :  { %2247 = vrot.lane.b32.xlu1 %v2245_v49, %s4285_s11 }
0x3503   :  { %v2248_v50 = vpop.permute.xlu1 %2247 }
0x3504   :  { %3888 = vmatmul.mubr.msk.bf16.vlgmr.msra.gmra.mxu1 %vm124_vm3, %v2248_v50 }
0x3505   :  { %3900 = vmatpush3.bf16.msra.mxu1 %v4707_v15  ;;  %3903 = vmatprep.mubr.msk.bf16.mxu1 %vm4283_vm0, %v4282_v0 }
0x3506   :  { %3901 = vmatprep.subr.bf16.mxu1 %v4282_v0 }
0x3509   :  { %3902 = vmatpush3.bf16.msra.mxu1 %v4718_v16 }
0x35c4   :  { %v2286_v10 = vpop.f32.mrf.mxu1 }
0x35c5   :  { %v2292_v52 = vadd.f32 %v4740_v24, %v2286_v10  ;;  %v4036_v10 = vld [vmem:[%s5083_s2 + $0x18] sm:$0xff]  }
0x35c6   :  { %v3889_v51 = vpop.f32.mrf.mxu1  ;;  %3915 = vmatprep.subr.bf16.mxu1 %v4036_v10 }
0x35c7   :  { %4162 = vtanh.f32 %v2292_v52  ;;  %v2293_v3 = vmul.f32 0.5, %v2292_v52 }
0x35c8   :  { %v2289_v53 = vpop.f32.mrf.mxu1 }
0x35c9   :  { %4164 = vtanh.f32 %v2293_v3 }
0x35ca   :  { %v3890_v55 = vpop.f32.mrf.mxu1 }
0x35d4   :  { %v4163_v57 = vpop.eup %4162 }
0x35d5   :  { %2300 = vrot.lane.b32.xlu0 %v4163_v57, %s4279_s24 }
0x35d6   :  { %v4165_v45 = vpop.eup %4164 }
0x35d7   :  { %v2295_v59 = vadd.f32 1.0, %v4165_v45 }
0x35d9   :  { %v2296_v61 = vmul.f32 0.5, %v2295_v59 }
0x35db   :  { %v2298_v1 = vmul.f32 %v2296_v61, %v2233_v44 }
0x3647   :  { %v2301_v62 = vpop.permute.xlu0 %2300 }
0x3648   :  { %v2303_v63 = vmul.f32 %v2301_v62, %v2296_v61  ;;  %v4863_v62 = vld [vmem:[#allocation4 + $0x38] sm:$0xff]  }
0x364a   :  { %2305 = vrot.lane.b32.xlu1 %v2303_v63, %s4285_s11  ;;  %v4868_v63 = vld [vmem:[#allocation4 + $0x30] sm:$0xff]  }
0x36bc   :  { %v2306_v2 = vpop.permute.xlu1 %2305 }
0x36bd   :  { %v2308_v8 = vadd.f32 %v2306_v2, %v2298_v1 }
0x36bf   :  { %4166 = vtanh.f32 %v2308_v8 }
0x36cc   :  { %v4167_v9 = vpop.eup %4166 }
0x36cd   :  { %2311 = vrot.lane.b32.xlu0 %v4167_v9, %s4279_s24 }
0x373f   :  { %v2312_v11 = vpop.permute.xlu0 %2311 }
0x3740   :  { %v4809_v12 = vmul.f32 %v2312_v11, %v2296_v61 }
0x3742   :  { %v2320_v13 = vpack.c.bf16 %v4809_v12, %v4809_v12 }
0x3744   :  { %2322 = vrot.lane.b32.xlu1 %v2320_v13, %s4285_s11 }
0x37b6   :  { %v2323_v6 = vpop.permute.xlu1 %2322 }
0x37b7   :  { %3896 = vmatmul.mubr.msk.bf16.vlgmr.msra.gmra.mxu0 %vm124_vm3, %v2323_v6 }
0x37b8   :  { %3908 = vmatpush3.bf16.msra.mxu0 %v4707_v15  ;;  %3911 = vmatprep.mubr.msk.bf16.mxu0 %vm4283_vm0, %v4282_v0 }
0x37b9   :  { %3909 = vmatprep.subr.bf16.mxu0 %v4282_v0 }
0x37bc   :  { %3910 = vmatpush3.bf16.msra.mxu0 %v4718_v16 }
0x37bd   :  { %3927 = vmatprep.subr.bf16.mxu0 %v4282_v0 }
0x3877   :  { %v2361_v32 = vpop.f32.mrf.mxu0 }
0x3878   :  { %v2367_v14 = vadd.f32 %v4740_v24, %v2361_v32 }
0x3879   :  { %v3897_v40 = vpop.f32.mrf.mxu0 }
0x387a   :  { %4168 = vtanh.f32 %v2367_v14  ;;  %v2368_v15 = vmul.f32 0.5, %v2367_v14 }
0x387b   :  { %v2364_v33 = vpop.f32.mrf.mxu0 }
0x387c   :  { %4170 = vtanh.f32 %v2368_v15 }
0x387d   :  { %v3898_v17 = vpop.f32.mrf.mxu0 }
0x3887   :  { %v4169_v18 = vpop.eup %4168 }
0x3888   :  { %2375 = vrot.lane.b32.xlu0 %v4169_v18, %s4279_s24 }
0x3889   :  { %v4171_v60 = vpop.eup %4170 }
0x388a   :  { %v2370_v19 = vadd.f32 1.0, %v4171_v60 }
0x388c   :  { %v2371_v31 = vmul.f32 0.5, %v2370_v19 }
0x388e   :  { %v2373_v16 = vmul.f32 %v2371_v31, %v2308_v8 }
0x38fa   :  { %v2376_v4 = vpop.permute.xlu0 %2375 }
0x38fb   :  { %v2378_v27 = vmul.f32 %v2376_v4, %v2371_v31 }
0x38fd   :  { %2380 = vrot.lane.b32.xlu1 %v2378_v27, %s4285_s11 }
0x396f   :  { %v2381_v20 = vpop.permute.xlu1 %2380 }
0x3970   :  { %v2383_v23 = vadd.f32 %v2381_v20, %v2373_v16 }
0x3972   :  { %4172 = vtanh.f32 %v2383_v23 }
0x397f   :  { %v4173_v25 = vpop.eup %4172 }
0x3980   :  { %2386 = vrot.lane.b32.xlu0 %v4173_v25, %s4279_s24 }
0x39f2   :  { %v2387_v58 = vpop.permute.xlu0 %2386 }
0x39f3   :  { %v4825_v54 = vmul.f32 %v2387_v58, %v2371_v31 }
0x39f5   :  { %v2395_v29 = vpack.c.bf16 %v4825_v54, %v4825_v54 }
0x39f7   :  { %2397 = vrot.lane.b32.xlu1 %v2395_v29, %s4285_s11 }
0x3a69   :  { %v2398_v21 = vpop.permute.xlu1 %2397 }
0x3a6a   :  { %3904 = vmatmul.mubr.msk.bf16.vlgmr.msra.gmra.mxu1 %vm124_vm3, %v2398_v21 }
0x3a6b   :  { %3916 = vmatpush3.bf16.msra.mxu1 %v4036_v10 }
0x3b2a   :  { %v2436_v30 = vpop.f32.mrf.mxu1 }
0x3b2b   :  { %v2442_v34 = vadd.f32 %v4740_v24, %v2436_v30 }
0x3b2c   :  { %v3905_v22 = vpop.f32.mrf.mxu1 }
0x3b2d   :  { %4174 = vtanh.f32 %v2442_v34  ;;  %v2443_v37 = vmul.f32 0.5, %v2442_v34 }
0x3b2e   :  { %v2439_v35 = vpop.f32.mrf.mxu1 }
0x3b2f   :  { %4176 = vtanh.f32 %v2443_v37 }
0x3b30   :  { %v3906_v36 = vpop.f32.mrf.mxu1 }
0x3b3a   :  { %v4175_v56 = vpop.eup %4174 }
0x3b3b   :  { %2450 = vrot.lane.b32.xlu0 %v4175_v56, %s4279_s24 }
0x3b3c   :  { %v4177_v38 = vpop.eup %4176 }
0x3b3d   :  { %v2445_v39 = vadd.f32 1.0, %v4177_v38 }
0x3b3f   :  { %v2446_v41 = vmul.f32 0.5, %v2445_v39 }
0x3b41   :  { %v2448_v44 = vmul.f32 %v2446_v41, %v2383_v23 }
0x3bad   :  { %v2451_v42 = vpop.permute.xlu0 %2450 }
0x3bae   :  { %v2453_v43 = vmul.f32 %v2451_v42, %v2446_v41 }
0x3bb0   :  { %2455 = vrot.lane.b32.xlu1 %v2453_v43, %s4285_s11 }
0x3bb4   :  { %2016 = vrot.lane.b32.xlu1 %v4746_v46, %s4285_s11  ;;  %v4037_v46 = vld [vmem:[%s5083_s2 + $0x10] sm:$0xff]  }
0x3bb5   :  { %3917 = vmatprep.subr.bf16.mxu1 %v4037_v46 }
0x3bb6   :  { %3918 = vmatpush3.bf16.msra.mxu1 %v4037_v46 }
0x3bb7   :  { %3943 = vmatprep.subr.bf16.mxu1 %v4282_v0 }
0x3bb8   :  { %2166 = vrot.lane.b32.xlu1 %v4778_v28, %s4285_s11 }
0x3c22   :  { %v2456_v7 = vpop.permute.xlu1 %2455 }
0x3c23   :  { %v4838_v47 = vadd.f32 %v2456_v7, %v2448_v44 }
0x3c25   :  { %4178 = vtanh.f32 %v4838_v47 }
0x3c26   :  { %v2017_v49 = vpop.permute.xlu1 %2016 }
0x3c27   :  { %2019 = vst.msk [vmem:[#allocation3] sm:$0xff] %vm124_vm3, %v2017_v49 }
0x3c2a   :  { %v2167_v50 = vpop.permute.xlu1 %2166 }
0x3c2b   :  { %2169 = vst.msk [vmem:[#allocation3 + $0x10] sm:$0xff] %vm124_vm3, %v2167_v50 }
0x3c2e   :  { %v2551_v3 = vld [vmem:[#allocation3] sm:$0xff] }
0x3c32   :  { %v4179_v28 = vpop.eup %4178 }
0x3c33   :  { %2461 = vrot.lane.b32.xlu0 %v4179_v28, %s4279_s24 }
0x3c37   :  { %2091 = vrot.lane.b32.xlu0 %v4762_v5, %s4285_s11 }
0x3c3b   :  { %2241 = vrot.lane.b32.xlu0 %v4794_v48, %s4285_s11  ;;  %v2553_v48 = vld [vmem:[#allocation3 + $0x10] sm:$0xff] }
0x3ca5   :  { %v2462_v52 = vpop.permute.xlu0 %2461 }
0x3ca6   :  { %v4855_v51 = vmul.f32 %v2462_v52, %v2446_v41 }
0x3ca8   :  { %v2470_v53 = vpack.c.bf16 %v4855_v51, %v4855_v51 }
0x3ca9   :  { %v2092_v55 = vpop.permute.xlu0 %2091 }
0x3caa   :  { %2094 = vst.msk [vmem:[#allocation3 + $0x8] sm:$0xff] %vm124_vm3, %v2092_v55  ;;  %2472 = vrot.lane.b32.xlu1 %v2470_v53, %s4285_s11 }
0x3cad   :  { %v2242_v57 = vpop.permute.xlu0 %2241 }
0x3cae   :  { %2244 = vst.msk [vmem:[#allocation3 + $0x18] sm:$0xff] %vm124_vm3, %v2242_v57 }
0x3cb1   :  { %v2552_v45 = vld [vmem:[#allocation3 + $0x8] sm:$0xff] }
0x3cb2   :  { %v2559_v5 = vpack.c.bf16 %v2552_v45, %v2551_v3 }
0x3cb4   :  { %3919 = vmatprep.mubr.msk.bf16.mxu1 %vm124_vm3, %v2559_v5 }
0x3cb5   :  { %v2554_v59 = vld [vmem:[#allocation3 + $0x18] sm:$0xff] }
0x3cb6   :  { %v2560_v61 = vpack.c.bf16 %v2554_v59, %v2553_v48 }
0x3cb8   :  { %3920 = vmatmul.mubr.msk.bf16.vlgmr.msra.gmra.mxu1 %vm124_vm3, %v2560_v61 }
0x3cb9   :  { %3944 = vmatpush3.bf16.msra.mxu1 %v4863_v62 }
0x3cba   :  { %3945 = vmatprep.subr.bf16.mxu1 %v4282_v0 }
0x3cbd   :  { %3946 = vmatpush3.bf16.msra.mxu1 %v4868_v63 }
0x3cbe   :  { %3959 = vmatprep.subr.bf16.mxu1 %v4282_v0 }
0x3d1c   :  { %v2473_v1 = vpop.permute.xlu1 %2472 }
0x3d1d   :  { %3912 = vmatmul.mubr.msk.bf16.vlgmr.msra.gmra.mxu0 %vm124_vm3, %v2473_v1 }
0x3d1e   :  { %3928 = vmatpush3.bf16.msra.mxu0 %v4863_v62  ;;  %3931 = vmatprep.mubr.msk.bf16.mxu0 %vm4283_vm0, %v4282_v0 }
0x3d1f   :  { %3929 = vmatprep.subr.bf16.mxu0 %v4282_v0 }
0x3d22   :  { %3930 = vmatpush3.bf16.msra.mxu0 %v4868_v63 }
0x3d23   :  { %3935 = vmatprep.subr.bf16.mxu0 %v4282_v0 }
0x3d25   :  { %3932 = vmatmul.mubr.msk.bf16.vlgmr.msra.gmra.mxu0 %vm124_vm3, %v4727_v26  ;;  %v4892_v26 = vld [vmem:[%s5085_s4 + $0x3] ss:$0 sm:$0xff] }
0x3d26   :  { %3936 = vmatpush3.bf16.msra.mxu0 %v4863_v62  ;;  %3939 = vmatprep.mubr.msk.bf16.mxu0 %vm4283_vm0, %v4282_v0 }
0x3d27   :  { %3937 = vmatprep.subr.bf16.mxu0 %v4282_v0 }
0x3d2a   :  { %3938 = vmatpush3.bf16.msra.mxu0 %v4868_v63 }
0x3d2b   :  { %3951 = vmatprep.subr.bf16.mxu0 %v4282_v0 }
0x3d78   :  { %v4887_v2 = vpop.f32.mrf.mxu1 }
0x3d7a   :  { %v2625_v11 = vpop.f32.mrf.mxu1 }
0x3d7b   :  { %v2626_v32 = vadd.f32 %v4892_v26, %v2625_v11 }
0x3d7c   :  { %v4921_v50 = vpop.f32.mrf.mxu1 }
0x3d7e   :  { %v2628_v10 = vpop.f32.mrf.mxu1 }
0x3d7f   :  { %v2629_v46 = vadd.f32 %v4892_v26, %v2628_v10 }
0x3ddd   :  { %v2511_v8 = vpop.f32.mrf.mxu0 }
0x3dde   :  { %v2517_v58 = vadd.f32 %v4740_v24, %v2511_v8 }
0x3ddf   :  { %v3913_v9 = vpop.f32.mrf.mxu0 }
0x3de0   :  { %v2518_v30 = vmul.f32 0.5, %v2517_v58 }
0x3de1   :  { %v2514_v13 = vpop.f32.mrf.mxu0 }
0x3de3   :  { %v3914_v6 = vpop.f32.mrf.mxu0 }
0x3de5   :  { %v2716_v14 = vpop.f32.mrf.mxu0 }
0x3de6   :  { %v2722_v40 = vadd.f32 %v2716_v14, %v2626_v32 }
0x3de7   :  { %v3933_v33 = vpop.f32.mrf.mxu0 }
0x3de8   :  { %4180 = vtanh.f32 %v2722_v40  ;;  %v2723_v60 = vmul.f32 0.5, %v2722_v40 }
0x3de9   :  { %v2719_v17 = vpop.f32.mrf.mxu0 }
0x3dea   :  { %4182 = vtanh.f32 %v2723_v60 }
0x3deb   :  { %v3934_v18 = vpop.f32.mrf.mxu0 }
0x3df5   :  { %v4181_v15 = vpop.eup %4180 }
0x3df6   :  { %2730 = vrot.lane.b32.xlu0 %v4181_v15, %s4279_s24 }
0x3df7   :  { %v4183_v19 = vpop.eup %4182 }
0x3df8   :  { %v2725_v31 = vadd.f32 1.0, %v4183_v19 }
0x3dfa   :  { %v2726_v4 = vmul.f32 0.5, %v2725_v31 }
0x3dfc   :  { %v2728_v20 = vmul.f32 0.0, %v2726_v4 }
0x3e68   :  { %v2731_v27 = vpop.permute.xlu0 %2730 }
0x3e69   :  { %v2733_v16 = vmul.f32 %v2731_v27, %v2726_v4 }
0x3e6b   :  { %2735 = vrot.lane.b32.xlu1 %v2733_v16, %s4285_s11 }
0x3edd   :  { %v2736_v23 = vpop.permute.xlu1 %2735 }
0x3ede   :  { %v2738_v25 = vadd.f32 %v2736_v23, %v2728_v20  ;;  %v2634_v20 = vadd.f32 %v4887_v2, %v4892_v26 }
0x3ee0   :  { %4184 = vtanh.f32 %v2738_v25 }
0x3ee1   :  { %4186 = vtanh.f32 %v2517_v58 }
0x3ee2   :  { %4188 = vtanh.f32 %v2518_v30 }
0x3eed   :  { %v4185_v29 = vpop.eup %4184 }
0x3eee   :  { %2741 = vrot.lane.b32.xlu0 %v4185_v29, %s4279_s24  ;;  %v4187_v21 = vpop.eup %4186 }
0x3eef   :  { %v4189_v34 = vpop.eup %4188 }
0x3ef0   :  { %v2520_v22 = vadd.f32 1.0, %v4189_v34 }
0x3ef2   :  { %2525 = vrot.lane.b32.xlu0 %v4187_v21, %s4279_s24  ;;  %v2521_v37 = vmul.f32 0.5, %v2520_v22 }
0x3ef4   :  { %v2523_v41 = vmul.f32 %v2521_v37, %v4838_v47 }
0x3f60   :  { %v2742_v35 = vpop.permute.xlu0 %2741 }
0x3f61   :  { %v4900_v36 = vmul.f32 %v2742_v35, %v2726_v4 }
0x3f63   :  { %v2751_v56 = vpack.c.bf16 %v4900_v36, %v4900_v36 }
0x3f64   :  { %v2526_v24 = vpop.permute.xlu0 %2525 }
0x3f65   :  { %v2528_v38 = vmul.f32 %v2526_v24, %v2521_v37  ;;  %2753 = vrot.lane.b32.xlu1 %v2751_v56, %s4285_s11 }
0x3f67   :  { %2530 = vrot.lane.b32.xlu0 %v2528_v38, %s4285_s11 }
0x3fd7   :  { %v2754_v39 = vpop.permute.xlu1 %2753 }
0x3fd8   :  { %3940 = vmatmul.mubr.msk.bf16.vlgmr.msra.gmra.mxu0 %vm124_vm3, %v2754_v39 }
0x3fd9   :  { %v2531_v42 = vpop.permute.xlu0 %2530  ;;  %3952 = vmatpush3.bf16.msra.mxu0 %v4863_v62  ;;  %3955 = vmatprep.mubr.msk.bf16.mxu0 %vm4283_vm0, %v4282_v0 }
0x3fda   :  { %v2533_v43 = vadd.f32 %v2531_v42, %v2523_v41  ;;  %3953 = vmatprep.subr.bf16.mxu0 %v4282_v0 }
0x3fdc   :  { %4190 = vtanh.f32 %v2533_v43 }
0x3fdd   :  { %3954 = vmatpush3.bf16.msra.mxu0 %v4868_v63 }
0x3fde   :  { %3967 = vmatprep.subr.bf16.mxu0 %v4282_v0 }
0x3fe9   :  { %v4191_v44 = vpop.eup %4190 }
0x3fea   :  { %2536 = vrot.lane.b32.xlu0 %v4191_v44, %s4279_s24 }
0x3fee   :  { %2316 = vrot.lane.b32.xlu0 %v4809_v12, %s4285_s11 }
0x3ff2   :  { %2466 = vrot.lane.b32.xlu0 %v4855_v51, %s4285_s11 }
0x405c   :  { %v2537_v7 = vpop.permute.xlu0 %2536 }
0x405d   :  { %v2539_v11 = vmul.f32 %v2537_v7, %v2521_v37 }
0x4060   :  { %v2317_v47 = vpop.permute.xlu0 %2316 }
0x4061   :  { %2319 = vst.msk [vmem:[#allocation3 + $0x20] sm:$0xff] %vm124_vm3, %v2317_v47  ;;  %v2637_v47 = vadd.f32 %v4921_v50, %v4892_v26 }
0x4064   :  { %v2467_v49 = vpop.permute.xlu0 %2466 }
0x4065   :  { %2469 = vst.msk [vmem:[#allocation3 + $0x30] sm:$0xff] %vm124_vm3, %v2467_v49 }
0x4068   :  { %v2555_v33 = vld [vmem:[#allocation3 + $0x20] sm:$0xff] }
0x406c   :  { %v2557_v18 = vld [vmem:[#allocation3 + $0x30] sm:$0xff] }
0x4098   :  { %v2792_v28 = vpop.f32.mrf.mxu0 }
0x4099   :  { %v2798_v52 = vadd.f32 %v2792_v28, %v2629_v46 }
0x409a   :  { %v3941_v53 = vpop.f32.mrf.mxu0 }
0x409b   :  { %4192 = vtanh.f32 %v2798_v52  ;;  %v2799_v51 = vmul.f32 0.5, %v2798_v52 }
0x409c   :  { %v2795_v12 = vpop.f32.mrf.mxu0 }
0x409d   :  { %4194 = vtanh.f32 %v2799_v51 }
0x409e   :  { %v3942_v55 = vpop.f32.mrf.mxu0 }
0x40a8   :  { %v4193_v57 = vpop.eup %4192 }
0x40a9   :  { %2806 = vrot.lane.b32.xlu1 %v4193_v57, %s4279_s24 }
0x40aa   :  { %v4195_v3 = vpop.eup %4194 }
0x40ab   :  { %v2801_v45 = vadd.f32 1.0, %v4195_v3 }
0x40ad   :  { %v2802_v5 = vmul.f32 0.5, %v2801_v45 }
0x40af   :  { %v2804_v61 = vmul.f32 %v2802_v5, %v2738_v25 }
0x411b   :  { %v2807_v48 = vpop.permute.xlu1 %2806 }
0x411c   :  { %v2809_v59 = vmul.f32 %v2807_v48, %v2802_v5 }
0x411e   :  { %2811 = vrot.lane.b32.xlu1 %v2809_v59, %s4285_s11 }
0x4190   :  { %v2812_v1 = vpop.permute.xlu1 %2811 }
0x4191   :  { %v2814_v8 = vadd.f32 %v2812_v1, %v2804_v61 }
0x4193   :  { %4196 = vtanh.f32 %v2814_v8 }
0x41a0   :  { %v4197_v9 = vpop.eup %4196 }
0x41a1   :  { %2817 = vrot.lane.b32.xlu1 %v4197_v9, %s4279_s24 }
0x41a5   :  { %2391 = vrot.lane.b32.xlu1 %v4825_v54, %s4285_s11 }
0x41a9   :  { %2541 = vrot.lane.b32.xlu1 %v2539_v11, %s4285_s11 }
0x4213   :  { %v2818_v13 = vpop.permute.xlu1 %2817 }
0x4214   :  { %v4930_v6 = vmul.f32 %v2818_v13, %v2802_v5 }
0x4216   :  { %v2827_v32 = vpack.c.bf16 %v4930_v6, %v4930_v6 }
0x4217   :  { %v2392_v14 = vpop.permute.xlu1 %2391 }
0x4218   :  { %2394 = vst.msk [vmem:[#allocation3 + $0x28] sm:$0xff] %vm124_vm3, %v2392_v14  ;;  %2829 = vrot.lane.b32.xlu0 %v2827_v32, %s4285_s11 }
0x421b   :  { %v2542_v40 = vpop.permute.xlu1 %2541 }
0x421c   :  { %2544 = vst.msk [vmem:[#allocation3 + $0x38] sm:$0xff] %vm124_vm3, %v2542_v40 }
0x421f   :  { %v2556_v17 = vld [vmem:[#allocation3 + $0x28] sm:$0xff] }
0x4220   :  { %v2561_v54 = vpack.c.bf16 %v2556_v17, %v2555_v33 }
0x4222   :  { %3923 = vmatprep.mubr.msk.bf16.mxu1 %vm124_vm3, %v2561_v54 }
0x4223   :  { %v2558_v15 = vld [vmem:[#allocation3 + $0x38] sm:$0xff] }
0x4224   :  { %v2562_v60 = vpack.c.bf16 %v2558_v15, %v2557_v18 }
0x4226   :  { %3924 = vmatmul.mubr.msk.bf16.gmra.mxu1 %vm124_vm3, %v2562_v60 }
0x4227   :  { %3947 = vmatprep.mubr.msk.bf16.mxu1 %vm4283_vm0, %v4282_v0 }
0x428a   :  { %v2830_v19 = vpop.permute.xlu0 %2829 }
0x428b   :  { %3948 = vmatmul.mubr.msk.bf16.vlgmr.msra.gmra.mxu1 %vm124_vm3, %v2830_v19 }
0x428c   :  { %3960 = vmatpush3.bf16.msra.mxu1 %v4863_v62  ;;  %3963 = vmatprep.mubr.msk.bf16.mxu1 %vm4283_vm0, %v4282_v0 }
0x428d   :  { %3961 = vmatprep.subr.bf16.mxu1 %v4282_v0 }
0x4290   :  { %3962 = vmatpush3.bf16.msra.mxu1 %v4868_v63 }
0x4291   :  { %3975 = vmatprep.subr.bf16.mxu1 %v4282_v0 }
0x42e6   :  { %v4948_v31 = vpop.f32.mrf.mxu1 }
0x42e8   :  { %v4950_v4 = vpop.f32.mrf.mxu1 }
0x42e9   :  { %v2642_v11 = vadd.f32 %v4892_v26, %v4950_v4 }
0x42ea   :  { %v4952_v27 = vpop.f32.mrf.mxu1 }
0x42ec   :  { %v4954_v16 = vpop.f32.mrf.mxu1 }
0x434b   :  { %v2868_v23 = vpop.f32.mrf.mxu1 }
0x434c   :  { %v2874_v25 = vadd.f32 %v2868_v23, %v2634_v20 }
0x434d   :  { %v3949_v58 = vpop.f32.mrf.mxu1 }
0x434e   :  { %4198 = vtanh.f32 %v2874_v25  ;;  %v2875_v34 = vmul.f32 0.5, %v2874_v25 }
0x434f   :  { %v2871_v29 = vpop.f32.mrf.mxu1 }
0x4350   :  { %4200 = vtanh.f32 %v2875_v34 }
0x4351   :  { %v3950_v21 = vpop.f32.mrf.mxu1 }
0x435b   :  { %v4199_v30 = vpop.eup %4198 }
0x435c   :  { %2882 = vrot.lane.b32.xlu1 %v4199_v30, %s4279_s24 }
0x435d   :  { %v4201_v22 = vpop.eup %4200 }
0x435e   :  { %v2877_v35 = vadd.f32 1.0, %v4201_v22  ;;  %v2645_v22 = vadd.f32 %v4892_v26, %v4954_v16 }
0x4360   :  { %v2878_v56 = vmul.f32 0.5, %v2877_v35 }
0x4362   :  { %v2880_v38 = vmul.f32 %v2878_v56, %v2814_v8 }
0x43ce   :  { %v2883_v37 = vpop.permute.xlu1 %2882 }
0x43cf   :  { %v2885_v24 = vmul.f32 %v2883_v37, %v2878_v56 }
0x43d1   :  { %2887 = vrot.lane.b32.xlu0 %v2885_v24, %s4285_s11 }
0x4443   :  { %v2888_v2 = vpop.permute.xlu0 %2887 }
0x4444   :  { %v2890_v39 = vadd.f32 %v2888_v2, %v2880_v38 }
0x4446   :  { %4202 = vtanh.f32 %v2890_v39 }
0x4453   :  { %v4203_v41 = vpop.eup %4202 }
0x4454   :  { %2893 = vrot.lane.b32.xlu1 %v4203_v41, %s4279_s24 }
0x44c6   :  { %v2894_v42 = vpop.permute.xlu1 %2893 }
0x44c7   :  { %v4961_v43 = vmul.f32 %v2894_v42, %v2878_v56 }
0x44c9   :  { %v2903_v44 = vpack.c.bf16 %v4961_v43, %v4961_v43 }
0x44cb   :  { %2905 = vrot.lane.b32.xlu0 %v2903_v44, %s4285_s11 }
0x453d   :  { %v2906_v7 = vpop.permute.xlu0 %2905 }
0x453e   :  { %3956 = vmatmul.mubr.msk.bf16.vlgmr.msra.gmra.mxu0 %vm124_vm3, %v2906_v7 }
0x453f   :  { %3968 = vmatpush3.bf16.msra.mxu0 %v4863_v62  ;;  %3971 = vmatprep.mubr.msk.bf16.mxu0 %vm4283_vm0, %v4282_v0 }
0x4540   :  { %3969 = vmatprep.subr.bf16.mxu0 %v4282_v0 }
0x4543   :  { %3970 = vmatpush3.bf16.msra.mxu0 %v4868_v63 }
0x4544   :  { %3983 = vmatprep.subr.bf16.mxu0 %v4282_v0 }
0x45fe   :  { %v2944_v49 = vpop.f32.mrf.mxu0 }
0x45ff   :  { %v2950_v10 = vadd.f32 %v2944_v49, %v2637_v47 }
0x4600   :  { %v3957_v46 = vpop.f32.mrf.mxu0 }
0x4601   :  { %4204 = vtanh.f32 %v2950_v10  ;;  %v2951_v12 = vmul.f32 0.5, %v2950_v10 }
0x4602   :  { %v2947_v28 = vpop.f32.mrf.mxu0 }
0x4603   :  { %4206 = vtanh.f32 %v2951_v12 }
0x4604   :  { %v3958_v52 = vpop.f32.mrf.mxu0 }
0x4605   :  { %v2650_v52 = vadd.f32 %v4948_v31, %v4892_v26 }
0x460e   :  { %v4205_v53 = vpop.eup %4204 }
0x460f   :  { %2958 = vrot.lane.b32.xlu1 %v4205_v53, %s4279_s24 }
0x4610   :  { %v4207_v55 = vpop.eup %4206 }
0x4611   :  { %v2953_v57 = vadd.f32 1.0, %v4207_v55 }
0x4613   :  { %v2954_v51 = vmul.f32 0.5, %v2953_v57 }
0x4615   :  { %v2956_v5 = vmul.f32 %v2954_v51, %v2890_v39 }
0x4681   :  { %v2959_v3 = vpop.permute.xlu1 %2958 }
0x4682   :  { %v2961_v45 = vmul.f32 %v2959_v3, %v2954_v51 }
0x4684   :  { %2963 = vrot.lane.b32.xlu0 %v2961_v45, %s4285_s11 }
0x46f6   :  { %v2964_v50 = vpop.permute.xlu0 %2963 }
0x46f7   :  { %v2966_v48 = vadd.f32 %v2964_v50, %v2956_v5 }
0x46f9   :  { %4208 = vtanh.f32 %v2966_v48 }
0x4706   :  { %v4209_v59 = vpop.eup %4208 }
0x4707   :  { %2969 = vrot.lane.b32.xlu1 %v4209_v59, %s4279_s24 }
0x4779   :  { %v2970_v61 = vpop.permute.xlu1 %2969 }
0x477a   :  { %v4978_v1 = vmul.f32 %v2970_v61, %v2954_v51 }
0x477c   :  { %v2979_v8 = vpack.c.bf16 %v4978_v1, %v4978_v1 }
0x477e   :  { %2981 = vrot.lane.b32.xlu0 %v2979_v8, %s4285_s11 }
0x47f0   :  { %v2982_v9 = vpop.permute.xlu0 %2981 }
0x47f1   :  { %3964 = vmatmul.mubr.msk.bf16.vlgmr.msra.gmra.mxu1 %vm124_vm3, %v2982_v9 }
0x47f2   :  { %3976 = vmatpush3.bf16.msra.mxu1 %v4863_v62  ;;  %3979 = vmatprep.mubr.msk.bf16.mxu1 %vm4283_vm0, %v4282_v0 }
0x47f3   :  { %3977 = vmatprep.subr.bf16.mxu1 %v4282_v0 }
0x47f6   :  { %3978 = vmatpush3.bf16.msra.mxu1 %v4868_v63 }
0x48b1   :  { %v3020_v13 = vpop.f32.mrf.mxu1 }
0x48b2   :  { %v3026_v32 = vadd.f32 %v3020_v13, %v2642_v11 }
0x48b3   :  { %v3965_v14 = vpop.f32.mrf.mxu1 }
0x48b4   :  { %4210 = vtanh.f32 %v3026_v32  ;;  %v3027_v54 = vmul.f32 0.5, %v3026_v32 }
0x48b5   :  { %v3023_v40 = vpop.f32.mrf.mxu1 }
0x48b6   :  { %4212 = vtanh.f32 %v3027_v54 }
0x48b7   :  { %v3966_v33 = vpop.f32.mrf.mxu1 }
0x48b8   :  { %v2653_v33 = vadd.f32 %v4952_v27, %v4892_v26 }
0x48c1   :  { %v4211_v17 = vpop.eup %4210 }
0x48c2   :  { %3034 = vrot.lane.b32.xlu1 %v4211_v17, %s4279_s24 }
0x48c3   :  { %v4213_v18 = vpop.eup %4212 }
0x48c4   :  { %v3029_v15 = vadd.f32 1.0, %v4213_v18 }
0x48c6   :  { %v3030_v60 = vmul.f32 0.5, %v3029_v15 }
0x48c8   :  { %v3032_v23 = vmul.f32 %v3030_v60, %v2966_v48 }
0x4934   :  { %v3035_v19 = vpop.permute.xlu1 %3034 }
0x4935   :  { %v3037_v20 = vmul.f32 %v3035_v19, %v3030_v60 }
0x4937   :  { %3039 = vrot.lane.b32.xlu0 %v3037_v20, %s4285_s11 }
0x49a9   :  { %v3040_v4 = vpop.permute.xlu0 %3039 }
0x49aa   :  { %v3042_v25 = vadd.f32 %v3040_v4, %v3032_v23 }
0x49ac   :  { %4214 = vtanh.f32 %v3042_v25 }
0x49b9   :  { %v4215_v58 = vpop.eup %4214 }
0x49ba   :  { %3045 = vrot.lane.b32.xlu1 %v4215_v58, %s4279_s24 }
0x4a2c   :  { %v3046_v29 = vpop.permute.xlu1 %3045 }
0x4a2d   :  { %v4994_v21 = vmul.f32 %v3046_v29, %v3030_v60 }
0x4a2f   :  { %v3055_v30 = vpack.c.bf16 %v4994_v21, %v4994_v21 }
0x4a31   :  { %3057 = vrot.lane.b32.xlu0 %v3055_v30, %s4285_s11 }
0x4aa3   :  { %v3058_v34 = vpop.permute.xlu0 %3057 }
0x4aa4   :  { %3972 = vmatmul.mubr.msk.bf16.vlgmr.msra.gmra.mxu0 %vm124_vm3, %v3058_v34 }
0x4aa5   :  { %3984 = vmatpush3.bf16.msra.mxu0 %v4863_v62  ;;  %3987 = vmatprep.mubr.msk.bf16.mxu0 %vm4283_vm0, %v4282_v0 }
0x4aa6   :  { %3985 = vmatprep.subr.bf16.mxu0 %v4282_v0 }
0x4aa9   :  { %3986 = vmatpush3.bf16.msra.mxu0 %v4868_v63 }
0x4b64   :  { %v3096_v35 = vpop.f32.mrf.mxu0 }
0x4b65   :  { %v3102_v56 = vadd.f32 %v3096_v35, %v2645_v22 }
0x4b66   :  { %v3973_v37 = vpop.f32.mrf.mxu0 }
0x4b67   :  { %4216 = vtanh.f32 %v3102_v56  ;;  %v3103_v62 = vmul.f32 0.5, %v3102_v56  ;;  %v4041_v56 = vld [vmem:[#allocation6 + $0x80] sm:$0xff]  }
0x4b68   :  { %v3099_v24 = vpop.f32.mrf.mxu0 }
0x4b69   :  { %4218 = vtanh.f32 %v3103_v62 }
0x4b6a   :  { %v3974_v38 = vpop.f32.mrf.mxu0 }
0x4b74   :  { %v4217_v2 = vpop.eup %4216 }
0x4b75   :  { %3110 = vrot.lane.b32.xlu1 %v4217_v2, %s4279_s24 }
0x4b76   :  { %v4219_v39 = vpop.eup %4218 }
0x4b77   :  { %v3105_v41 = vadd.f32 1.0, %v4219_v39 }
0x4b79   :  { %v3106_v42 = vmul.f32 0.5, %v3105_v41 }
0x4b7b   :  { %v3108_v63 = vmul.f32 %v3106_v42, %v3042_v25 }
0x4be7   :  { %v3111_v0 = vpop.permute.xlu1 %3110 }
0x4be8   :  { %v3113_v44 = vmul.f32 %v3111_v0, %v3106_v42 }
0x4bea   :  { %3115 = vrot.lane.b32.xlu0 %v3113_v44, %s4285_s11 }
0x4c5c   :  { %v3116_v16 = vpop.permute.xlu0 %3115 }
0x4c5d   :  { %v3118_v7 = vadd.f32 %v3116_v16, %v3108_v63 }
0x4c5f   :  { %4220 = vtanh.f32 %v3118_v7 }
0x4c6c   :  { %v4221_v47 = vpop.eup %4220 }
0x4c6d   :  { %3121 = vrot.lane.b32.xlu1 %v4221_v47, %s4279_s24 }
0x4cdf   :  { %v3122_v49 = vpop.permute.xlu1 %3121 }
0x4ce0   :  { %v5010_v10 = vmul.f32 %v3122_v49, %v3106_v42 }
0x4ce2   :  { %v3131_v46 = vpack.c.bf16 %v5010_v10, %v5010_v10 }
0x4ce4   :  { %3133 = vrot.lane.b32.xlu0 %v3131_v46, %s4285_s11  ;;  %v3486_v46 = vld [vmem:[%s5085_s4 + $0x6] ss:$0 sm:$0xff] }
0x4d56   :  { %v3134_v28 = vpop.permute.xlu0 %3133 }
0x4d57   :  { %3980 = vmatmul.mubr.msk.bf16.vlgmr.msra.gmra.mxu1 %vm124_vm3, %v3134_v28 }
0x4e17   :  { %v3172_v53 = vpop.f32.mrf.mxu1 }
0x4e18   :  { %v3178_v12 = vadd.f32 %v3172_v53, %v2650_v52 }
0x4e19   :  { %v3981_v55 = vpop.f32.mrf.mxu1 }
0x4e1a   :  { %4222 = vtanh.f32 %v3178_v12  ;;  %v3179_v45 = vmul.f32 0.5, %v3178_v12 }
0x4e1b   :  { %v3175_v57 = vpop.f32.mrf.mxu1 }
0x4e1c   :  { %4224 = vtanh.f32 %v3179_v45 }
0x4e1d   :  { %v3982_v51 = vpop.f32.mrf.mxu1 }
0x4e27   :  { %v4223_v3 = vpop.eup %4222 }
0x4e28   :  { %3186 = vrot.lane.b32.xlu1 %v4223_v3, %s4279_s24 }
0x4e29   :  { %v4225_v5 = vpop.eup %4224 }
0x4e2a   :  { %v3181_v50 = vadd.f32 1.0, %v4225_v5 }
0x4e2c   :  { %v3182_v48 = vmul.f32 0.5, %v3181_v50 }
0x4e2e   :  { %v3184_v8 = vmul.f32 %v3182_v48, %v3118_v7 }
0x4e9a   :  { %v3187_v59 = vpop.permute.xlu1 %3186 }
0x4e9b   :  { %v3189_v61 = vmul.f32 %v3187_v59, %v3182_v48 }
0x4e9d   :  { %3191 = vrot.lane.b32.xlu0 %v3189_v61, %s4285_s11 }
0x4f0f   :  { %v3192_v31 = vpop.permute.xlu0 %3191 }
0x4f10   :  { %v3194_v9 = vadd.f32 %v3192_v31, %v3184_v8 }
0x4f12   :  { %4226 = vtanh.f32 %v3194_v9 }
0x4f1f   :  { %v4227_v11 = vpop.eup %4226 }
0x4f20   :  { %3197 = vrot.lane.b32.xlu1 %v4227_v11, %s4279_s24 }
0x4f92   :  { %v3198_v13 = vpop.permute.xlu1 %3197 }
0x4f93   :  { %v3200_v32 = vmul.f32 %v3198_v13, %v3182_v48 }
0x4f95   :  { %v3207_v14 = vpack.c.bf16 %v3200_v32, %v3200_v32 }
0x4f97   :  { %3209 = vrot.lane.b32.xlu0 %v3207_v14, %s4285_s11 }
0x5009   :  { %v3210_v40 = vpop.permute.xlu0 %3209 }
0x500a   :  { %3988 = vmatmul.mubr.msk.bf16.vlgmr.msra.gmra.mxu0 %vm124_vm3, %v3210_v40 }
0x50ca   :  { %v3248_v17 = vpop.f32.mrf.mxu0 }
0x50cb   :  { %v3254_v54 = vadd.f32 %v3248_v17, %v2653_v33 }
0x50cc   :  { %v3989_v18 = vpop.f32.mrf.mxu0 }
0x50cd   :  { %4228 = vtanh.f32 %v3254_v54  ;;  %v3255_v20 = vmul.f32 0.5, %v3254_v54 }
0x50ce   :  { %v3251_v15 = vpop.f32.mrf.mxu0 }
0x50cf   :  { %4230 = vtanh.f32 %v3255_v20 }
0x50d0   :  { %v3990_v60 = vpop.f32.mrf.mxu0 }
0x50da   :  { %v4229_v19 = vpop.eup %4228 }
0x50db   :  { %3262 = vrot.lane.b32.xlu1 %v4229_v19, %s4279_s24 }
0x50dc   :  { %v4231_v23 = vpop.eup %4230 }
0x50dd   :  { %v3257_v4 = vadd.f32 1.0, %v4231_v23 }
0x50df   :  { %v3258_v25 = vmul.f32 0.5, %v3257_v4 }
0x50e1   :  { %v3260_v26 = vmul.f32 %v3258_v25, %v3194_v9 }
0x514d   :  { %v3263_v58 = vpop.permute.xlu1 %3262 }
0x514e   :  { %v3265_v29 = vmul.f32 %v3263_v58, %v3258_v25 }
0x5150   :  { %3267 = vrot.lane.b32.xlu0 %v3265_v29, %s4285_s11 }
0x5154   :  { %2746 = vrot.lane.b32.xlu0 %v4900_v36, %s4285_s11  ;;  %v4040_v36 = vld [vmem:[#allocation6 + $0x88] sm:$0xff]  }
0x5155   :  { %3991 = vmatprep.subr.bf16.mxu1 %v4040_v36 }
0x5156   :  { %3992 = vmatpush3.bf16.msra.mxu1 %v4040_v36 }
0x5157   :  { %3993 = vmatprep.subr.bf16.mxu1 %v4041_v56 }
0x5158   :  { %2898 = vrot.lane.b32.xlu0 %v4961_v43, %s4285_s11 }
0x515a   :  { %3994 = vmatpush3.bf16.msra.mxu1 %v4041_v56 }
0x515c   :  { %3050 = vrot.lane.b32.xlu0 %v4994_v21, %s4285_s11 }
0x5160   :  { %3202 = vrot.lane.b32.xlu0 %v3200_v32, %s4285_s11 }
0x51c2   :  { %v3268_v27 = vpop.permute.xlu0 %3267 }
0x51c3   :  { %v3270_v30 = vadd.f32 %v3268_v27, %v3260_v26 }
0x51c5   :  { %4232 = vtanh.f32 %v3270_v30 }
0x51c6   :  { %v2747_v34 = vpop.permute.xlu0 %2746 }
0x51c7   :  { %2749 = vst.msk [vmem:[#allocation3] sm:$0xff] %vm124_vm3, %v2747_v34 }
0x51ca   :  { %v2899_v22 = vpop.permute.xlu0 %2898 }
0x51cb   :  { %2901 = vst.msk [vmem:[#allocation3 + $0x10] sm:$0xff] %vm124_vm3, %v2899_v22 }
0x51ce   :  { %v3051_v35 = vpop.permute.xlu0 %3050  ;;  %v3288_v39 = vld [vmem:[#allocation3] sm:$0xff] }
0x51cf   :  { %3053 = vst.msk [vmem:[#allocation3 + $0x20] sm:$0xff] %vm124_vm3, %v3051_v35 }
0x51d2   :  { %v4233_v43 = vpop.eup %4232  ;;  %v3203_v21 = vpop.permute.xlu0 %3202 }
0x51d3   :  { %3205 = vst.msk [vmem:[#allocation3 + $0x30] sm:$0xff] %vm124_vm3, %v3203_v21  ;;  %3273 = vrot.lane.b32.xlu1 %v4233_v43, %s4279_s24 }
0x51d6   :  { %v3292_v44 = vld [vmem:[#allocation3 + $0x20] sm:$0xff] }
0x51d7   :  { %2822 = vrot.lane.b32.xlu1 %v4930_v6, %s4285_s11 }
0x51da   :  { %v3294_v47 = vld [vmem:[#allocation3 + $0x30] sm:$0xff] }
0x51db   :  { %2974 = vrot.lane.b32.xlu1 %v4978_v1, %s4285_s11  ;;  %v3290_v1 = vld [vmem:[#allocation3 + $0x10] sm:$0xff] }
0x51df   :  { %3126 = vrot.lane.b32.xlu1 %v5010_v10, %s4285_s11 }
0x5245   :  { %v3274_v37 = vpop.permute.xlu1 %3273 }
0x5246   :  { %v3276_v24 = vmul.f32 %v3274_v37, %v3258_v25 }
0x5248   :  { %3278 = vrot.lane.b32.xlu1 %v3276_v24, %s4285_s11 }
0x5249   :  { %v2823_v38 = vpop.permute.xlu1 %2822 }
0x524a   :  { %2825 = vst.msk [vmem:[#allocation3 + $0x8] sm:$0xff] %vm124_vm3, %v2823_v38 }
0x524d   :  { %v2975_v2 = vpop.permute.xlu1 %2974 }
0x524e   :  { %2977 = vst.msk [vmem:[#allocation3 + $0x18] sm:$0xff] %vm124_vm3, %v2975_v2 }
0x5251   :  { %v3127_v62 = vpop.permute.xlu1 %3126  ;;  %v3289_v41 = vld [vmem:[#allocation3 + $0x8] sm:$0xff] }
0x5252   :  { %3129 = vst.msk [vmem:[#allocation3 + $0x28] sm:$0xff] %vm124_vm3, %v3127_v62  ;;  %v3296_v6 = vpack.c.bf16 %v3289_v41, %v3288_v39 }
0x5254   :  { %3995 = vmatprep.mubr.msk.bf16.mxu1 %vm124_vm3, %v3296_v6 }
0x5255   :  { %v3291_v42 = vld [vmem:[#allocation3 + $0x18] sm:$0xff] }
0x5256   :  { %v3297_v0 = vpack.c.bf16 %v3291_v42, %v3290_v1 }
0x5258   :  { %3996 = vmatmul.mubr.msk.bf16.vlgmr.msra.gmra.mxu1 %vm124_vm3, %v3297_v0 }
0x5259   :  { %v3293_v63 = vld [vmem:[#allocation3 + $0x28] sm:$0xff] }
0x525a   :  { %v3298_v16 = vpack.c.bf16 %v3293_v63, %v3292_v44 }
0x525c   :  { %3999 = vmatprep.mubr.msk.bf16.mxu1 %vm124_vm3, %v3298_v16 }
0x52ba   :  { %v3279_v7 = vpop.permute.xlu1 %3278 }
0x52bb   :  { %3281 = vst.msk [vmem:[#allocation3 + $0x38] sm:$0xff] %vm124_vm3, %v3279_v7 }
0x52c2   :  { %v3295_v49 = vld [vmem:[#allocation3 + $0x38] sm:$0xff] }
0x52c3   :  { %v3299_v10 = vpack.c.bf16 %v3295_v49, %v3294_v47 }
0x52c5   :  { %4000 = vmatmul.mubr.msk.bf16.gmra.mxu1 %vm124_vm3, %v3299_v10 }
0x5318   :  { %v3997_v28 = vpop.f32.mrf.mxu1 }
0x5319   :  { %v3371_v52 = vadd.f32 %v3997_v28, %v3486_v46 }
0x531a   :  { %v3362_v53 = vpop.f32.mrf.mxu1 }
0x531b   :  { %3395 = vst [vmem:[%s5087_s6 + $0x10] sm:$0xff] %v3371_v52  ;;  %v3363_v12 = vadd.f32 %v3486_v46, %v3362_v53 }
0x531c   :  { %v3998_v55 = vpop.f32.mrf.mxu1 }
0x531d   :  { %3393 = vst [vmem:[%s5087_s6] sm:$0xff] %v3363_v12  ;;  %v3374_v57 = vadd.f32 %v3998_v55, %v3486_v46 }
0x531e   :  { %v3365_v51 = vpop.f32.mrf.mxu1 }
0x531f   :  { %3396 = vst [vmem:[%s5087_s6 + $0x18] sm:$0xff] %v3374_v57  ;;  %v3366_v3 = vadd.f32 %v3486_v46, %v3365_v51 }
0x5321   :  { %3394 = vst [vmem:[%s5087_s6 + $0x8] sm:$0xff] %v3366_v3 }
0x5385   :  { %v4001_v45 = vpop.f32.mrf.mxu1 }
0x5386   :  { %v3387_v5 = vadd.f32 %v4001_v45, %v3486_v46 }
0x5387   :  { %v3378_v50 = vpop.f32.mrf.mxu1 }
0x5388   :  { %3399 = vst [vmem:[%s5087_s6 + $0x30] sm:$0xff] %v3387_v5  ;;  %v3379_v48 = vadd.f32 %v3486_v46, %v3378_v50 }
0x5389   :  { %v4002_v59 = vpop.f32.mrf.mxu1 }
0x538a   :  { %3397 = vst [vmem:[%s5087_s6 + $0x20] sm:$0xff] %v3379_v48  ;;  %v3390_v61 = vadd.f32 %v4002_v59, %v3486_v46 }
0x538b   :  { %v3381_v8 = vpop.f32.mrf.mxu1 }
0x538c   :  { %3400 = vst [vmem:[%s5087_s6 + $0x38] sm:$0xff] %v3390_v61  ;;  %v3382_v31 = vadd.f32 %v3486_v46, %v3381_v8 }
0x538e   :  { %3398 = vst [vmem:[%s5087_s6 + $0x28] sm:$0xff] %v3382_v31 }
0x538f   :  { %3405 = vsyncpa [#allocation5], 1 }
0x5390   :  { %3406 = vsyncpa [#allocation7], 1 }

</bundles_post_ra>
